<compile_context>
chip_gen: v7x
topology: tpu7x:2x2x1
jax: 0.10.0
libtpu: 0.0.40
codegen_flags: <defaults>
</compile_context>

<pallas_src>
import functools

import jax
import jax.numpy as jnp
from jax.experimental import pallas as pl
from jax.experimental.pallas import tpu as pltpu


def _conv_block_kernel(x_ref, w_ref, g_ref, b_ref, o_ref,
                       xpad_ref, sum_ref, sq_ref, scale_ref, shift_ref, stash_ref,
                       *, H, W, Cin, Cout, inv_count, eps, use_stash):
    # x_ref:     (1, H, W, Cin)    bf16 unpadded NHWC image tile
    # w_ref:     (9*Cin, Cout)     bf16 conv weight, rows ordered (dy, dx, cin)
    # g_ref:     (1, Cout)         f32 BN weight (gamma)
    # b_ref:     (1, Cout)         f32 BN bias (beta)
    # o_ref:     (1, Ho, Wo*Cout)  f32 pooled output tile (lane-dense)
    # xpad_ref:  (H+2, W+2, Cin)   f32 zero-padded image scratch (border zeroed once)
    # sum_ref:   (1, Cout)         f32 running sum(y)   over all N*H*W conv outputs
    # sq_ref:    (1, Cout)         f32 running sum(y*y)
    # scale_ref: (1, Cout)         f32 hoisted BN scale = gamma * rsqrt(var + eps)
    # shift_ref: (1, Cout)         f32 hoisted BN shift = beta - mean * scale
    # stash_ref: (N, H*W, Cout)    f32 per-image conv-output stash (dummy when disabled)
    p = pl.program_id(0)      # 0 = conv + batch stats (+ stash), 1 = BN + ReLU + pool
    t = pl.program_id(1)      # image index
    Ho, Wo = H // 2, W // 2
    R = H * W

    def conv_y():
        # Assemble the zero-padded image in VMEM (border was zeroed once at step (0,0)),
        # build the (H*W, 9*Cin) im2col operand with 9 static tap slices + one lane concat,
        # then a single K=9*Cin MXU push with f32 accumulation.
        xpad_ref[1:H + 1, 1:W + 1, :] = x_ref[0].astype(jnp.float32)
        xp = xpad_ref[...]
        taps = [xp[dy:dy + H, dx:dx + W, :].reshape(R, Cin)
                for dy in range(3) for dx in range(3)]
        lhs = jnp.concatenate(taps, axis=-1).astype(jnp.bfloat16)          # (R, 9*Cin)
        return jnp.dot(lhs, w_ref[...], preferred_element_type=jnp.float32)  # (R, Cout) f32

    @pl.when((p == 0) & (t == 0))
    def _init():
        xpad_ref[...] = jnp.zeros_like(xpad_ref)   # border stays zero; interior rewritten per image
        sum_ref[...] = jnp.zeros_like(sum_ref)
        sq_ref[...] = jnp.zeros_like(sq_ref)

    # ---- pass 0: conv once per image, streaming batch statistics, stash y ----
    @pl.when(p == 0)
    def _stats():
        y = conv_y()
        # TODO(synk): E[y^2]-mean^2 in f32 can suffer cancellation for very large N*H*W;
        #             switch to a centered/Welford accumulation if huge batches are expected.
        sum_ref[...] += jnp.sum(y, axis=0, keepdims=True)
        sq_ref[...] += jnp.sum(y * y, axis=0, keepdims=True)
        if use_stash:
            stash_ref[t] = y

    # ---- pass 1, first step: finalize BN affine once for the whole batch ----
    @pl.when((p == 1) & (t == 0))
    def _finalize():
        mean = sum_ref[...] * inv_count
        var = jnp.maximum(sq_ref[...] * inv_count - mean * mean, 0.0)   # biased batch var
        scale = g_ref[...] * jax.lax.rsqrt(var + eps)
        scale_ref[...] = scale
        shift_ref[...] = b_ref[...] - mean * scale

    # ---- pass 1: BN affine + ReLU + 2x2/2 max pool, lane-dense store ----
    @pl.when(p == 1)
    def _apply():
        y = stash_ref[t] if use_stash else conv_y()                     # (R, Cout) f32
        z = jnp.maximum(y * scale_ref[...] + shift_ref[...], 0.0)
        zh = z.reshape(Ho, 2, W, Cout)                                  # h = 2*ho + a
        ph = jnp.maximum(zh[:, 0], zh[:, 1])                            # (Ho, W, Cout)
        pw = ph.reshape(Ho, Wo, 2, Cout)                                # w = 2*wo + b
        pooled = jnp.maximum(pw[:, :, 0, :], pw[:, :, 1, :])            # (Ho, Wo, Cout)
        # Fold Wo into the lane dim so the store is a wide (Wo*Cout) store rather than
        # Cout-wide masked partial stores.
        dense = jnp.concatenate([pooled[:, wo, :] for wo in range(Wo)], axis=-1)
        o_ref[0] = dense.astype(o_ref.dtype)


def _round_up(x, m):
    return (x + m - 1) // m * m


def conv_block_forward(x_nchw, w_oihw, gamma, beta, eps=1e-5):
    """Forward pass of ConvBlock. Input/weight/output follow PyTorch conventions (NCHW)."""
    N, Cin, H, W = x_nchw.shape
    Cout = w_oihw.shape[0]
    assert H % 2 == 0 and W % 2 == 0, "MaxPool2d(2,2) needs even spatial dims"
    Ho, Wo = H // 2, W // 2
    R = H * W

    # NCHW -> NHWC + bf16 cast (one fused XLA op). No HBM pad: padding happens in VMEM.
    x_nhwc = jnp.transpose(x_nchw, (0, 2, 3, 1)).astype(jnp.bfloat16)
    # conv weight (Cout, Cin, 3, 3) -> (dy, dx, cin, cout) -> (9*Cin, Cout)
    wmat = jnp.transpose(w_oihw, (2, 3, 1, 0)).reshape(9 * Cin, Cout).astype(jnp.bfloat16)
    gamma2 = gamma.reshape(1, Cout).astype(jnp.float32)
    beta2 = beta.reshape(1, Cout).astype(jnp.float32)

    # y stash across the two passes (f32; account for lane/sublane padding). Fall back to
    # recomputing the conv in pass 1 when it does not fit a conservative VMEM budget.
    stash_bytes = N * _round_up(R, 8) * _round_up(Cout, 128) * 4
    use_stash = stash_bytes <= 24 * 1024 * 1024
    stash_shape = (N, R, Cout) if use_stash else (1, 8, 128)

    kernel = functools.partial(
        _conv_block_kernel, H=H, W=W, Cin=Cin, Cout=Cout,
        inv_count=1.0 / float(N * H * W), eps=float(eps), use_stash=use_stash)

    conv_passes = 1 if use_stash else 2
    flops = 2 * conv_passes * N * R * 9 * Cin * Cout
    bytes_accessed = int(conv_passes * x_nhwc.size * 2 + wmat.size * 2 +
                         (gamma2.size + beta2.size) * 4 + N * Ho * Wo * Cout * 4)

    if use_stash:
        # pass 1 reads y from the VMEM stash; park the x window on block 0 so the input is
        # DMA'd from HBM only N+1 times total (one redundant block at the pass boundary).
        x_index_map = lambda p, t: ((1 - p) * t, 0, 0, 0)
    else:
        x_index_map = lambda p, t: (t, 0, 0, 0)

    out_dense = pl.pallas_call(
        kernel,
        out_shape=jax.ShapeDtypeStruct((N, Ho, Wo * Cout), jnp.float32),
        grid_spec=pltpu.PrefetchScalarGridSpec(
            num_scalar_prefetch=0,
            grid=(2, N),                                  # (pass, image)
            in_specs=[
                pl.BlockSpec((1, H, W, Cin), x_index_map),
                pl.BlockSpec((9 * Cin, Cout), lambda p, t: (0, 0)),
                pl.BlockSpec((1, Cout), lambda p, t: (0, 0)),
                pl.BlockSpec((1, Cout), lambda p, t: (0, 0)),
            ],
            # Output parking: pass 0 never writes o_ref, so every pass-0 step maps the output
            # window to block 0.  The block index therefore never changes before pass 1 step 0
            # has filled block 0 with real data; after that it advances 0,1,...,N-1.  Every
            # output block has a single contiguous residency span (no block is ever revisited)
            # and is written back to HBM exactly once, carrying pass-1 data.
            out_specs=pl.BlockSpec((1, Ho, Wo * Cout), lambda p, t: (p * t, 0, 0)),
            scratch_shapes=[
                pltpu.VMEM((H + 2, W + 2, Cin), jnp.float32),   # zero-padded image
                pltpu.VMEM((1, Cout), jnp.float32),             # running sum(y)
                pltpu.VMEM((1, Cout), jnp.float32),             # running sum(y*y)
                pltpu.VMEM((1, Cout), jnp.float32),             # BN scale (hoisted)
                pltpu.VMEM((1, Cout), jnp.float32),             # BN shift (hoisted)
                pltpu.VMEM(stash_shape, jnp.float32),           # per-image conv-output stash
            ],
        ),
        compiler_params=pltpu.CompilerParams(
            dimension_semantics=("arbitrary", "arbitrary"),
            vmem_limit_bytes=min(64 * 1024 * 1024,
                                 32 * 1024 * 1024 + (stash_bytes if use_stash else 0)),
        ),
        cost_estimate=pl.CostEstimate(flops=flops, transcendentals=Cout,
                                      bytes_accessed=bytes_accessed),
    )(x_nhwc, wmat, gamma2, beta2)

    # (N, Ho, Wo*Cout) -> NHWC -> NCHW
    return jnp.transpose(out_dense.reshape(N, Ho, Wo, Cout), (0, 3, 1, 2))


def _reference(x_nchw, w_oihw, gamma, beta, eps=1e-5):
    """Pure-JAX reference matching PyTorch ConvBlock.forward (training-mode BN)."""
    y = jax.lax.conv_general_dilated(
        x_nchw.astype(jnp.float32), w_oihw.astype(jnp.float32),
        window_strides=(1, 1), padding="SAME",
        dimension_numbers=("NCHW", "OIHW", "NCHW"))
    mean = y.mean(axis=(0, 2, 3), keepdims=True)
    var = y.var(axis=(0, 2, 3), keepdims=True)   # biased, as in BN forward
    yn = (y - mean) / jnp.sqrt(var + eps)
    yn = yn * gamma.reshape(1, -1, 1, 1) + beta.reshape(1, -1, 1, 1)
    yr = jnp.maximum(yn, 0.0)
    return jax.lax.reduce_window(yr, -jnp.inf, jax.lax.max,
                                 (1, 1, 2, 2), (1, 1, 2, 2), "VALID")


if __name__ == "__main__":
    # small shapes consistent with ConvBlock(in_channels=4, out_channels=8)
    N, Cin, H, W, Cout = 2, 4, 16, 16, 8

    key = jax.random.PRNGKey(0)
    kx, kw, kg, kb = jax.random.split(key, 4)

    x = jax.random.normal(kx, (N, Cin, H, W), dtype=jnp.float32)
    # Conv2d weight (Cout, Cin, 3, 3), bias=False; kaiming-ish deterministic init.
    w = jax.random.normal(kw, (Cout, Cin, 3, 3), dtype=jnp.float32) * (2.0 / (9 * Cin)) ** 0.5
    # BatchNorm2d affine params (perturbed from PyTorch defaults so they are exercised).
    gamma = 1.0 + 0.1 * jax.random.normal(kg, (Cout,), dtype=jnp.float32)
    beta = 0.1 * jax.random.normal(kb, (Cout,), dtype=jnp.float32)

    fwd = jax.jit(conv_block_forward)
    out = jax.block_until_ready(fwd(x, w, gamma, beta))
    assert out.shape == (N, Cout, H // 2, W // 2), out.shape

    # Tight check: reference fed the kernel's bf16 operand quantization (bf16*bf16 products
    # are exact in f32, accumulation is f32 in both), so this validates conv/BN/ReLU/pool.
    xq = x.astype(jnp.bfloat16).astype(jnp.float32)
    wq = w.astype(jnp.bfloat16).astype(jnp.float32)
    ref_q = jax.block_until_ready(_reference(xq, wq, gamma, beta))
    err_q = float(jnp.max(jnp.abs(out - ref_q)))
    assert jnp.allclose(out, ref_q, atol=2e-3, rtol=2e-3), err_q

    # Loose check against the exact f32 module semantics; slack = bf16 operand cast.
    ref = jax.block_until_ready(_reference(x, w, gamma, beta))
    err = float(jnp.max(jnp.abs(out - ref)))
    assert jnp.allclose(out, ref, atol=6e-2, rtol=6e-2), err

    print("KERNEL_OK")
</pallas_src>

<mosaic_0001>
module attributes {stable_mosaic.version = 11 : i64} {
  func.func @_conv_block_kernel(%arg0: i32, %arg1: i32, %arg2: memref<1x16x16x4xbf16, #tpu.memory_space<vmem>>, %arg3: memref<36x8xbf16, #tpu.memory_space<vmem>>, %arg4: memref<1x8xf32, #tpu.memory_space<vmem>>, %arg5: memref<1x8xf32, #tpu.memory_space<vmem>>, %arg6: memref<1x8x64xf32, #tpu.memory_space<vmem>>, %arg7: memref<18x18x4xf32, #tpu.memory_space<vmem>>, %arg8: memref<1x8xf32, #tpu.memory_space<vmem>>, %arg9: memref<1x8xf32, #tpu.memory_space<vmem>>, %arg10: memref<1x8xf32, #tpu.memory_space<vmem>>, %arg11: memref<1x8xf32, #tpu.memory_space<vmem>>, %arg12: memref<2x256x8xf32, #tpu.memory_space<vmem>>) attributes {dimension_semantics = [#tpu.dimension_semantics<arbitrary>, #tpu.dimension_semantics<arbitrary>], iteration_bounds = array<i64: 2, 2>, scalar_prefetch = 0 : i64, scratch_operands = 6 : i64, tpu.core_type = #tpu.core_type<tc>, window_params = [{transform_indices = @transform_0, window_bounds = array<i64: 1, 16, 16, 4>}, {pipeline_mode = #tpu.pipeline_mode<synchronous>, transform_indices = @transform_1, window_bounds = array<i64: 36, 8>}, {pipeline_mode = #tpu.pipeline_mode<synchronous>, transform_indices = @transform_2, window_bounds = array<i64: 1, 8>}, {pipeline_mode = #tpu.pipeline_mode<synchronous>, transform_indices = @transform_3, window_bounds = array<i64: 1, 8>}, {transform_indices = @transform_4, window_bounds = array<i64: 1, 8, 64>}]} {
    %c0_i32 = arith.constant 0 : i32
    %0 = arith.cmpi eq, %arg0, %c0_i32 : i32
    %c0_i32_0 = arith.constant 0 : i32
    %1 = arith.cmpi eq, %arg1, %c0_i32_0 : i32
    %2 = arith.andi %0, %1 : i1
    %3 = arith.extui %2 : i1 to i32
    %c0_i32_1 = arith.constant 0 : i32
    %4 = arith.cmpi ne, %3, %c0_i32_1 : i32
    scf.if %4 {
      %cst = arith.constant 0.000000e+00 : f32
      %16 = vector.broadcast %cst : f32 to vector<18x18x4xf32>
      %c0 = arith.constant 0 : index
      %c0_8 = arith.constant 0 : index
      %c0_9 = arith.constant 0 : index
      %17 = vector.load %arg7[%c0, %c0_8, %c0_9] : memref<18x18x4xf32, #tpu.memory_space<vmem>>, vector<18x18x4xf32>
      tpu.vector_store %arg7[%c0, %c0_8, %c0_9], %16 {strides = array<i32>} : memref<18x18x4xf32, #tpu.memory_space<vmem>>, vector<18x18x4xf32>,
      %cst_10 = arith.constant 0.000000e+00 : f32
      %18 = vector.broadcast %cst_10 : f32 to vector<1x8xf32>
      %c0_11 = arith.constant 0 : index
      %c0_12 = arith.constant 0 : index
      %19 = vector.load %arg8[%c0_11, %c0_12] : memref<1x8xf32, #tpu.memory_space<vmem>>, vector<1x8xf32>
      tpu.vector_store %arg8[%c0_11, %c0_12], %18 {strides = array<i32>} : memref<1x8xf32, #tpu.memory_space<vmem>>, vector<1x8xf32>,
      %cst_13 = arith.constant 0.000000e+00 : f32
      %20 = vector.broadcast %cst_13 : f32 to vector<1x8xf32>
      %c0_14 = arith.constant 0 : index
      %c0_15 = arith.constant 0 : index
      %21 = vector.load %arg9[%c0_14, %c0_15] : memref<1x8xf32, #tpu.memory_space<vmem>>, vector<1x8xf32>
      tpu.vector_store %arg9[%c0_14, %c0_15], %20 {strides = array<i32>} : memref<1x8xf32, #tpu.memory_space<vmem>>, vector<1x8xf32>,
    } else {
    }
    %c0_i32_2 = arith.constant 0 : i32
    %5 = arith.cmpi eq, %arg0, %c0_i32_2 : i32
    %6 = arith.extui %5 : i1 to i32
    %c0_i32_3 = arith.constant 0 : i32
    %7 = arith.cmpi ne, %6, %c0_i32_3 : i32
    scf.if %7 {
      %c0 = arith.constant 0 : index
      %c0_8 = arith.constant 0 : index
      %c0_9 = arith.constant 0 : index
      %c0_10 = arith.constant 0 : index
      %16 = vector.load %arg2[%c0, %c0_8, %c0_9, %c0_10] : memref<1x16x16x4xbf16, #tpu.memory_space<vmem>>, vector<1x16x16x4xbf16>
      %17 = vector.shape_cast %16 : vector<1x16x16x4xbf16> to vector<16x16x4xbf16>
      %18 = arith.extf %17 : vector<16x16x4xbf16> to vector<16x16x4xf32>
      %c1 = arith.constant 1 : index
      %c1_11 = arith.constant 1 : index
      %c0_12 = arith.constant 0 : index
      %19 = vector.load %arg7[%c1, %c1_11, %c0_12] : memref<18x18x4xf32, #tpu.memory_space<vmem>>, vector<16x16x4xf32>
      tpu.vector_store %arg7[%c1, %c1_11, %c0_12], %18 {strides = array<i32>} : memref<18x18x4xf32, #tpu.memory_space<vmem>>, vector<16x16x4xf32>,
      %c0_13 = arith.constant 0 : index
      %c0_14 = arith.constant 0 : index
      %c0_15 = arith.constant 0 : index
      %20 = vector.load %arg7[%c0_13, %c0_14, %c0_15] : memref<18x18x4xf32, #tpu.memory_space<vmem>>, vector<18x18x4xf32>
      %21 = vector.extract_strided_slice %20 {offsets = [0, 0, 0], sizes = [16, 16, 4], strides = [1, 1, 1]} : vector<18x18x4xf32> to vector<16x16x4xf32>
      %22 = vector.shape_cast %21 : vector<16x16x4xf32> to vector<256x4xf32>
      %23 = vector.extract_strided_slice %20 {offsets = [0, 1, 0], sizes = [16, 16, 4], strides = [1, 1, 1]} : vector<18x18x4xf32> to vector<16x16x4xf32>
      %24 = vector.shape_cast %23 : vector<16x16x4xf32> to vector<256x4xf32>
      %25 = vector.extract_strided_slice %20 {offsets = [0, 2, 0], sizes = [16, 16, 4], strides = [1, 1, 1]} : vector<18x18x4xf32> to vector<16x16x4xf32>
      %26 = vector.shape_cast %25 : vector<16x16x4xf32> to vector<256x4xf32>
      %27 = vector.extract_strided_slice %20 {offsets = [1, 0, 0], sizes = [16, 16, 4], strides = [1, 1, 1]} : vector<18x18x4xf32> to vector<16x16x4xf32>
      %28 = vector.shape_cast %27 : vector<16x16x4xf32> to vector<256x4xf32>
      %29 = vector.extract_strided_slice %20 {offsets = [1, 1, 0], sizes = [16, 16, 4], strides = [1, 1, 1]} : vector<18x18x4xf32> to vector<16x16x4xf32>
      %30 = vector.shape_cast %29 : vector<16x16x4xf32> to vector<256x4xf32>
      %31 = vector.extract_strided_slice %20 {offsets = [1, 2, 0], sizes = [16, 16, 4], strides = [1, 1, 1]} : vector<18x18x4xf32> to vector<16x16x4xf32>
      %32 = vector.shape_cast %31 : vector<16x16x4xf32> to vector<256x4xf32>
      %33 = vector.extract_strided_slice %20 {offsets = [2, 0, 0], sizes = [16, 16, 4], strides = [1, 1, 1]} : vector<18x18x4xf32> to vector<16x16x4xf32>
      %34 = vector.shape_cast %33 : vector<16x16x4xf32> to vector<256x4xf32>
      %35 = vector.extract_strided_slice %20 {offsets = [2, 1, 0], sizes = [16, 16, 4], strides = [1, 1, 1]} : vector<18x18x4xf32> to vector<16x16x4xf32>
      %36 = vector.shape_cast %35 : vector<16x16x4xf32> to vector<256x4xf32>
      %37 = vector.extract_strided_slice %20 {offsets = [2, 2, 0], sizes = [16, 16, 4], strides = [1, 1, 1]} : vector<18x18x4xf32> to vector<16x16x4xf32>
      %38 = vector.shape_cast %37 : vector<16x16x4xf32> to vector<256x4xf32>
      %39 = tpu.concatenate %22, %24, %26, %28, %30, %32, %34, %36, %38 in 1 : vector<256x4xf32>, vector<256x4xf32>, vector<256x4xf32>, vector<256x4xf32>, vector<256x4xf32>, vector<256x4xf32>, vector<256x4xf32>, vector<256x4xf32>, vector<256x4xf32> -> vector<256x36xf32>
      %40 = arith.truncf %39 : vector<256x36xf32> to vector<256x36xbf16>
      %c0_16 = arith.constant 0 : index
      %c0_17 = arith.constant 0 : index
      %41 = vector.load %arg3[%c0_16, %c0_17] : memref<36x8xbf16, #tpu.memory_space<vmem>>, vector<36x8xbf16>
      %cst = arith.constant dense<0.000000e+00> : vector<256x8xf32>
      %42 = tpu.matmul %40, %41, %cst {dimension_numbers = #tpu.dot_dimension_numbers<[1], [0], [0], [1], [0, 0, 1, 1], [], []>} : vector<256x36xbf16>, vector<36x8xbf16>, vector<256x8xf32> -> vector<256x8xf32>
      %c0_18 = arith.constant 0 : index
      %c0_19 = arith.constant 0 : index
      %43 = vector.load %arg8[%c0_18, %c0_19] : memref<1x8xf32, #tpu.memory_space<vmem>>, vector<1x8xf32>
      %cst_20 = arith.constant dense<0.000000e+00> : vector<8xf32>
      %44 = vector.multi_reduction <add>, %42, %cst_20 [0] : vector<256x8xf32> to vector<8xf32>
      %45 = vector.shape_cast %44 : vector<8xf32> to vector<1x8xf32>
      %46 = arith.addf %43, %45 : vector<1x8xf32>
      %c0_21 = arith.constant 0 : index
      %c0_22 = arith.constant 0 : index
      %47 = vector.load %arg8[%c0_21, %c0_22] : memref<1x8xf32, #tpu.memory_space<vmem>>, vector<1x8xf32>
      tpu.vector_store %arg8[%c0_21, %c0_22], %46 {strides = array<i32>} : memref<1x8xf32, #tpu.memory_space<vmem>>, vector<1x8xf32>,
      %c0_23 = arith.constant 0 : index
      %c0_24 = arith.constant 0 : index
      %48 = vector.load %arg9[%c0_23, %c0_24] : memref<1x8xf32, #tpu.memory_space<vmem>>, vector<1x8xf32>
      %49 = arith.mulf %42, %42 : vector<256x8xf32>
      %cst_25 = arith.constant dense<0.000000e+00> : vector<8xf32>
      %50 = vector.multi_reduction <add>, %49, %cst_25 [0] : vector<256x8xf32> to vector<8xf32>
      %51 = vector.shape_cast %50 : vector<8xf32> to vector<1x8xf32>
      %52 = arith.addf %48, %51 : vector<1x8xf32>
      %c0_26 = arith.constant 0 : index
      %c0_27 = arith.constant 0 : index
      %53 = vector.load %arg9[%c0_26, %c0_27] : memref<1x8xf32, #tpu.memory_space<vmem>>, vector<1x8xf32>
      tpu.vector_store %arg9[%c0_26, %c0_27], %52 {strides = array<i32>} : memref<1x8xf32, #tpu.memory_space<vmem>>, vector<1x8xf32>,
      %54 = arith.index_cast %arg1 : i32 to index
      %c0_28 = arith.constant 0 : index
      %c0_29 = arith.constant 0 : index
      %55 = vector.load %arg12[%54, %c0_28, %c0_29] : memref<2x256x8xf32, #tpu.memory_space<vmem>>, vector<1x256x8xf32>
      %56 = vector.shape_cast %55 : vector<1x256x8xf32> to vector<256x8xf32>
      %57 = vector.shape_cast %42 : vector<256x8xf32> to vector<1x256x8xf32>
      tpu.vector_store %arg12[%54, %c0_28, %c0_29], %57 {strides = array<i32>} : memref<2x256x8xf32, #tpu.memory_space<vmem>>, vector<1x256x8xf32>,
    } else {
    }
    %c1_i32 = arith.constant 1 : i32
    %8 = arith.cmpi eq, %arg0, %c1_i32 : i32
    %c0_i32_4 = arith.constant 0 : i32
    %9 = arith.cmpi eq, %arg1, %c0_i32_4 : i32
    %10 = arith.andi %8, %9 : i1
    %11 = arith.extui %10 : i1 to i32
    %c0_i32_5 = arith.constant 0 : i32
    %12 = arith.cmpi ne, %11, %c0_i32_5 : i32
    scf.if %12 {
      %c0 = arith.constant 0 : index
      %c0_8 = arith.constant 0 : index
      %16 = vector.load %arg8[%c0, %c0_8] : memref<1x8xf32, #tpu.memory_space<vmem>>, vector<1x8xf32>
      %cst = arith.constant 0.001953125 : f32
      %17 = vector.broadcast %cst : f32 to vector<1x8xf32>
      %18 = arith.mulf %16, %17 : vector<1x8xf32>
      %c0_9 = arith.constant 0 : index
      %c0_10 = arith.constant 0 : index
      %19 = vector.load %arg9[%c0_9, %c0_10] : memref<1x8xf32, #tpu.memory_space<vmem>>, vector<1x8xf32>
      %cst_11 = arith.constant 0.001953125 : f32
      %20 = vector.broadcast %cst_11 : f32 to vector<1x8xf32>
      %21 = arith.mulf %19, %20 : vector<1x8xf32>
      %22 = arith.mulf %18, %18 : vector<1x8xf32>
      %23 = arith.subf %21, %22 : vector<1x8xf32>
      %cst_12 = arith.constant 0.000000e+00 : f32
      %24 = vector.broadcast %cst_12 : f32 to vector<1x8xf32>
      %25 = arith.maximumf %23, %24 : vector<1x8xf32>
      %c0_13 = arith.constant 0 : index
      %c0_14 = arith.constant 0 : index
      %26 = vector.load %arg4[%c0_13, %c0_14] : memref<1x8xf32, #tpu.memory_space<vmem>>, vector<1x8xf32>
      %cst_15 = arith.constant 9.99999974E-6 : f32
      %27 = vector.broadcast %cst_15 : f32 to vector<1x8xf32>
      %28 = arith.addf %25, %27 : vector<1x8xf32>
      %29 = math.rsqrt %28 : vector<1x8xf32>
      %30 = arith.mulf %26, %29 : vector<1x8xf32>
      %c0_16 = arith.constant 0 : index
      %c0_17 = arith.constant 0 : index
      %31 = vector.load %arg10[%c0_16, %c0_17] : memref<1x8xf32, #tpu.memory_space<vmem>>, vector<1x8xf32>
      tpu.vector_store %arg10[%c0_16, %c0_17], %30 {strides = array<i32>} : memref<1x8xf32, #tpu.memory_space<vmem>>, vector<1x8xf32>,
      %c0_18 = arith.constant 0 : index
      %c0_19 = arith.constant 0 : index
      %32 = vector.load %arg5[%c0_18, %c0_19] : memref<1x8xf32, #tpu.memory_space<vmem>>, vector<1x8xf32>
      %33 = arith.mulf %18, %30 : vector<1x8xf32>
      %34 = arith.subf %32, %33 : vector<1x8xf32>
      %c0_20 = arith.constant 0 : index
      %c0_21 = arith.constant 0 : index
      %35 = vector.load %arg11[%c0_20, %c0_21] : memref<1x8xf32, #tpu.memory_space<vmem>>, vector<1x8xf32>
      tpu.vector_store %arg11[%c0_20, %c0_21], %34 {strides = array<i32>} : memref<1x8xf32, #tpu.memory_space<vmem>>, vector<1x8xf32>,
    } else {
    }
    %c1_i32_6 = arith.constant 1 : i32
    %13 = arith.cmpi eq, %arg0, %c1_i32_6 : i32
    %14 = arith.extui %13 : i1 to i32
    %c0_i32_7 = arith.constant 0 : i32
    %15 = arith.cmpi ne, %14, %c0_i32_7 : i32
    scf.if %15 {
      %16 = arith.index_cast %arg1 : i32 to index
      %c0 = arith.constant 0 : index
      %c0_8 = arith.constant 0 : index
      %17 = vector.load %arg12[%16, %c0, %c0_8] : memref<2x256x8xf32, #tpu.memory_space<vmem>>, vector<1x256x8xf32>
      %18 = vector.shape_cast %17 : vector<1x256x8xf32> to vector<256x8xf32>
      %c0_9 = arith.constant 0 : index
      %c0_10 = arith.constant 0 : index
      %19 = vector.load %arg10[%c0_9, %c0_10] : memref<1x8xf32, #tpu.memory_space<vmem>>, vector<1x8xf32>
      %20 = vector.broadcast %19 : vector<1x8xf32> to vector<256x8xf32>
      %21 = arith.mulf %18, %20 : vector<256x8xf32>
      %c0_11 = arith.constant 0 : index
      %c0_12 = arith.constant 0 : index
      %22 = vector.load %arg11[%c0_11, %c0_12] : memref<1x8xf32, #tpu.memory_space<vmem>>, vector<1x8xf32>
      %23 = vector.broadcast %22 : vector<1x8xf32> to vector<256x8xf32>
      %24 = arith.addf %21, %23 : vector<256x8xf32>
      %cst = arith.constant 0.000000e+00 : f32
      %25 = vector.broadcast %cst : f32 to vector<256x8xf32>
      %26 = arith.maximumf %24, %25 : vector<256x8xf32>
      %27 = vector.shape_cast %26 : vector<256x8xf32> to vector<8x2x16x8xf32>
      %28 = vector.extract_strided_slice %27 {offsets = [0, 0, 0, 0], sizes = [8, 1, 16, 8], strides = [1, 1, 1, 1]} : vector<8x2x16x8xf32> to vector<8x1x16x8xf32>
      %29 = vector.shape_cast %28 : vector<8x1x16x8xf32> to vector<8x16x8xf32>
      %30 = vector.extract_strided_slice %27 {offsets = [0, 1, 0, 0], sizes = [8, 1, 16, 8], strides = [1, 1, 1, 1]} : vector<8x2x16x8xf32> to vector<8x1x16x8xf32>
      %31 = vector.shape_cast %30 : vector<8x1x16x8xf32> to vector<8x16x8xf32>
      %32 = arith.maximumf %29, %31 : vector<8x16x8xf32>
      %33 = vector.shape_cast %32 : vector<8x16x8xf32> to vector<8x8x2x8xf32>
      %34 = vector.extract_strided_slice %33 {offsets = [0, 0, 0, 0], sizes = [8, 8, 1, 8], strides = [1, 1, 1, 1]} : vector<8x8x2x8xf32> to vector<8x8x1x8xf32>
      %35 = vector.shape_cast %34 : vector<8x8x1x8xf32> to vector<8x8x8xf32>
      %36 = vector.extract_strided_slice %33 {offsets = [0, 0, 1, 0], sizes = [8, 8, 1, 8], strides = [1, 1, 1, 1]} : vector<8x8x2x8xf32> to vector<8x8x1x8xf32>
      %37 = vector.shape_cast %36 : vector<8x8x1x8xf32> to vector<8x8x8xf32>
      %38 = arith.maximumf %35, %37 : vector<8x8x8xf32>
      %39 = vector.extract_strided_slice %38 {offsets = [0, 0, 0], sizes = [8, 1, 8], strides = [1, 1, 1]} : vector<8x8x8xf32> to vector<8x1x8xf32>
      %40 = vector.shape_cast %39 : vector<8x1x8xf32> to vector<8x8xf32>
      %41 = vector.extract_strided_slice %38 {offsets = [0, 1, 0], sizes = [8, 1, 8], strides = [1, 1, 1]} : vector<8x8x8xf32> to vector<8x1x8xf32>
      %42 = vector.shape_cast %41 : vector<8x1x8xf32> to vector<8x8xf32>
      %43 = vector.extract_strided_slice %38 {offsets = [0, 2, 0], sizes = [8, 1, 8], strides = [1, 1, 1]} : vector<8x8x8xf32> to vector<8x1x8xf32>
      %44 = vector.shape_cast %43 : vector<8x1x8xf32> to vector<8x8xf32>
      %45 = vector.extract_strided_slice %38 {offsets = [0, 3, 0], sizes = [8, 1, 8], strides = [1, 1, 1]} : vector<8x8x8xf32> to vector<8x1x8xf32>
      %46 = vector.shape_cast %45 : vector<8x1x8xf32> to vector<8x8xf32>
      %47 = vector.extract_strided_slice %38 {offsets = [0, 4, 0], sizes = [8, 1, 8], strides = [1, 1, 1]} : vector<8x8x8xf32> to vector<8x1x8xf32>
      %48 = vector.shape_cast %47 : vector<8x1x8xf32> to vector<8x8xf32>
      %49 = vector.extract_strided_slice %38 {offsets = [0, 5, 0], sizes = [8, 1, 8], strides = [1, 1, 1]} : vector<8x8x8xf32> to vector<8x1x8xf32>
      %50 = vector.shape_cast %49 : vector<8x1x8xf32> to vector<8x8xf32>
      %51 = vector.extract_strided_slice %38 {offsets = [0, 6, 0], sizes = [8, 1, 8], strides = [1, 1, 1]} : vector<8x8x8xf32> to vector<8x1x8xf32>
      %52 = vector.shape_cast %51 : vector<8x1x8xf32> to vector<8x8xf32>
      %53 = vector.extract_strided_slice %38 {offsets = [0, 7, 0], sizes = [8, 1, 8], strides = [1, 1, 1]} : vector<8x8x8xf32> to vector<8x1x8xf32>
      %54 = vector.shape_cast %53 : vector<8x1x8xf32> to vector<8x8xf32>
      %55 = tpu.concatenate %40, %42, %44, %46, %48, %50, %52, %54 in 1 : vector<8x8xf32>, vector<8x8xf32>, vector<8x8xf32>, vector<8x8xf32>, vector<8x8xf32>, vector<8x8xf32>, vector<8x8xf32>, vector<8x8xf32> -> vector<8x64xf32>
      %c0_13 = arith.constant 0 : index
      %c0_14 = arith.constant 0 : index
      %c0_15 = arith.constant 0 : index
      %56 = vector.load %arg6[%c0_13, %c0_14, %c0_15] : memref<1x8x64xf32, #tpu.memory_space<vmem>>, vector<1x8x64xf32>
      %57 = vector.shape_cast %56 : vector<1x8x64xf32> to vector<8x64xf32>
      %58 = vector.shape_cast %55 : vector<8x64xf32> to vector<1x8x64xf32>
      tpu.vector_store %arg6[%c0_13, %c0_14, %c0_15], %58 {strides = array<i32>} : memref<1x8x64xf32, #tpu.memory_space<vmem>>, vector<1x8x64xf32>,
    } else {
    }
    return
  }
  func.func @transform_0(%arg0: i32, %arg1: i32) -> (i32, i32, i32, i32) {
    %c1_i32 = arith.constant 1 : i32
    %0 = arith.subi %c1_i32, %arg0 : i32
    %1 = arith.muli %0, %arg1 : i32
    %c0_i32 = arith.constant 0 : i32
    %c0_i32_0 = arith.constant 0 : i32
    %c0_i32_1 = arith.constant 0 : i32
    %c0_i32_2 = arith.constant 0 : i32
    return %1, %c0_i32, %c0_i32_0, %c0_i32_1 : i32, i32, i32, i32
  }
  func.func @transform_1(%arg0: i32, %arg1: i32) -> (i32, i32) {
    %c0_i32 = arith.constant 0 : i32
    %c0_i32_0 = arith.constant 0 : i32
    %c0_i32_1 = arith.constant 0 : i32
    return %c0_i32, %c0_i32_0 : i32, i32
  }
  func.func @transform_2(%arg0: i32, %arg1: i32) -> (i32, i32) {
    %c0_i32 = arith.constant 0 : i32
    %c0_i32_0 = arith.constant 0 : i32
    %c0_i32_1 = arith.constant 0 : i32
    return %c0_i32, %c0_i32_0 : i32, i32
  }
  func.func @transform_3(%arg0: i32, %arg1: i32) -> (i32, i32) {
    %c0_i32 = arith.constant 0 : i32
    %c0_i32_0 = arith.constant 0 : i32
    %c0_i32_1 = arith.constant 0 : i32
    return %c0_i32, %c0_i32_0 : i32, i32
  }
  func.func @transform_4(%arg0: i32, %arg1: i32) -> (i32, i32, i32) {
    %0 = arith.muli %arg0, %arg1 : i32
    %c0_i32 = arith.constant 0 : i32
    %c0_i32_0 = arith.constant 0 : i32
    %c0_i32_1 = arith.constant 0 : i32
    return %0, %c0_i32, %c0_i32_0 : i32, i32, i32
  }
}

</mosaic_0001>

<bundles_post_ra>
// kernel: conv_block_forward.1
= control target key start
LH: loop header
LB: loop body
LE: loop exit
PB: predicated region body
PF: predicated region fallthrough
CT: control target
= control target key end

     0   :  { %s4520_s15 = smov 0   ;;  %s4522_s16 = smov 0   ;;  %s6414_s0 = inlined_call_operand.vmem [shape: bf16[2,16,16,4], index: 0, kind: input, shape index: {}]   ;;  %s6415_s1 = inlined_call_operand.vmem [shape: bf16[36,8], index: 1, kind: input, shape index: {}]   ;;  %s6416_s2 = inlined_call_operand.vmem [shape: f32[1,8], index: 2, kind: input, shape index: {}]   ;;  %s6417_s3 = inlined_call_operand.vmem [shape: f32[1,8], index: 3, kind: input, shape index: {}]   ;;  %s6418_s4 = inlined_call_operand.vmem [shape: f32[2,8,64], index: 4, kind: output, shape index: {}]  }
   0x1   :  { %s4524_s17 = smov 0   ;;  %s4526_s18 = smov 0  }
   0x2   :  { %s4528_s19 = smov 0  }
   0x3 LB: > { %s23_s20 = sadd.s32 1, %s4468_s17  ;;  %s26_s21 = sadd.s32 1, %s4472_s18  ;;  %s4476_s19 = sphi %s4528_s19, %s14_s19   ;;  %s4472_s18 = sphi %s4526_s18, %s6514_s18   ;;  %s4468_s17 = sphi %s4524_s17, %s6513_s17   ;;  %s4464_s16 = sphi %s4522_s16, %s6512_s16   ;;  %s4460_s15 = sphi %s4520_s15, %s6511_s15  }
   0x4   : > { %p24_p0 = scmp.ge.s32.totalorder %s23_s20, 2  ;;  %p3466_p1 = scmp.ge.s32.totalorder %s4476_s19, 1 }
   0x5   : > { %p184_p2 = scmp.lt.s32.totalorder %s4476_s19, 5 }
   0x6   : > { %s6516_s20 = smov (%p24_p0, %s23_s20), 0  ;;  %s6518_s21 = smov (!%p24_p0, %s26_s21), %s4472_s18 }
   0x7   : > { %p185_p3 = pnand %p3466_p1, %p184_p2  ;;  %p28_p4 = scmp.ge.s32.totalorder %s6518_s21, 2 }
   0x8   : > { %s212_s22 = ssub.s32 (!%p185_p3), 1, %s4464_s16  ;;  %s221_s23 = smul.u32 (!%p185_p3), %s4460_s15, %s4464_s16 }
   0x9   : > { %s6520_s21 = smov (%p28_p4, %s6518_s21), 0  ;;  %188 = sbr.rel (%p185_p3) target bundleno = 947 (0x3b3), region = 36 }
   0xa   : > { %s213_s24 = smul.u32 (!%p185_p3), %s4460_s15, %s212_s22  ;;  %p228_p5 = scmp.eq.s32.totalorder (!%p185_p3), %s4464_s16, 0 }
   0xb   : > { %p222_p6 = scmp.lt.s32.totalorder (!%p185_p3), %s221_s23, 1  ;;  %p229_p7 = scmp.eq.s32.totalorder (!%p185_p3), %s4460_s15, 0 }
   0xc   : > { %p214_p8 = scmp.lt.s32.totalorder (!%p185_p3), %s213_s24, 1 }
   0xd   : > { %p230_p9 = pnand (!%p185_p3), %p229_p7, %p228_p5 }
  0x10   : > { %s6522_s23 = smov (!%p222_p6, %s221_s23), 1  ;;  %s6524_s24 = smov (!%p214_p8, %s213_s24), 1 }
  0x11   : > { %s3469_s25 = sshll.u32 %s6522_s23, 3  ;;  %s3561_s26 = sshll.u32 %s6524_s24, 7  ;;  %vm234_vm0 = vcmask (!%p230_p9), 31744   ;;  %vm237_vm1 = vcmask (!%p230_p9), 25600   ;;  %vm290_vm2 = vcmask (!%p230_p9), 57344   ;;  %v4478_v0 = vmov (!%p230_p9), 0.0  }
  0x12   : > { %s4565_s29 = scalar_lea.vmem %s6418_s4, %s3469_s25  ;;  %s4570_s6 = scalar_lea.vmem %s6414_s0, %s3561_s26  ;;  %235 = vst.msk [vmem:[#allocation2] sm:$0xff] (!%p230_p9), %vm234_vm0, %v4478_v0  ;;  %236 = vst.msk [vmem:[#allocation2 + $0x8] sm:$0xff] (!%p230_p9), %vm234_vm0, %v4478_v0 }
  0x13   : > { %233 = sbr.rel (%p230_p9) target bundleno = 46 (0x2e), region = 40  ;;  %239 = vst.msk [vmem:[#allocation2 + $0x18] sm:$0xff] (!%p230_p9), %vm234_vm0, %v4478_v0  ;;  %240 = vst.msk [vmem:[#allocation2 + $0x20] sm:$0xff] (!%p230_p9), %vm234_vm0, %v4478_v0 }
  0x14   : > { %242 = vst.msk [vmem:[#allocation2 + $0x30] sm:$0xff] (!%p230_p9), %vm234_vm0, %v4478_v0  ;;  %243 = vst.msk [vmem:[#allocation2 + $0x38] sm:$0xff] (!%p230_p9), %vm234_vm0, %v4478_v0 }
  0x15   : > { %245 = vst.msk [vmem:[#allocation2 + $0x48] sm:$0xff] (!%p230_p9), %vm234_vm0, %v4478_v0  ;;  %246 = vst.msk [vmem:[#allocation2 + $0x50] sm:$0xff] (!%p230_p9), %vm234_vm0, %v4478_v0 }
  0x16   : > { %248 = vst.msk [vmem:[#allocation2 + $0x60] sm:$0xff] (!%p230_p9), %vm234_vm0, %v4478_v0  ;;  %249 = vst.msk [vmem:[#allocation2 + $0x68] sm:$0xff] (!%p230_p9), %vm234_vm0, %v4478_v0 }
  0x17   : > { %251 = vst.msk [vmem:[#allocation2 + $0x78] sm:$0xff] (!%p230_p9), %vm234_vm0, %v4478_v0  ;;  %252 = vst.msk [vmem:[#allocation2 + $0x80] sm:$0xff] (!%p230_p9), %vm234_vm0, %v4478_v0 }
  0x18   : > { %254 = vst.msk [vmem:[#allocation2 + $0x90] sm:$0xff] (!%p230_p9), %vm234_vm0, %v4478_v0  ;;  %255 = vst.msk [vmem:[#allocation2 + $0x98] sm:$0xff] (!%p230_p9), %vm234_vm0, %v4478_v0 }
  0x19   : > { %257 = vst.msk [vmem:[#allocation2 + $0xa8] sm:$0xff] (!%p230_p9), %vm234_vm0, %v4478_v0  ;;  %258 = vst.msk [vmem:[#allocation2 + $0xb0] sm:$0xff] (!%p230_p9), %vm234_vm0, %v4478_v0 }
  0x1a   : > { %260 = vst.msk [vmem:[#allocation2 + $0xc0] sm:$0xff] %vm234_vm0, %v4478_v0  ;;  %261 = vst.msk [vmem:[#allocation2 + $0xc8] sm:$0xff] %vm234_vm0, %v4478_v0 }
  0x1b   : > { %263 = vst.msk [vmem:[#allocation2 + $0xd8] sm:$0xff] %vm234_vm0, %v4478_v0  ;;  %264 = vst.msk [vmem:[#allocation2 + $0xe0] sm:$0xff] %vm234_vm0, %v4478_v0 }
  0x1c   : > { %266 = vst.msk [vmem:[#allocation2 + $0xf0] sm:$0xff] %vm234_vm0, %v4478_v0  ;;  %267 = vst.msk [vmem:[#allocation2 + $0xf8] sm:$0xff] %vm234_vm0, %v4478_v0 }
  0x1d   : > { %269 = vst.msk [vmem:[#allocation2 + $0x108] sm:$0xff] %vm234_vm0, %v4478_v0  ;;  %270 = vst.msk [vmem:[#allocation2 + $0x110] sm:$0xff] %vm234_vm0, %v4478_v0 }
  0x1e   : > { %272 = vst.msk [vmem:[#allocation2 + $0x120] sm:$0xff] %vm234_vm0, %v4478_v0  ;;  %273 = vst.msk [vmem:[#allocation2 + $0x128] sm:$0xff] %vm234_vm0, %v4478_v0 }
  0x1f   : > { %275 = vst.msk [vmem:[#allocation2 + $0x138] sm:$0xff] %vm234_vm0, %v4478_v0  ;;  %276 = vst.msk [vmem:[#allocation2 + $0x140] sm:$0xff] %vm234_vm0, %v4478_v0 }
  0x20   : > { %278 = vst.msk [vmem:[#allocation2 + $0x150] sm:$0xff] %vm234_vm0, %v4478_v0  ;;  %279 = vst.msk [vmem:[#allocation2 + $0x158] sm:$0xff] %vm234_vm0, %v4478_v0 }
  0x21   : > { %281 = vst.msk [vmem:[#allocation2 + $0x168] sm:$0xff] %vm234_vm0, %v4478_v0  ;;  %282 = vst.msk [vmem:[#allocation2 + $0x170] sm:$0xff] %vm234_vm0, %v4478_v0 }
  0x22   : > { %284 = vst.msk [vmem:[#allocation2 + $0x180] sm:$0xff] %vm234_vm0, %v4478_v0  ;;  %285 = vst.msk [vmem:[#allocation2 + $0x188] sm:$0xff] %vm234_vm0, %v4478_v0 }
  0x23   : > { %287 = vst.msk [vmem:[#allocation2 + $0x198] sm:$0xff] %vm234_vm0, %v4478_v0  ;;  %288 = vst.msk [vmem:[#allocation2 + $0x1a0] sm:$0xff] %vm234_vm0, %v4478_v0 }
  0x24   : > { %238 = vst.msk [vmem:[#allocation2 + $0x10] sm:$0x3] %vm237_vm1, %v4478_v0  ;;  %241 = vst.msk [vmem:[#allocation2 + $0x28] sm:$0x3] %vm237_vm1, %v4478_v0 }
  0x25   : > { %244 = vst.msk [vmem:[#allocation2 + $0x40] sm:$0x3] %vm237_vm1, %v4478_v0  ;;  %247 = vst.msk [vmem:[#allocation2 + $0x58] sm:$0x3] %vm237_vm1, %v4478_v0 }
  0x26   : > { %250 = vst.msk [vmem:[#allocation2 + $0x70] sm:$0x3] %vm237_vm1, %v4478_v0  ;;  %253 = vst.msk [vmem:[#allocation2 + $0x88] sm:$0x3] %vm237_vm1, %v4478_v0 }
  0x27   : > { %256 = vst.msk [vmem:[#allocation2 + $0xa0] sm:$0x3] %vm237_vm1, %v4478_v0  ;;  %259 = vst.msk [vmem:[#allocation2 + $0xb8] sm:$0x3] %vm237_vm1, %v4478_v0 }
  0x28   : > { %262 = vst.msk [vmem:[#allocation2 + $0xd0] sm:$0x3] %vm237_vm1, %v4478_v0  ;;  %265 = vst.msk [vmem:[#allocation2 + $0xe8] sm:$0x3] %vm237_vm1, %v4478_v0 }
  0x29   : > { %268 = vst.msk [vmem:[#allocation2 + $0x100] sm:$0x3] %vm237_vm1, %v4478_v0  ;;  %271 = vst.msk [vmem:[#allocation2 + $0x118] sm:$0x3] %vm237_vm1, %v4478_v0 }
  0x2a   : > { %274 = vst.msk [vmem:[#allocation2 + $0x130] sm:$0x3] %vm237_vm1, %v4478_v0  ;;  %277 = vst.msk [vmem:[#allocation2 + $0x148] sm:$0x3] %vm237_vm1, %v4478_v0 }
  0x2b   : > { %280 = vst.msk [vmem:[#allocation2 + $0x160] sm:$0x3] %vm237_vm1, %v4478_v0  ;;  %283 = vst.msk [vmem:[#allocation2 + $0x178] sm:$0x3] %vm237_vm1, %v4478_v0 }
  0x2c   : > { %286 = vst.msk [vmem:[#allocation2 + $0x190] sm:$0x3] %vm237_vm1, %v4478_v0  ;;  %289 = vst.msk [vmem:[#allocation2 + $0x1a8] sm:$0x3] %vm237_vm1, %v4478_v0 }
  0x2d   : > { %291 = vst.msk [vmem:[#allocation3] sm:$0x1] %vm290_vm2, %v4478_v0  ;;  %292 = vst.msk [vmem:[#allocation4] sm:$0x1] %vm290_vm2, %v4478_v0 }
  0x2e PF: > { %p3470_p10 = scmp.ne.s32.totalorder %s4464_s16, 0 }
  0x30   : > { %295 = sbr.rel (%p3470_p10) target bundleno = 684 (0x2ac), region = 44 }
  0x37   : > { %v4629_v1 = vld [vmem:[#allocation2] sm:$0xff]  ;;  %v4631_v2 = vld [vmem:[#allocation2 + $0x8] sm:$0xff]  ;;  %v4633_v3 = vld [vmem:[#allocation2 + $0x10] sm:$0x3]  ;;  %vm496_vm3 = vcmask 1046528   ;;  %vm361_vm4 = vcmask 31744  }
  0x38   : > { %v497_v4 = vrot.slane %v4629_v1, 1  ;;  %v498_v5 = vrot.slane %v4631_v2, 1  ;;  %v500_v6 = vrot.slane %v4633_v3, 1  ;;  %v3626_v7 = vld [vmem:[%s4570_s6 + $0x8] sm:$0xff]   ;;  %v3563_v8 = vld [vmem:[%s4570_s6] sm:$0xff]   ;;  %v3627_v12 = vld [vmem:[%s4570_s6 + $0x10] sm:$0xff]  }
  0x39   : > { %v3568_v9 = vunpack.c.l.bf16 %v3626_v7  ;;  %v3569_v10 = vunpack.c.h.bf16 %v3626_v7  ;;  %v3564_v11 = vunpack.c.l.bf16 %v3563_v8  ;;  %v3628_v13 = vld [vmem:[%s4570_s6 + $0x18] sm:$0xff]   ;;  %v3629_v14 = vld [vmem:[%s4570_s6 + $0x20] sm:$0xff]   ;;  %v3565_v17 = vunpack.c.h.bf16 %v3563_v8  ;;  %v3630_v19 = vld [vmem:[%s4570_s6 + $0x28] sm:$0xff]   ;;  %s4479_s7 = smov 4   ;;  %s4480_s8 = smov 8  }
  0x3a   : > { %v499_v15 = vsel %vm496_vm3, %v497_v4, %v498_v5  ;;  %v501_v16 = vsel %vm496_vm3, %v498_v5, %v500_v6  ;;  %v3572_v18 = vunpack.c.l.bf16 %v3627_v12  ;;  %v3631_v20 = vld [vmem:[%s4570_s6 + $0x30] sm:$0xff]   ;;  %v3632_v21 = vld [vmem:[%s4570_s6 + $0x38] sm:$0xff]   ;;  %v3573_v23 = vunpack.c.h.bf16 %v3627_v12  ;;  %v3633_v26 = vld [vmem:[%s4570_s6 + $0x40] sm:$0xff]   ;;  %s4481_s9 = smov 12   ;;  %s4482_s12 = smov 16  }
  0x3b   : > { %v3763_v22 = vpack.i.bf16 %v501_v16, %v499_v15  ;;  %364 = vst.msk [vmem:[#allocation2 + $0x31] sm:$0xff] %vm361_vm4, %v3568_v9  ;;  %365 = vst.msk [vmem:[#allocation2 + $0x39] sm:$0xff] %vm361_vm4, %v3569_v10  ;;  %v3576_v24 = vunpack.c.l.bf16 %v3628_v13  ;;  %v3577_v25 = vunpack.c.h.bf16 %v3628_v13  ;;  %v3634_v27 = vld [vmem:[%s4570_s6 + $0x48] sm:$0xff]   ;;  %v3635_v28 = vld [vmem:[%s4570_s6 + $0x50] sm:$0xff]   ;;  %v3580_v29 = vunpack.c.l.bf16 %v3629_v14  ;;  %s4483_s22 = smov 20   ;;  %s4484_s25 = smov 24  }
  0x3c   : > { %362 = vst.msk [vmem:[#allocation2 + $0x19] sm:$0xff] %vm361_vm4, %v3564_v11  ;;  %363 = vst.msk [vmem:[#allocation2 + $0x21] sm:$0xff] %vm361_vm4, %v3565_v17  ;;  %v3581_v30 = vunpack.c.h.bf16 %v3629_v14  ;;  %v3584_v31 = vunpack.c.l.bf16 %v3630_v19  ;;  %v3585_v32 = vunpack.c.h.bf16 %v3630_v19  ;;  %v3636_v33 = vld [vmem:[%s4570_s6 + $0x58] sm:$0xff]   ;;  %v3637_v34 = vld [vmem:[%s4570_s6 + $0x60] sm:$0xff]   ;;  %v3588_v36 = vunpack.c.l.bf16 %v3631_v20  ;;  %s4485_s26 = smov 28   ;;  %s4486_s27 = smov 32  }
  0x3d   : > { %366 = vst.msk [vmem:[#allocation2 + $0x49] sm:$0xff] %vm361_vm4, %v3572_v18  ;;  %v3638_v35 = vld [vmem:[%s4570_s6 + $0x68] sm:$0xff]   ;;  %3764 = vrot.lane.b32.xlu0 %v3763_v22, %s4479_s7  ;;  %367 = vst.msk [vmem:[#allocation2 + $0x51] sm:$0xff] %vm361_vm4, %v3573_v23  ;;  %v3589_v37 = vunpack.c.h.bf16 %v3631_v20  ;;  %v3592_v38 = vunpack.c.l.bf16 %v3632_v21  ;;  %v3593_v39 = vunpack.c.h.bf16 %v3632_v21  ;;  %v3639_v40 = vld [vmem:[%s4570_s6 + $0x70] sm:$0xff]   ;;  %v3596_v41 = vunpack.c.l.bf16 %v3633_v26  ;;  %s3490_s28 = sshll.u32 %s4460_s15, 8 }
  0x3e   : > { %368 = vst.msk [vmem:[#allocation2 + $0x61] sm:$0xff] %vm361_vm4, %v3576_v24  ;;  %369 = vst.msk [vmem:[#allocation2 + $0x69] sm:$0xff] %vm361_vm4, %v3577_v25  ;;  %v3597_v42 = vunpack.c.h.bf16 %v3633_v26  ;;  %v3600_v43 = vunpack.c.l.bf16 %v3634_v27  ;;  %v3601_v44 = vunpack.c.h.bf16 %v3634_v27  ;;  %v3604_v45 = vunpack.c.l.bf16 %v3635_v28  ;;  %s5804_s30 = scalar_lea.vmem [#allocation7], %s3490_s28 }
  0x3f   : > { %370 = vst.msk [vmem:[#allocation2 + $0x79] sm:$0xff] %vm361_vm4, %v3580_v29  ;;  %371 = vst.msk [vmem:[#allocation2 + $0x81] sm:$0xff] %vm361_vm4, %v3581_v30  ;;  %v3605_v46 = vunpack.c.h.bf16 %v3635_v28  ;;  %v3608_v47 = vunpack.c.l.bf16 %v3636_v33  ;;  %v3609_v48 = vunpack.c.h.bf16 %v3636_v33  ;;  %v3612_v49 = vunpack.c.l.bf16 %v3637_v34 }
  0x40   : > { %372 = vst.msk [vmem:[#allocation2 + $0x91] sm:$0xff] %vm361_vm4, %v3584_v31  ;;  %373 = vst.msk [vmem:[#allocation2 + $0x99] sm:$0xff] %vm361_vm4, %v3585_v32  ;;  %v3613_v50 = vunpack.c.h.bf16 %v3637_v34  ;;  %v3616_v51 = vunpack.c.l.bf16 %v3638_v35  ;;  %v3617_v52 = vunpack.c.h.bf16 %v3638_v35  ;;  %v3620_v53 = vunpack.c.l.bf16 %v3639_v40 }
  0x41   : > { %374 = vst.msk [vmem:[#allocation2 + $0xa9] sm:$0xff] %vm361_vm4, %v3588_v36  ;;  %375 = vst.msk [vmem:[#allocation2 + $0xb1] sm:$0xff] %vm361_vm4, %v3589_v37  ;;  %v3621_v54 = vunpack.c.h.bf16 %v3639_v40  ;;  %vm577_vm5 = vcmask 1045504   ;;  %vm1800_vm6 = vcmask 1041408   ;;  %vm1484_vm7 = vcmask 64512  }
  0x42   : > { %376 = vst.msk [vmem:[#allocation2 + $0xc1] sm:$0xff] %vm361_vm4, %v3592_v38  ;;  %377 = vst.msk [vmem:[#allocation2 + $0xc9] sm:$0xff] %vm361_vm4, %v3593_v39  ;;  %v4680_v55 = vld [vmem:[#allocation2 + $0x30] sm:$0xff]  ;;  %v4682_v56 = vld [vmem:[#allocation2 + $0x38] sm:$0xff]  ;;  %vm1517_vm8 = vcmask 97280   ;;  %vm1550_vm9 = vcmask 130048  }
  0x43   : > { %378 = vst.msk [vmem:[#allocation2 + $0xd9] sm:$0xff] %vm361_vm4, %v3596_v41  ;;  %379 = vst.msk [vmem:[#allocation2 + $0xe1] sm:$0xff] %vm361_vm4, %v3597_v42  ;;  %v4684_v57 = vld [vmem:[#allocation2 + $0x40] sm:$0x3]  ;;  %v507_v58 = vrot.slane %v4680_v55, 1  ;;  %v508_v59 = vrot.slane %v4682_v56, 1 }
  0x44   : > { %380 = vst.msk [vmem:[#allocation2 + $0xf1] sm:$0xff] %vm361_vm4, %v3600_v43  ;;  %381 = vst.msk [vmem:[#allocation2 + $0xf9] sm:$0xff] %vm361_vm4, %v3601_v44  ;;  %v510_v60 = vrot.slane %v4684_v57, 1  ;;  %v4693_v61 = vld [vmem:[#allocation2 + $0x18] sm:$0xff]  ;;  %v4695_v62 = vld [vmem:[#allocation2 + $0x20] sm:$0xff]  ;;  %vm1583_vm10 = vcmask 162816  }
  0x45   : > { %382 = vst.msk [vmem:[#allocation2 + $0x109] sm:$0xff] %vm361_vm4, %v3604_v45  ;;  %383 = vst.msk [vmem:[#allocation2 + $0x111] sm:$0xff] %vm361_vm4, %v3605_v46  ;;  %v4699_v63 = vld [vmem:[#allocation2 + $0x28] sm:$0x3]  ;;  %v502_v0 = vrot.slane %v4693_v61, 1  ;;  %v503_v4 = vrot.slane %v4695_v62, 1  ;;  %v509_v7 = vsel %vm496_vm3, %v507_v58, %v508_v59 }
  0x46   : > { %384 = vst.msk [vmem:[#allocation2 + $0x121] sm:$0xff] %vm361_vm4, %v3608_v47  ;;  %385 = vst.msk [vmem:[#allocation2 + $0x129] sm:$0xff] %vm361_vm4, %v3609_v48  ;;  %v4703_v5 = vld [vmem:[#allocation2 + $0x48] sm:$0xff]  ;;  %v4705_v6 = vld [vmem:[#allocation2 + $0x50] sm:$0xff]  ;;  %v511_v8 = vsel %vm496_vm3, %v508_v59, %v510_v60  ;;  %v505_v9 = vrot.slane %v4699_v63, 1  ;;  %vm1616_vm11 = vcmask 195584  }
  0x47   : > { %386 = vst.msk [vmem:[#allocation2 + $0x139] sm:$0xff] %vm361_vm4, %v3612_v49  ;;  %387 = vst.msk [vmem:[#allocation2 + $0x141] sm:$0xff] %vm361_vm4, %v3613_v50  ;;  %v4710_v10 = vld [vmem:[#allocation2 + $0x58] sm:$0x3]  ;;  %v512_v11 = vrot.slane %v4703_v5, 1  ;;  %v4713_v12 = vld [vmem:[#allocation2 + $0x60] sm:$0xff]  ;;  %v4717_v14 = vpack.i.bf16 %v511_v8, %v509_v7  ;;  %v504_v15 = vsel %vm496_vm3, %v502_v0, %v503_v4 }
  0x48   : > { %388 = vst.msk [vmem:[#allocation2 + $0x151] sm:$0xff] %vm361_vm4, %v3616_v51  ;;  %389 = vst.msk [vmem:[#allocation2 + $0x159] sm:$0xff] %vm361_vm4, %v3617_v52  ;;  %v4715_v13 = vld [vmem:[#allocation2 + $0x68] sm:$0xff]  ;;  %v513_v16 = vrot.slane %v4705_v6, 1  ;;  %v515_v17 = vrot.slane %v4710_v10, 1  ;;  %v4724_v19 = vld [vmem:[#allocation2 + $0x78] sm:$0xff]  ;;  %v506_v21 = vsel %vm496_vm3, %v503_v4, %v505_v9 }
  0x49   : > { %390 = vst.msk [vmem:[#allocation2 + $0x169] sm:$0xff] %vm361_vm4, %v3620_v53  ;;  %391 = vst.msk [vmem:[#allocation2 + $0x171] sm:$0xff] %vm361_vm4, %v3621_v54  ;;  %v4722_v18 = vld [vmem:[#allocation2 + $0x70] sm:$0x3]  ;;  %v4726_v20 = vld [vmem:[#allocation2 + $0x80] sm:$0xff]  ;;  %v517_v22 = vrot.slane %v4713_v12, 1  ;;  %3774 = vrot.lane.b32.xlu1 %v4717_v14, %s4479_s7  ;;  %v4738_v27 = vpack.i.bf16 %v506_v21, %v504_v15 }
  0x4a   : > { %6458 = vst [vmem:[#allocation8_spill] sm:$0xff] %v4717_v14  ;;  %v518_v23 = vrot.slane %v4715_v13, 1  ;;  %v520_v24 = vrot.slane %v4722_v18, 1  ;;  %v4732_v25 = vld [vmem:[#allocation2 + $0x88] sm:$0x3]  ;;  %v4734_v26 = vld [vmem:[#allocation2 + $0x90] sm:$0xff]  ;;  %v514_v28 = vsel %vm496_vm3, %v512_v11, %v513_v16  ;;  %v516_v29 = vsel %vm496_vm3, %v513_v16, %v515_v17 }
  0x4b   : > { %6459 = vst [vmem:[#allocation9_spill] sm:$0xff] %v4738_v27  ;;  %v522_v30 = vrot.slane %v4724_v19, 1  ;;  %v4743_v31 = vld [vmem:[#allocation2 + $0x98] sm:$0xff]  ;;  %v4745_v32 = vld [vmem:[#allocation2 + $0xa0] sm:$0x3]  ;;  %v4747_v33 = vld [vmem:[#allocation2 + $0xa8] sm:$0xff]  ;;  %v4749_v34 = vpack.i.bf16 %v516_v29, %v514_v28  ;;  %3769 = vrot.lane.b32.xlu0 %v4738_v27, %s4479_s7 }
  0x4c   : > { %v519_v35 = vsel %vm496_vm3, %v517_v22, %v518_v23  ;;  %v521_v36 = vsel %vm496_vm3, %v518_v23, %v520_v24  ;;  %v523_v37 = vrot.slane %v4726_v20, 1  ;;  %v4754_v38 = vld [vmem:[#allocation2 + $0xb0] sm:$0xff]  ;;  %v4756_v39 = vld [vmem:[#allocation2 + $0xb8] sm:$0x3]  ;;  %v4758_v40 = vld [vmem:[#allocation2 + $0xc0] sm:$0xff]  ;;  %v525_v42 = vrot.slane %v4732_v25, 1 }
  0x4d   : > { %6460 = vst [vmem:[#allocation10_spill] sm:$0xff] %v4749_v34  ;;  %v4762_v41 = vpack.i.bf16 %v521_v36, %v519_v35  ;;  %v527_v43 = vrot.slane %v4734_v26, 1  ;;  %v528_v44 = vrot.slane %v4743_v31, 1  ;;  %v4767_v45 = vld [vmem:[#allocation2 + $0xc8] sm:$0xff]  ;;  %v530_v47 = vrot.slane %v4745_v32, 1  ;;  %v4775_v51 = vld [vmem:[#allocation2 + $0xd8] sm:$0xff]  ;;  %3779 = vrot.lane.b32.xlu1 %v4749_v34, %s4479_s7 }
  0x4e   : > { %v524_v46 = vsel %vm496_vm3, %v522_v30, %v523_v37  ;;  %v532_v48 = vrot.slane %v4747_v33, 1  ;;  %v533_v49 = vrot.slane %v4754_v38, 1  ;;  %v4773_v50 = vld [vmem:[#allocation2 + $0xd0] sm:$0x3]  ;;  %v526_v52 = vsel %vm496_vm3, %v523_v37, %v525_v42  ;;  %v4783_v59 = vld [vmem:[#allocation2 + $0xe0] sm:$0xff]  ;;  %v4794_v11 = vld [vmem:[#allocation2 + $0xf8] sm:$0xff] }
  0x4f   : > { %6461 = vst [vmem:[#allocation11_spill] sm:$0xff] %v4762_v41  ;;  %v529_v53 = vsel %vm496_vm3, %v527_v43, %v528_v44  ;;  %v535_v54 = vrot.slane %v4756_v39, 1  ;;  %v537_v58 = vrot.slane %v4758_v40, 1  ;;  %v4785_v60 = vld [vmem:[#allocation2 + $0xe8] sm:$0x3]  ;;  %v4787_v0 = vpack.i.bf16 %v526_v52, %v524_v46  ;;  %v4792_v9 = vld [vmem:[#allocation2 + $0xf0] sm:$0xff]  ;;  %3784 = vrot.lane.b32.xlu0 %v4762_v41, %s4479_s7 }
  0x50   : > { %v531_v4 = vsel %vm496_vm3, %v528_v44, %v530_v47  ;;  %v534_v7 = vsel %vm496_vm3, %v532_v48, %v533_v49  ;;  %v538_v8 = vrot.slane %v4767_v45, 1  ;;  %v4796_v15 = vld [vmem:[#allocation2 + $0x100] sm:$0x3]  ;;  %v540_v21 = vrot.slane %v4773_v50, 1  ;;  %v4805_v23 = vld [vmem:[#allocation2 + $0x108] sm:$0xff]  ;;  %v4812_v35 = vld [vmem:[#allocation2 + $0x110] sm:$0xff] }
  0x51   : > { %6462 = vst [vmem:[#allocation12_spill] sm:$0xff] %v4787_v0  ;;  %v4800_v16 = vpack.i.bf16 %v531_v4, %v529_v53  ;;  %v536_v17 = vsel %vm496_vm3, %v533_v49, %v535_v54  ;;  %v542_v22 = vrot.slane %v4775_v51, 1  ;;  %v543_v29 = vrot.slane %v4783_v59, 1  ;;  %v4814_v36 = vld [vmem:[#allocation2 + $0x118] sm:$0x3]  ;;  %3789 = vrot.lane.b32.xlu1 %v4787_v0, %s4479_s7  ;;  %v4822_v46 = vld [vmem:[#allocation2 + $0x120] sm:$0xff] }
  0x52   : > { %v4807_v24 = vpack.i.bf16 %v536_v17, %v534_v7  ;;  %v539_v28 = vsel %vm496_vm3, %v537_v58, %v538_v8  ;;  %v545_v30 = vrot.slane %v4785_v60, 1  ;;  %v541_v37 = vsel %vm496_vm3, %v538_v8, %v540_v21  ;;  %v4824_v47 = vld [vmem:[#allocation2 + $0x128] sm:$0xff]  ;;  %v4829_v53 = vld [vmem:[#allocation2 + $0x130] sm:$0x3]  ;;  %v4837_v7 = vld [vmem:[#allocation2 + $0x138] sm:$0xff] }
  0x53   : > { %6463 = vst [vmem:[#allocation13_spill] sm:$0xff] %v4800_v16  ;;  %v547_v42 = vrot.slane %v4792_v9, 1  ;;  %v548_v43 = vrot.slane %v4794_v11, 1  ;;  %v550_v44 = vrot.slane %v4796_v15, 1  ;;  %v544_v48 = vsel %vm496_vm3, %v542_v22, %v543_v29  ;;  %6465 = vst [vmem:[#allocation15_spill] sm:$0xff] %v4829_v53  ;;  %3794 = vrot.lane.b32.xlu0 %v4800_v16, %s4479_s7  ;;  %v4839_v8 = vld [vmem:[#allocation2 + $0x140] sm:$0xff] }
  0x54   : > { %6464 = vst [vmem:[#allocation14_spill] sm:$0xff] %v4807_v24  ;;  %v546_v49 = vsel %vm496_vm3, %v543_v29, %v545_v30  ;;  %v552_v52 = vrot.slane %v4805_v23, 1  ;;  %v4833_v54 = vpack.i.bf16 %v541_v37, %v539_v28  ;;  %v553_v4 = vrot.slane %v4812_v35, 1  ;;  %6467 = vst [vmem:[#allocation17_spill] sm:$0xff] %v4837_v7  ;;  %v4841_v17 = vld [vmem:[#allocation2 + $0x148] sm:$0x3] }
  0x55   : > { %v549_v58 = vsel %vm496_vm3, %v547_v42, %v548_v43  ;;  %6468 = vst [vmem:[#allocation18_spill] sm:$0xff] %v4839_v8  ;;  %6469 = vst [vmem:[#allocation19_spill] sm:$0xff] %v4841_v17  ;;  %v551_v21 = vsel %vm496_vm3, %v548_v43, %v550_v44  ;;  %v555_v22 = vrot.slane %v4814_v36, 1  ;;  %v557_v29 = vrot.slane %v4822_v46, 1  ;;  %v4847_v28 = vld [vmem:[#allocation2 + $0x150] sm:$0xff]  ;;  %3799 = vrot.lane.b32.xlu1 %v4807_v24, %s4479_s7  ;;  %v4855_v0 = vld [vmem:[#allocation2 + $0x158] sm:$0xff] }
  0x56   : > { %6466 = vst [vmem:[#allocation16_spill] sm:$0xff] %v4833_v54  ;;  %v558_v30 = vrot.slane %v4824_v47, 1  ;;  %v4851_v37 = vpack.i.bf16 %v546_v49, %v544_v48  ;;  %v554_v42 = vsel %vm496_vm3, %v552_v52, %v553_v4  ;;  %v560_v16 = vrot.slane %v4829_v53, 1  ;;  %v4857_v43 = vld [vmem:[#allocation2 + $0x160] sm:$0x3]  ;;  %v4859_v44 = vld [vmem:[#allocation2 + $0x168] sm:$0xff] }
  0x57   : > { %6471 = vst [vmem:[#allocation21_spill] sm:$0xff] %v4857_v43  ;;  %v556_v41 = vsel %vm496_vm3, %v553_v4, %v555_v22  ;;  %v562_v34 = vrot.slane %v4837_v7, 1  ;;  %v563_v14 = vrot.slane %v4839_v8, 1  ;;  %v565_v24 = vrot.slane %v4841_v17, 1  ;;  %v4865_v48 = vld [vmem:[#allocation2 + $0x170] sm:$0xff]  ;;  %3804 = vrot.lane.b32.xlu0 %v4833_v54, %s4479_s7 }
  0x58   : > { %6470 = vst [vmem:[#allocation20_spill] sm:$0xff] %v4851_v37  ;;  %v4867_v49 = vld [vmem:[#allocation2 + $0x178] sm:$0x3]  ;;  %v4871_v52 = vpack.i.bf16 %v551_v21, %v549_v58  ;;  %v559_v27 = vsel %vm496_vm3, %v557_v29, %v558_v30  ;;  %v567_v53 = vrot.slane %v4847_v28, 1  ;;  %v561_v4 = vsel %vm496_vm3, %v558_v30, %v560_v16 }
  0x59   : > { %v568_v22 = vrot.slane %v4855_v0, 1  ;;  %v570_v8 = vrot.slane %v4857_v43, 1  ;;  %v572_v17 = vrot.slane %v4859_v44, 1  ;;  %v581_v7 = vrot.slane %v4633_v3, 2  ;;  %3809 = vrot.lane.b32.xlu1 %v4851_v37, %s4479_s7 }
  0x5a   : > { %v4882_v54 = vpack.i.bf16 %v556_v41, %v554_v42  ;;  %v573_v58 = vrot.slane %v4865_v48, 1  ;;  %v575_v21 = vrot.slane %v4867_v49, 1  ;;  %v564_v29 = vsel %vm496_vm3, %v562_v34, %v563_v14 }
  0x5b   : > { %v566_v16 = vsel %vm496_vm3, %v563_v14, %v565_v24  ;;  %v578_v30 = vrot.slane %v4629_v1, 2  ;;  %v579_v43 = vrot.slane %v4631_v2, 2  ;;  %3814 = vrot.lane.b32.xlu0 %v4871_v52, %s4479_s7  ;;  %v4892_v3 = vpack.i.bf16 %v561_v4, %v559_v27 }
  0x5c   : > { %v583_v41 = vrot.slane %v4693_v61, 2  ;;  %v584_v42 = vrot.slane %v4695_v62, 2  ;;  %v569_v37 = vsel %vm496_vm3, %v567_v53, %v568_v22  ;;  %v571_v34 = vsel %vm496_vm3, %v568_v22, %v570_v8 }
  0x5d   : > { %v574_v14 = vsel %vm496_vm3, %v572_v17, %v573_v58  ;;  %v576_v1 = vsel %vm496_vm3, %v573_v58, %v575_v21  ;;  %3819 = vrot.lane.b32.xlu1 %v4882_v54, %s4479_s7  ;;  %v4902_v2 = vpack.i.bf16 %v566_v16, %v564_v29  ;;  %v586_v27 = vrot.slane %v4699_v63, 2 }
  0x5e   : > { %v591_v24 = vrot.slane %v4684_v57, 2  ;;  %v580_v4 = vsel %vm577_vm5, %v578_v30, %v579_v43  ;;  %v4909_v53 = vpack.i.bf16 %v571_v34, %v569_v37  ;;  %v4911_v8 = vpack.i.bf16 %v576_v1, %v574_v14 }
  0x5f   : > { %6472 = vst [vmem:[#allocation22_spill] sm:$0xff] %v4902_v2  ;;  %3824 = vrot.lane.b32.xlu0 %v4892_v3, %s4479_s7  ;;  %v582_v17 = vsel %vm577_vm5, %v579_v43, %v581_v7  ;;  %v585_v22 = vsel %vm577_vm5, %v583_v41, %v584_v42  ;;  %v588_v58 = vrot.slane %v4680_v55, 2  ;;  %v589_v21 = vrot.slane %v4682_v56, 2 }
  0x60   : > { %6473 = vst [vmem:[#allocation23_spill] sm:$0xff] %v4909_v53  ;;  %6474 = vst [vmem:[#allocation24_spill] sm:$0xff] %v4911_v8  ;;  %v593_v63 = vrot.slane %v4703_v5, 2  ;;  %v594_v57 = vrot.slane %v4705_v6, 2  ;;  %v587_v37 = vsel %vm577_vm5, %v584_v42, %v586_v27  ;;  %v596_v29 = vrot.slane %v4710_v10, 2 }
  0x61   : > { %3829 = vrot.lane.b32.xlu1 %v4902_v2, %s4479_s7  ;;  %v598_v16 = vrot.slane %v4713_v12, 2  ;;  %v599_v7 = vrot.slane %v4715_v13, 2  ;;  %v601_v43 = vrot.slane %v4722_v18, 2  ;;  %v3843_v30 = vpack.i.bf16 %v582_v17, %v580_v4 }
  0x62   : > { %v603_v41 = vrot.slane %v4724_v19, 2  ;;  %v604_v34 = vrot.slane %v4726_v20, 2  ;;  %v606_v14 = vrot.slane %v4732_v25, 2  ;;  %v4931_v1 = vpack.i.bf16 %v587_v37, %v585_v22 }
  0x63   : > { %3834 = vrot.lane.b32.xlu0 %v4909_v53, %s4479_s7  ;;  %v590_v10 = vsel %vm577_vm5, %v588_v58, %v589_v21  ;;  %v592_v42 = vsel %vm577_vm5, %v589_v21, %v591_v24  ;;  %v595_v27 = vsel %vm577_vm5, %v593_v63, %v594_v57  ;;  %v597_v18 = vsel %vm577_vm5, %v594_v57, %v596_v29 }
  0x64   : > { %v600_v4 = vsel %vm577_vm5, %v598_v16, %v599_v7  ;;  %v608_v17 = vrot.slane %v4734_v26, 2  ;;  %v609_v53 = vrot.slane %v4743_v31, 2  ;;  %v602_v25 = vsel %vm577_vm5, %v599_v7, %v601_v43 }
  0x65   : > { %3839 = vrot.lane.b32.xlu1 %v4911_v8, %s4479_s7  ;;  %v611_v22 = vrot.slane %v4745_v32, 2  ;;  %v613_v58 = vrot.slane %v4747_v33, 2  ;;  %v614_v24 = vrot.slane %v4754_v38, 2  ;;  %v4947_v21 = vpack.i.bf16 %v592_v42, %v590_v10  ;;  %v6478_v8 = vld [vmem:[#allocation19_spill] sm:$0xff] }
  0x66   : > { %v605_v63 = vsel %vm577_vm5, %v603_v41, %v604_v34  ;;  %v607_v57 = vsel %vm577_vm5, %v604_v34, %v606_v14  ;;  %v616_v37 = vrot.slane %v4756_v39, 2  ;;  %v4954_v29 = vpack.i.bf16 %v597_v18, %v595_v27 }
  0x67   : > { %3844 = vrot.lane.b32.xlu0 %v3843_v30, %s4480_s8  ;;  %v4956_v32 = vpack.i.bf16 %v602_v25, %v600_v4  ;;  %v610_v16 = vsel %vm577_vm5, %v608_v17, %v609_v53  ;;  %v4959_v7 = vpack.i.bf16 %v607_v57, %v605_v63  ;;  %v612_v43 = vsel %vm577_vm5, %v609_v53, %v611_v22 }
  0x68   : > { %v615_v30 = vsel %vm577_vm5, %v613_v58, %v614_v24  ;;  %v618_v41 = vrot.slane %v4758_v40, 2  ;;  %v619_v39 = vrot.slane %v4767_v45, 2  ;;  %v621_v34 = vrot.slane %v4773_v50, 2 }
  0x69   : > { %3849 = vrot.lane.b32.xlu1 %v4931_v1, %s4480_s8  ;;  %v623_v14 = vrot.slane %v4775_v51, 2  ;;  %v624_v10 = vrot.slane %v4783_v59, 2  ;;  %v617_v42 = vsel %vm577_vm5, %v614_v24, %v616_v37  ;;  %v626_v27 = vrot.slane %v4785_v60, 2 }
  0x6a   : > { %v628_v53 = vrot.slane %v4792_v9, 2  ;;  %v629_v18 = vrot.slane %v4794_v11, 2  ;;  %v631_v4 = vrot.slane %v4796_v15, 2  ;;  %v633_v17 = vrot.slane %v4805_v23, 2 }
  0x6b   : > { %3854 = vrot.lane.b32.xlu0 %v4947_v21, %s4480_s8  ;;  %v634_v50 = vrot.slane %v4812_v35, 2  ;;  %v636_v25 = vrot.slane %v4814_v36, 2  ;;  %v4980_v22 = vpack.i.bf16 %v612_v43, %v610_v16  ;;  %v4984_v60 = vpack.i.bf16 %v617_v42, %v615_v30  ;;  %v6477_v42 = vld [vmem:[#allocation18_spill] sm:$0xff] }
  0x6c   : > { %v620_v58 = vsel %vm577_vm5, %v618_v41, %v619_v39  ;;  %v622_v24 = vsel %vm577_vm5, %v619_v39, %v621_v34  ;;  %v625_v63 = vsel %vm577_vm5, %v623_v14, %v624_v10  ;;  %v627_v15 = vsel %vm577_vm5, %v624_v10, %v626_v27  ;;  %v6475_v41 = vld [vmem:[#allocation15_spill] sm:$0xff]  ;;  %v6476_v14 = vld [vmem:[#allocation17_spill] sm:$0xff] }
  0x6d   : > { %3859 = vrot.lane.b32.xlu1 %v4954_v29, %s4480_s8  ;;  %v630_v57 = vsel %vm577_vm5, %v628_v53, %v629_v18  ;;  %v638_v37 = vrot.slane %v4822_v46, 2  ;;  %v639_v36 = vrot.slane %v4824_v47, 2  ;;  %v632_v16 = vsel %vm577_vm5, %v629_v18, %v631_v4 }
  0x6e   : > { %v635_v43 = vsel %vm577_vm5, %v633_v17, %v634_v50  ;;  %v637_v30 = vsel %vm577_vm5, %v634_v50, %v636_v25  ;;  %v641_v39 = vrot.slane %v6475_v41, 2  ;;  %v4999_v34 = vpack.i.bf16 %v622_v24, %v620_v58 }
  0x6f   : > { %3864 = vrot.lane.b32.xlu0 %v4956_v32, %s4480_s8  ;;  %v643_v10 = vrot.slane %v6476_v14, 2  ;;  %v644_v27 = vrot.slane %v6477_v42, 2  ;;  %v5005_v53 = vpack.i.bf16 %v627_v15, %v625_v63  ;;  %v646_v2 = vrot.slane %v6478_v8, 2  ;;  %v6479_v63 = vld [vmem:[#allocation21_spill] sm:$0xff] }
  0x70   : > { %v5008_v18 = vpack.i.bf16 %v632_v16, %v630_v57  ;;  %v5010_v4 = vpack.i.bf16 %v637_v30, %v635_v43  ;;  %v640_v17 = vsel %vm577_vm5, %v638_v37, %v639_v36  ;;  %v642_v50 = vsel %vm577_vm5, %v639_v36, %v641_v39 }
  0x71   : > { %3869 = vrot.lane.b32.xlu1 %v4959_v7, %s4480_s8  ;;  %v648_v25 = vrot.slane %v4847_v28, 2  ;;  %v645_v58 = vsel %vm577_vm5, %v643_v10, %v644_v27  ;;  %v649_v24 = vrot.slane %v4855_v0, 2  ;;  %v651_v15 = vrot.slane %v6479_v63, 2 }
  0x72   : > { %v647_v8 = vsel %vm577_vm5, %v644_v27, %v646_v2  ;;  %v653_v57 = vrot.slane %v4859_v44, 2  ;;  %v654_v37 = vrot.slane %v4865_v48, 2  ;;  %v656_v36 = vrot.slane %v4867_v49, 2 }
  0x73   : > { %3874 = vrot.lane.b32.xlu0 %v4980_v22, %s4480_s8  ;;  %v5030_v16 = vpack.i.bf16 %v642_v50, %v640_v17  ;;  %v5032_v43 = vpack.i.bf16 %v647_v8, %v645_v58  ;;  %v650_v30 = vsel %vm577_vm5, %v648_v25, %v649_v24  ;;  %v652_v2 = vsel %vm577_vm5, %v649_v24, %v651_v15  ;;  %v6483_v24 = vld [vmem:[#allocation11_spill] sm:$0xff]  ;;  %v6485_v8 = vld [vmem:[#allocation13_spill] sm:$0xff] }
  0x74   : > { %v655_v41 = vsel %vm577_vm5, %v653_v57, %v654_v37  ;;  %v657_v39 = vsel %vm577_vm5, %v654_v37, %v656_v36  ;;  %v5042_v49 = vpack.i.bf16 %v652_v2, %v650_v30  ;;  %v3923_v27 = vpack.i.bf16 %v4695_v62, %v4693_v61 }
  0x75   : > { %3879 = vrot.lane.b32.xlu1 %v4984_v60, %s4480_s8  ;;  %v5046_v10 = vpack.i.bf16 %v657_v39, %v655_v41  ;;  %v3928_v17 = vpack.i.bf16 %v4682_v56, %v4680_v55  ;;  %v3933_v50 = vpack.i.bf16 %v4705_v6, %v4703_v5  ;;  %v3938_v25 = vpack.i.bf16 %v4715_v13, %v4713_v12  ;;  %v4403_v56 = vld [vmem:[%s6415_s1] sm:$0xff]   ;;  %v6481_v6 = vld [vmem:[#allocation8_spill] sm:$0xff]  ;;  %v4404_v12 = vld [vmem:[%s6415_s1 + $0x8] sm:$0xff]  }
  0x76   : > { %v3943_v58 = vpack.i.bf16 %v4726_v20, %v4724_v19  ;;  %v3948_v55 = vpack.i.bf16 %v4743_v31, %v4734_v26  ;;  %v6480_v5 = vld [vmem:[#allocation9_spill] sm:$0xff]  ;;  %3660 = vmatprep.subr.bf16.mxu0 %v4403_v56  ;;  %3698 = vmatprep.subr.bf16.mxu1 %v4403_v56  ;;  %v4405_v13 = vld [vmem:[%s6415_s1 + $0x10] ss:$0 sps:$4 sm:$0x33]   ;;  %v6482_v20 = vld [vmem:[#allocation10_spill] sm:$0xff]  ;;  %v4078_v37 = vpack.i.bf16 %v4754_v38, %v4747_v33  ;;  %vm1649_vm12 = vcmask 228352  }
  0x77   : > { %3884 = vrot.lane.b32.xlu0 %v4999_v34, %s4480_s8  ;;  %3661 = vmatpush3.bf16.msra.mxu0 %v4403_v56  ;;  %v1802_v19 = vsel %vm1800_vm6, %v4405_v13, 0  ;;  %v3640_v26 = vld [vmem:[%s4570_s6 + $0x78] sm:$0xff]   ;;  %v6486_v41 = vld [vmem:[#allocation14_spill] sm:$0xff]  ;;  %v4108_v39 = vpack.i.bf16 %v4767_v45, %v4758_v40  ;;  %vm1682_vm13 = vcmask 261120   ;;  %vm1751_vm14 = vcmask 293888  }
  0x78   : > { %3701 = vmatpush3.bf16.msra.mxu1 %v4403_v56  ;;  %3662 = vmatprep.subr.bf16.mxu0 %v4404_v12  ;;  %v3624_v31 = vunpack.c.l.bf16 %v3640_v26  ;;  %vm2036_vm15 = vcmask 57344  }
  0x79   : > { %3889 = vrot.lane.b32.xlu1 %v5005_v53, %s4480_s8  ;;  %3699 = vmatprep.subr.bf16.mxu1 %v4404_v12 }
  0x7a   : > { %392 = vst.msk [vmem:[#allocation2 + $0x181] sm:$0xff] %vm361_vm4, %v3624_v31 }
  0x7b   : > { %3894 = vrot.lane.b32.xlu0 %v5008_v18, %s4480_s8  ;;  %3663 = vmatpush3.bf16.msra.mxu0 %v4404_v12 }
  0x7c   : > { %3702 = vmatpush3.bf16.msra.mxu1 %v4404_v12  ;;  %3704 = vmatprep.subr.msk.bf16.mxu0 %vm1800_vm6, %v4405_v13  ;;  %v4168_v12 = vpack.i.bf16 %v4794_v11, %v4792_v9 }
  0x7d   : > { %3899 = vrot.lane.b32.xlu1 %v5010_v4, %s4480_s8  ;;  %3705 = vmatprep.subr.msk.bf16.mxu1 %vm1800_vm6, %v4405_v13 }
  0x7f   : > { %3904 = vrot.lane.b32.xlu0 %v5030_v16, %s4480_s8  ;;  %3665 = vmatpush3.bf16.msra.mxu0 %v1802_v19 }
  0x80   : > { %3703 = vmatpush3.bf16.msra.mxu1 %v1802_v19 }
  0x81   : > { %3909 = vrot.lane.b32.xlu1 %v5032_v43, %s4480_s8 }
  0x83   : > { %3914 = vrot.lane.b32.xlu0 %v5042_v49, %s4480_s8 }
  0x85   : > { %3919 = vrot.lane.b32.xlu1 %v5046_v10, %s4480_s8 }
  0x87   : > { %3924 = vrot.lane.b32.xlu0 %v3923_v27, %s4481_s9 }
  0x89   : > { %3929 = vrot.lane.b32.xlu1 %v3928_v17, %s4481_s9 }
  0x8b   : > { %3934 = vrot.lane.b32.xlu0 %v3933_v50, %s4481_s9 }
  0x8d   : > { %3939 = vrot.lane.b32.xlu1 %v3938_v25, %s4481_s9 }
  0x8f   : > { %3944 = vrot.lane.b32.xlu0 %v3943_v58, %s4481_s9 }
  0x91   : > { %3949 = vrot.lane.b32.xlu1 %v3948_v55, %s4481_s9 }
  0x93   : > { %3954 = vrot.lane.b32.xlu0 %v6480_v5, %s4482_s12 }
  0x95   : > { %3959 = vrot.lane.b32.xlu1 %v6481_v6, %s4482_s12 }
  0x97   : > { %3964 = vrot.lane.b32.xlu0 %v4931_v1, %s4483_s22  ;;  %v3625_v1 = vunpack.c.h.bf16 %v3640_v26  ;;  %v4198_v26 = vpack.i.bf16 %v4812_v35, %v4805_v23 }
  0x99   : > { %3969 = vrot.lane.b32.xlu1 %v4947_v21, %s4483_s22  ;;  %393 = vst.msk [vmem:[#allocation2 + $0x189] sm:$0xff] %vm361_vm4, %v3625_v1 }
  0x9b   : > { %3974 = vrot.lane.b32.xlu0 %v3928_v17, %s4484_s25 }
  0x9d   : > { %3979 = vrot.lane.b32.xlu1 %v3933_v50, %s4484_s25 }
  0x9f   : > { %3984 = vrot.lane.b32.xlu0 %v6481_v6, %s4485_s26  ;;  %v6492_v6 = vld [vmem:[#allocation20_spill] sm:$0xff] }
  0xa1   : > { %3989 = vrot.lane.b32.xlu1 %v6482_v20, %s4485_s26 }
  0xa3   : > { %3994 = vrot.lane.b32.xlu0 %v4947_v21, %s4486_s27  ;;  %v6484_v21 = vld [vmem:[#allocation12_spill] sm:$0xff] }
  0xa5   : > { %3999 = vrot.lane.b32.xlu1 %v4954_v29, %s4486_s27 }
  0xa7   : > { %4004 = vrot.lane.b32.xlu0 %v6482_v20, %s4482_s12 }
  0xa9   : > { %4009 = vrot.lane.b32.xlu1 %v6483_v24, %s4482_s12 }
  0xab   : > { %4014 = vrot.lane.b32.xlu0 %v4954_v29, %s4483_s22 }
  0xad   : > { %4019 = vrot.lane.b32.xlu1 %v4956_v32, %s4483_s22 }
  0xaf   : > { %4024 = vrot.lane.b32.xlu0 %v3938_v25, %s4484_s25  ;;  %v5116_v63 = vpop.permute.xlu0 %3764  ;;  %v6490_v25 = vld [vmem:[#allocation16_spill] sm:$0xff] }
  0xb1   : > { %4029 = vrot.lane.b32.xlu1 %v3943_v58, %s4484_s25  ;;  %v4138_v58 = vpack.i.bf16 %v4783_v59, %v4775_v51 }
  0xb3   : > { %4034 = vrot.lane.b32.xlu0 %v6483_v24, %s4485_s26 }
  0xb5   : > { %4039 = vrot.lane.b32.xlu1 %v6484_v21, %s4485_s26 }
  0xb7   : > { %4044 = vrot.lane.b32.xlu0 %v4956_v32, %s4486_s27 }
  0xb9   : > { %4049 = vrot.lane.b32.xlu1 %v4959_v7, %s4486_s27 }
  0xbb   : > { %4054 = vrot.lane.b32.xlu0 %v6484_v21, %s4482_s12  ;;  %v5122_v29 = vpop.permute.xlu1 %3774 }
  0xbd   : > { %v5124_v15 = vpop.permute.xlu0 %3769  ;;  %4059 = vrot.lane.b32.xlu1 %v6485_v8, %s4482_s12 }
  0xbf   : > { %4064 = vrot.lane.b32.xlu0 %v4959_v7, %s4483_s22  ;;  %v5130_v57 = vpop.permute.xlu1 %3779 }
  0xc1   : > { %v5132_v32 = vpop.permute.xlu0 %3784  ;;  %4069 = vrot.lane.b32.xlu1 %v4980_v22, %s4483_s22 }
  0xc3   : > { %4074 = vrot.lane.b32.xlu0 %v3948_v55, %s4484_s25  ;;  %v5139_v36 = vpop.permute.xlu1 %3789 }
  0xc5   : > { %v5141_v30 = vpop.permute.xlu0 %3794  ;;  %4079 = vrot.lane.b32.xlu1 %v4078_v37, %s4484_s25 }
  0xc7   : > { %4084 = vrot.lane.b32.xlu0 %v6485_v8, %s4485_s26  ;;  %v5146_v7 = vpop.permute.xlu1 %3799 }
  0xc9   : > { %v5148_v2 = vpop.permute.xlu0 %3804  ;;  %4089 = vrot.lane.b32.xlu1 %v6486_v41, %s4485_s26 }
  0xcb   : > { %4094 = vrot.lane.b32.xlu0 %v4980_v22, %s4486_s27  ;;  %v5154_v33 = vpop.permute.xlu1 %3809 }
  0xcd   : > { %v5156_v38 = vpop.permute.xlu0 %3814  ;;  %4099 = vrot.lane.b32.xlu1 %v4984_v60, %s4486_s27 }
  0xcf   : > { %4104 = vrot.lane.b32.xlu0 %v4078_v37, %s4481_s9  ;;  %v5163_v27 = vpop.permute.xlu1 %3819 }
  0xd1   : > { %v5165_v17 = vpop.permute.xlu0 %3824  ;;  %4109 = vrot.lane.b32.xlu1 %v4108_v39, %s4481_s9 }
  0xd2   : > { %6487 = vst [vmem:[#allocation15_spill] sm:$0xff] %v5165_v17 }
  0xd3   : > { %4114 = vrot.lane.b32.xlu0 %v6486_v41, %s4482_s12  ;;  %v5170_v22 = vpop.permute.xlu1 %3829  ;;  %v5272_v41 = vld [vmem:[#allocation2 + $0x180] sm:$0xff] }
  0xd4   : > { %6488 = vst [vmem:[#allocation17_spill] sm:$0xff] %v5170_v22 }
  0xd5   : > { %v5172_v50 = vpop.permute.xlu0 %3834  ;;  %4119 = vrot.lane.b32.xlu1 %v6490_v25, %s4482_s12 }
  0xd6   : > { %6489 = vst [vmem:[#allocation18_spill] sm:$0xff] %v5172_v50 }
  0xd7   : > { %4124 = vrot.lane.b32.xlu0 %v4984_v60, %s4483_s22  ;;  %v5178_v40 = vpop.permute.xlu1 %3839 }
  0xd8   : > { %6491 = vst [vmem:[#allocation19_spill] sm:$0xff] %v5178_v40 }
  0xd9   : > { %v5180_v45 = vpop.permute.xlu0 %3844  ;;  %4129 = vrot.lane.b32.xlu1 %v4999_v34, %s4483_s22 }
  0xdb   : > { %4134 = vrot.lane.b32.xlu0 %v4108_v39, %s4484_s25  ;;  %v5187_v55 = vpop.permute.xlu1 %3849  ;;  %v3766_v39 = vunpack.i.l.bf16 %v5116_v63 }
  0xdc   : > { %v3852_v50 = vunpack.i.h.bf16 %v5187_v55 }
  0xdd   : > { %v5189_v56 = vpop.permute.xlu0 %3854  ;;  %4139 = vrot.lane.b32.xlu1 %v4138_v58, %s4484_s25 }
  0xdf   : > { %4144 = vrot.lane.b32.xlu0 %v6490_v25, %s4485_s26  ;;  %v5194_v60 = vpop.permute.xlu1 %3859  ;;  %v5285_v25 = vpack.i.bf16 %v6477_v42, %v6476_v14  ;;  %v3847_v42 = vunpack.i.h.bf16 %v5180_v45 }
  0xe1   : > { %v5196_v5 = vpop.permute.xlu0 %3864  ;;  %4149 = vrot.lane.b32.xlu1 %v6492_v6, %s4485_s26 }
  0xe3   : > { %4154 = vrot.lane.b32.xlu0 %v4999_v34, %s4486_s27  ;;  %v5202_v51 = vpop.permute.xlu1 %3869 }
  0xe5   : > { %v5204_v59 = vpop.permute.xlu0 %3874  ;;  %4159 = vrot.lane.b32.xlu1 %v5005_v53, %s4486_s27 }
  0xe7   : > { %4164 = vrot.lane.b32.xlu0 %v4138_v58, %s4481_s9  ;;  %v5211_v13 = vpop.permute.xlu1 %3879  ;;  %v5289_v58 = vpack.i.bf16 %v4855_v0, %v4847_v28  ;;  %v5303_v0 = vpack.i.bf16 %v4865_v48, %v4859_v44  ;;  %v4406_v28 = vld [vmem:[#allocation2] sm:$0xff]  ;;  %v4407_v44 = vld [vmem:[#allocation2 + $0x8] sm:$0xff] }
  0xe8   : > { %v1452_v14 = vsel %vm361_vm4, %v4406_v28, %v3766_v39 }
  0xe9   : > { %v5213_v19 = vpop.permute.xlu0 %3884  ;;  %4169 = vrot.lane.b32.xlu1 %v4168_v12, %s4481_s9 }
  0xeb   : > { %4174 = vrot.lane.b32.xlu0 %v6492_v6, %s4482_s12  ;;  %v5218_v34 = vpop.permute.xlu1 %3889  ;;  %v3767_v6 = vunpack.i.h.bf16 %v5116_v63  ;;  %v3846_v63 = vunpack.i.l.bf16 %v5180_v45 }
  0xed   : > { %v5220_v20 = vpop.permute.xlu0 %3894  ;;  %4179 = vrot.lane.b32.xlu1 %v4871_v52, %s4482_s12  ;;  %v1453_v48 = vsel %vm361_vm4, %v4407_v44, %v3767_v6 }
  0xef   : > { %4184 = vrot.lane.b32.xlu0 %v5005_v53, %s4483_s22  ;;  %v5226_v9 = vpop.permute.xlu1 %3899 }
  0xf0   : > { %6493 = vst [vmem:[#allocation21_spill] sm:$0xff] %v5226_v9 }
  0xf1   : > { %v5228_v11 = vpop.permute.xlu0 %3904  ;;  %4189 = vrot.lane.b32.xlu1 %v5008_v18, %s4483_s22 }
  0xf2   : > { %6494 = vst [vmem:[#allocation9_spill] sm:$0xff] %v5228_v11 }
  0xf3   : > { %4194 = vrot.lane.b32.xlu0 %v4168_v12, %s4484_s25  ;;  %v5235_v31 = vpop.permute.xlu1 %3909  ;;  %v661_v12 = vrot.slane %v5272_v41, 1 }
  0xf4   : > { %6495 = vst [vmem:[#allocation8_spill] sm:$0xff] %v5235_v31 }
  0xf5   : > { %v5237_v1 = vpop.permute.xlu0 %3914  ;;  %4199 = vrot.lane.b32.xlu1 %v4198_v26, %s4484_s25 }
  0xf6   : > { %6496 = vst [vmem:[#allocation10_spill] sm:$0xff] %v5237_v1  ;;  %v3771_v1 = vunpack.i.l.bf16 %v5124_v15 }
  0xf7   : > { %4204 = vrot.lane.b32.xlu0 %v4871_v52, %s4485_s26  ;;  %v5242_v53 = vpop.permute.xlu1 %3919  ;;  %v4228_v52 = vpack.i.bf16 %v4824_v47, %v4822_v46  ;;  %v5274_v46 = vld [vmem:[#allocation2 + $0x188] sm:$0xff]  ;;  %v5276_v47 = vld [vmem:[#allocation2 + $0x190] sm:$0x3] }
  0xf8   : > { %6497 = vst [vmem:[#allocation11_spill] sm:$0xff] %v5242_v53  ;;  %v664_v53 = vrot.slane %v5276_v47, 1 }
  0xf9   : > { %v5244_v24 = vpop.permute.xlu0 %3924  ;;  %4209 = vrot.lane.b32.xlu1 %v4882_v54, %s4485_s26 }
  0xfa   : > { %v3927_v31 = vunpack.i.h.bf16 %v5244_v24  ;;  %v3926_v11 = vunpack.i.l.bf16 %v5244_v24  ;;  %v1454_v24 = vsel %vm361_vm4, %v4693_v61, %v3771_v1 }
  0xfb   : > { %4214 = vrot.lane.b32.xlu0 %v5008_v18, %s4486_s27  ;;  %v5250_v23 = vpop.permute.xlu1 %3929 }
  0xfc   : > { %v3931_v17 = vunpack.i.l.bf16 %v5250_v23 }
  0xfd   : > { %v5252_v35 = vpop.permute.xlu0 %3934  ;;  %4219 = vrot.lane.b32.xlu1 %v5010_v4, %s4486_s27 }
  0xff   : > { %4224 = vrot.lane.b32.xlu0 %v4198_v26, %s4481_s9  ;;  %v5259_v21 = vpop.permute.xlu1 %3939  ;;  %v662_v26 = vrot.slane %v5274_v46, 1 }
 0x101   : > { %v5261_v8 = vpop.permute.xlu0 %3944  ;;  %4229 = vrot.lane.b32.xlu1 %v4228_v52, %s4481_s9  ;;  %v5315_v39 = vsel %vm496_vm3, %v661_v12, %v662_v26  ;;  %v5318_v45 = vsel %vm496_vm3, %v662_v26, %v664_v53  ;;  %v1486_v53 = vsel %vm1484_vm7, %v1453_v48, %v3847_v42  ;;  %v1485_v12 = vsel %vm1484_vm7, %v1452_v14, %v3846_v63 }
 0x102   : > { %v1518_v1 = vsel %vm1517_vm8, %v1485_v12, %v3926_v11 }
 0x103   : > { %4234 = vrot.lane.b32.xlu0 %v4882_v54, %s4482_s12  ;;  %v5266_v18 = vpop.permute.xlu1 %3949 }
 0x105   : > { %v5268_v37 = vpop.permute.xlu0 %3954  ;;  %4239 = vrot.lane.b32.xlu1 %v4892_v3, %s4482_s12 }
 0x106   : > { %v3957_v26 = vunpack.i.h.bf16 %v5268_v37 }
 0x107   : > { %4244 = vrot.lane.b32.xlu0 %v5010_v4, %s4483_s22  ;;  %v5281_v54 = vpop.permute.xlu1 %3959  ;;  %v3772_v4 = vunpack.i.h.bf16 %v5124_v15  ;;  %v3851_v15 = vunpack.i.l.bf16 %v5187_v55 }
 0x108   : > { %v3962_v42 = vunpack.i.h.bf16 %v5281_v54  ;;  %v3961_v14 = vunpack.i.l.bf16 %v5281_v54 }
 0x109   : > { %v5297_v40 = vpop.permute.xlu0 %3964  ;;  %4249 = vrot.lane.b32.xlu1 %v5030_v16, %s4483_s22  ;;  %v1455_v28 = vsel %vm361_vm4, %v4695_v62, %v3772_v4  ;;  %v3956_v62 = vunpack.i.l.bf16 %v5268_v37  ;;  %v1487_v4 = vsel %vm1484_vm7, %v1454_v24, %v3851_v15 }
 0x10a   : > { %v1488_v61 = vsel %vm1484_vm7, %v1455_v28, %v3852_v50  ;;  %v3967_v63 = vunpack.i.h.bf16 %v5297_v40  ;;  %v3966_v37 = vunpack.i.l.bf16 %v5297_v40  ;;  %v1520_v15 = vsel %vm1517_vm8, %v1487_v4, %v3931_v17  ;;  %v6498_v28 = vld [vmem:[#allocation22_spill] sm:$0xff] }
 0x10b   : > { %4254 = vrot.lane.b32.xlu0 %v4228_v52, %s4484_s25  ;;  %v3970_v22 = vpop.permute.xlu1 %3969  ;;  %v3932_v52 = vunpack.i.h.bf16 %v5250_v23  ;;  %v1519_v23 = vsel %vm1517_vm8, %v1486_v53, %v3927_v31 }
 0x10c   : > { %v3972_v11 = vunpack.i.h.bf16 %v3970_v22  ;;  %v3971_v48 = vunpack.i.l.bf16 %v3970_v22  ;;  %v1552_v24 = vsel %vm1550_vm9, %v1519_v23, %v3957_v26  ;;  %v1553_v22 = vsel %vm1550_vm9, %v1520_v15, %v3961_v14 }
 0x10d   : > { %v3975_v6 = vpop.permute.xlu0 %3974  ;;  %4259 = vrot.lane.b32.xlu1 %v5285_v25, %s4484_s25  ;;  %v1521_v50 = vsel %vm1517_vm8, %v1488_v61, %v3932_v52 }
 0x10e   : > { %v3977_v54 = vunpack.i.h.bf16 %v3975_v6  ;;  %v3976_v53 = vunpack.i.l.bf16 %v3975_v6  ;;  %v1554_v52 = vsel %vm1550_vm9, %v1521_v50, %v3962_v42  ;;  %v1586_v26 = vsel %vm1583_vm10, %v1553_v22, %v3971_v48 }
 0x10f   : > { %4264 = vrot.lane.b32.xlu0 %v4892_v3, %s4485_s26  ;;  %v3980_v44 = vpop.permute.xlu1 %3979  ;;  %v1551_v3 = vsel %vm1550_vm9, %v1518_v1, %v3956_v62  ;;  %v1585_v62 = vsel %vm1583_vm10, %v1552_v24, %v3967_v63  ;;  %v1587_v6 = vsel %vm1583_vm10, %v1554_v52, %v3972_v11  ;;  %v669_v22 = vrot.slane %v5276_v47, 2  ;;  %v6499_v47 = vld [vmem:[#allocation23_spill] sm:$0xff] }
 0x110   : > { %v3982_v12 = vunpack.i.h.bf16 %v3980_v44  ;;  %v3981_v55 = vunpack.i.l.bf16 %v3980_v44  ;;  %v1584_v4 = vsel %vm1583_vm10, %v1551_v3, %v3966_v37  ;;  %v1618_v44 = vsel %vm1616_vm11, %v1585_v62, %v3977_v54 }
 0x111   : > { %v3985_v31 = vpop.permute.xlu0 %3984  ;;  %4269 = vrot.lane.b32.xlu1 %v6498_v28, %s4485_s26  ;;  %v3776_v62 = vunpack.i.l.bf16 %v5122_v29 }
 0x112   : > { %v3987_v40 = vunpack.i.h.bf16 %v3985_v31  ;;  %v3986_v9 = vunpack.i.l.bf16 %v3985_v31  ;;  %v1619_v37 = vsel %vm1616_vm11, %v1586_v26, %v3981_v55  ;;  %v1620_v63 = vsel %vm1616_vm11, %v1587_v6, %v3982_v12 }
 0x113   : > { %4274 = vrot.lane.b32.xlu0 %v5030_v16, %s4486_s27  ;;  %v3990_v17 = vpop.permute.xlu1 %3989  ;;  %v1617_v16 = vsel %vm1616_vm11, %v1584_v4, %v3976_v53  ;;  %v3777_v12 = vunpack.i.h.bf16 %v5122_v29  ;;  %v5388_v26 = vpack.i.bf16 %v5274_v46, %v5272_v41  ;;  %v3782_v6 = vunpack.i.h.bf16 %v5130_v57 }
 0x114   : > { %v3992_v61 = vunpack.i.h.bf16 %v3990_v17  ;;  %v3991_v1 = vunpack.i.l.bf16 %v3990_v17  ;;  %v1650_v50 = vsel %vm1649_vm12, %v1617_v16, %v3986_v9  ;;  %v1651_v11 = vsel %vm1649_vm12, %v1618_v44, %v3987_v40  ;;  %v5408_v16 = vld [vmem:[#allocation2 + $0x1a0] sm:$0xff]  ;;  %v4408_v44 = vld [vmem:[#allocation2 + $0x38] sm:$0xff] }
 0x115   : > { %v3995_v23 = vpop.permute.xlu0 %3994  ;;  %4279 = vrot.lane.b32.xlu1 %v5032_v43, %s4486_s27  ;;  %v667_v9 = vrot.slane %v5274_v46, 2  ;;  %v6500_v29 = vrot.slane %v5272_v41, 2  ;;  %v3862_v41 = vunpack.i.h.bf16 %v5194_v60 }
 0x116   : > { %v3997_v14 = vunpack.i.h.bf16 %v3995_v23  ;;  %v3996_v42 = vunpack.i.l.bf16 %v3995_v23  ;;  %v1652_v54 = vsel %vm1649_vm12, %v1619_v37, %v3991_v1  ;;  %v1653_v55 = vsel %vm1649_vm12, %v1620_v63, %v3992_v61  ;;  %v5406_v23 = vld [vmem:[#allocation2 + $0x198] sm:$0xff] }
 0x117   : > { %4284 = vrot.lane.b32.xlu0 %v5285_v25, %s4481_s9  ;;  %v4000_v15 = vpop.permute.xlu1 %3999  ;;  %v3781_v61 = vunpack.i.l.bf16 %v5130_v57  ;;  %v5404_v46 = vsel %vm577_vm5, %v6500_v29, %v667_v9  ;;  %v5410_v57 = vld [vmem:[#allocation2 + $0x1a8] sm:$0x3]  ;;  %v3856_v37 = vunpack.i.l.bf16 %v5189_v56  ;;  %v3937_v63 = vunpack.i.h.bf16 %v5252_v35 }
 0x118   : > { %v4002_v48 = vunpack.i.h.bf16 %v4000_v15  ;;  %v4001_v31 = vunpack.i.l.bf16 %v4000_v15  ;;  %v1683_v3 = vsel %vm1682_vm13, %v1650_v50, %v3996_v42  ;;  %v1684_v24 = vsel %vm1682_vm13, %v1651_v11, %v3997_v14  ;;  %v4409_v11 = vld [vmem:[#allocation2 + $0x30] sm:$0xff] }
 0x119   : > { %v5371_v53 = vpop.permute.xlu0 %4004  ;;  %4289 = vrot.lane.b32.xlu1 %v5289_v58, %s4481_s9  ;;  %v1715_v25 = vpack.c.bf16 %v1684_v24, %v1683_v3  ;;  %v1457_v14 = vsel %vm361_vm4, %v4408_v44, %v3777_v12  ;;  %v3857_v42 = vunpack.i.h.bf16 %v5189_v56  ;;  %v3936_v15 = vunpack.i.l.bf16 %v5252_v35  ;;  %v4410_v24 = vld [vmem:[#allocation2 + $0x50] sm:$0xff] }
 0x11a   : > { %v1685_v40 = vsel %vm1682_vm13, %v1652_v54, %v4001_v31  ;;  %v1686_v17 = vsel %vm1682_vm13, %v1653_v55, %v4002_v48  ;;  %v1456_v48 = vsel %vm361_vm4, %v4409_v11, %v3776_v62  ;;  %v675_v56 = vrot.slane %v5408_v16, 1  ;;  %v4411_v54 = vld [vmem:[#allocation2 + $0x48] sm:$0xff] }
 0x11b   : > { %v1716_v52 = vpack.c.bf16 %v1686_v17, %v1685_v40  ;;  %4294 = vrot.lane.b32.xlu0 %v6498_v28, %s4482_s12  ;;  %3666 = vmatprep.mubr.msk.bf16.mxu0 %vm1751_vm14, %v1715_v25  ;;  %v5383_v4 = vpop.permute.xlu1 %4009  ;;  %v5399_v28 = vpack.i.bf16 %v5318_v45, %v5315_v39  ;;  %v5416_v39 = vsel %vm577_vm5, %v667_v9, %v669_v22  ;;  %v3861_v45 = vunpack.i.l.bf16 %v5194_v60 }
 0x11c   : > { %v674_v31 = vrot.slane %v5406_v23, 1  ;;  %v677_v3 = vrot.slane %v5410_v57, 1  ;;  %v1459_v60 = vsel %vm361_vm4, %v4410_v24, %v3782_v6  ;;  %v1458_v55 = vsel %vm361_vm4, %v4411_v54, %v3781_v61 }
 0x11d   : > { %v5392_v1 = vpop.permute.xlu0 %4014  ;;  %4299 = vrot.lane.b32.xlu1 %v6499_v47, %s4482_s12  ;;  %3667 = vmatmul.mubr.msk.bf16.vlgmr.msra.gmra.mrb[0].mxu0 %vm1751_vm14, %v1716_v52  ;;  %v3942_v35 = vunpack.i.h.bf16 %v5259_v21  ;;  %v1490_v9 = vsel %vm1484_vm7, %v1457_v14, %v3857_v42  ;;  %v1489_v12 = vsel %vm1484_vm7, %v1456_v48, %v3856_v37  ;;  %v4007_v40 = vunpack.i.h.bf16 %v5371_v53 }
 0x11e   : > { %v4006_v17 = vunpack.i.l.bf16 %v5371_v53  ;;  %v1492_v22 = vsel %vm1484_vm7, %v1459_v60, %v3862_v41  ;;  %v1491_v52 = vsel %vm1484_vm7, %v1458_v55, %v3861_v45  ;;  %v1522_v62 = vsel %vm1517_vm8, %v1489_v12, %v3936_v15 }
 0x11f   : > { %4304 = vrot.lane.b32.xlu0 %v5032_v43, %s4483_s22  ;;  %v4020_v50 = vpop.permute.xlu1 %4019  ;;  %v3941_v43 = vunpack.i.l.bf16 %v5259_v21  ;;  %v1523_v21 = vsel %vm1517_vm8, %v1490_v9, %v3937_v63  ;;  %v4012_v61 = vunpack.i.h.bf16 %v5383_v4  ;;  %v4011_v29 = vunpack.i.l.bf16 %v5383_v4 }
 0x120   : > { %v4017_v44 = vunpack.i.h.bf16 %v5392_v1  ;;  %v4016_v53 = vunpack.i.l.bf16 %v5392_v1  ;;  %v1525_v42 = vsel %vm1517_vm8, %v1492_v22, %v3942_v35  ;;  %v4022_v37 = vunpack.i.h.bf16 %v4020_v50 }
 0x121   : > { %v4025_v25 = vpop.permute.xlu0 %4024  ;;  %4309 = vrot.lane.b32.xlu1 %v5042_v49, %s4483_s22  ;;  %v1524_v14 = vsel %vm1517_vm8, %v1491_v52, %v3941_v43  ;;  %v4021_v41 = vunpack.i.l.bf16 %v4020_v50  ;;  %v1556_v63 = vsel %vm1550_vm9, %v1523_v21, %v4007_v40  ;;  %v1558_v54 = vsel %vm1550_vm9, %v1525_v42, %v4012_v61 }
 0x122   : > { %v4027_v15 = vunpack.i.h.bf16 %v4025_v25  ;;  %v4026_v4 = vunpack.i.l.bf16 %v4025_v25  ;;  %v1557_v50 = vsel %vm1550_vm9, %v1524_v14, %v4011_v29  ;;  %v1589_v35 = vsel %vm1583_vm10, %v1556_v63, %v4017_v44 }
 0x123   : > { %4314 = vrot.lane.b32.xlu0 %v5289_v58, %s4484_s25  ;;  %v4030_v6 = vpop.permute.xlu1 %4029  ;;  %v1555_v58 = vsel %vm1550_vm9, %v1522_v62, %v4006_v17  ;;  %v1590_v43 = vsel %vm1583_vm10, %v1557_v50, %v4021_v41  ;;  %v1591_v25 = vsel %vm1583_vm10, %v1558_v54, %v4022_v37  ;;  %v6501_v17 = vld [vmem:[#allocation24_spill] sm:$0xff]  ;;  %v682_v50 = vrot.slane %v5410_v57, 2 }
 0x124   : > { %v4032_v11 = vunpack.i.h.bf16 %v4030_v6  ;;  %v4031_v48 = vunpack.i.l.bf16 %v4030_v6  ;;  %v1588_v55 = vsel %vm1583_vm10, %v1555_v58, %v4016_v53  ;;  %v1622_v22 = vsel %vm1616_vm11, %v1589_v35, %v4027_v15 }
 0x125   : > { %v4035_v45 = vpop.permute.xlu0 %4034  ;;  %4319 = vrot.lane.b32.xlu1 %v5303_v0, %s4484_s25  ;;  %v3792_v54 = vunpack.i.h.bf16 %v5139_v36  ;;  %v3872_v35 = vunpack.i.h.bf16 %v5202_v51 }
 0x126   : > { %v4037_v24 = vunpack.i.h.bf16 %v4035_v45  ;;  %v4036_v1 = vunpack.i.l.bf16 %v4035_v45  ;;  %v1623_v21 = vsel %vm1616_vm11, %v1590_v43, %v4031_v48  ;;  %v1624_v6 = vsel %vm1616_vm11, %v1591_v25, %v4032_v11 }
 0x127   : > { %4324 = vrot.lane.b32.xlu0 %v6499_v47, %s4485_s26  ;;  %v4040_v60 = vpop.permute.xlu1 %4039  ;;  %v1621_v47 = vsel %vm1616_vm11, %v1588_v55, %v4026_v4  ;;  %v5484_v4 = vpack.i.bf16 %v5416_v39, %v5404_v46  ;;  %v5504_v46 = vsel %vm496_vm3, %v675_v56, %v677_v3  ;;  %v3786_v39 = vunpack.i.l.bf16 %v5132_v32 }
 0x128   : > { %v4042_v9 = vunpack.i.h.bf16 %v4040_v60  ;;  %v4041_v12 = vunpack.i.l.bf16 %v4040_v60  ;;  %v1654_v61 = vsel %vm1649_vm12, %v1621_v47, %v4036_v1  ;;  %v1655_v29 = vsel %vm1649_vm12, %v1622_v22, %v4037_v24 }
 0x129   : > { %v4045_v40 = vpop.permute.xlu0 %4044  ;;  %4329 = vrot.lane.b32.xlu1 %v6501_v17, %s4485_s26  ;;  %v680_v24 = vrot.slane %v5408_v16, 2  ;;  %v5497_v1 = vsel %vm496_vm3, %v674_v31, %v675_v56  ;;  %v679_v60 = vrot.slane %v5406_v23, 2  ;;  %v3791_v31 = vunpack.i.l.bf16 %v5139_v36 }
 0x12a   : > { %v4047_v52 = vunpack.i.h.bf16 %v4045_v40  ;;  %v4046_v62 = vunpack.i.l.bf16 %v4045_v40  ;;  %v1656_v41 = vsel %vm1649_vm12, %v1623_v21, %v4041_v12  ;;  %v1657_v45 = vsel %vm1649_vm12, %v1624_v6, %v4042_v9  ;;  %v4413_v12 = vld [vmem:[#allocation2 + $0x60] sm:$0xff] }
 0x12b   : > { %4334 = vrot.lane.b32.xlu0 %v5042_v49, %s4486_s27  ;;  %v4050_v44 = vpop.permute.xlu1 %4049  ;;  %v4378_v56 = vpack.i.bf16 %v5408_v16, %v5406_v23  ;;  %v3867_v3 = vunpack.i.h.bf16 %v5196_v5  ;;  %v4388_v57 = vpack.i.bf16 %v5504_v46, %v5497_v1  ;;  %v3871_v36 = vunpack.i.l.bf16 %v5202_v51  ;;  %v4412_v23 = vld [vmem:[#allocation2 + $0x68] sm:$0xff]  ;;  %v4414_v51 = vld [vmem:[#allocation2 + $0x80] sm:$0xff] }
 0x12c   : > { %v1687_v53 = vsel %vm1682_vm13, %v1654_v61, %v4046_v62  ;;  %v1688_v14 = vsel %vm1682_vm13, %v1655_v29, %v4047_v52  ;;  %v4052_v42 = vunpack.i.h.bf16 %v4050_v44  ;;  %v4051_v37 = vunpack.i.l.bf16 %v4050_v44 }
 0x12d   : > { %v1717_v58 = vpack.c.bf16 %v1688_v14, %v1687_v53  ;;  %v5476_v63 = vpop.permute.xlu0 %4054  ;;  %4339 = vrot.lane.b32.xlu1 %v5046_v10, %s4486_s27  ;;  %v3947_v43 = vunpack.i.h.bf16 %v5261_v8  ;;  %v3946_v25 = vunpack.i.l.bf16 %v5261_v8  ;;  %v5530_v40 = vsel %vm577_vm5, %v679_v60, %v680_v24  ;;  %v4415_v8 = vld [vmem:[#allocation2 + $0x78] sm:$0xff] }
 0x12e   : > { %v1689_v15 = vsel %vm1682_vm13, %v1656_v41, %v4051_v37  ;;  %v1690_v49 = vsel %vm1682_vm13, %v1657_v45, %v4052_v42  ;;  %v5533_v47 = vsel %vm577_vm5, %v680_v24, %v682_v50  ;;  %v1463_v22 = vsel %vm361_vm4, %v4414_v51, %v3792_v54 }
 0x12f   : > { %v1718_v11 = vpack.c.bf16 %v1690_v49, %v1689_v15  ;;  %4344 = vrot.lane.b32.xlu0 %v5303_v0, %s4481_s9  ;;  %3670 = vmatprep.mubr.msk.bf16.mxu0 %vm1751_vm14, %v1717_v58  ;;  %v5489_v48 = vpop.permute.xlu1 %4059  ;;  %v3787_v0 = vunpack.i.h.bf16 %v5132_v32  ;;  %v3866_v32 = vunpack.i.l.bf16 %v5196_v5  ;;  %v1460_v5 = vsel %vm361_vm4, %v4413_v12, %v3786_v39 }
 0x130   : > { %v1462_v52 = vsel %vm361_vm4, %v4415_v8, %v3791_v31  ;;  %v3951_v62 = vunpack.i.l.bf16 %v5266_v18  ;;  %v4057_v29 = vunpack.i.h.bf16 %v5476_v63  ;;  %v4056_v44 = vunpack.i.l.bf16 %v5476_v63 }
 0x131   : > { %v4065_v55 = vpop.permute.xlu0 %4064  ;;  %4349 = vrot.lane.b32.xlu1 %v5388_v26, %s4481_s9  ;;  %3671 = vmatmul.mubr.msk.bf16.gmra.mrb[4].mxu0 %vm1751_vm14, %v1718_v11  ;;  %v1461_v16 = vsel %vm361_vm4, %v4412_v23, %v3787_v0  ;;  %v1493_v6 = vsel %vm1484_vm7, %v1460_v5, %v3866_v32  ;;  %v1496_v53 = vsel %vm1484_vm7, %v1463_v22, %v3872_v35  ;;  %v4062_v41 = vunpack.i.h.bf16 %v5489_v48 }
 0x132   : > { %v1494_v61 = vsel %vm1484_vm7, %v1461_v16, %v3867_v3  ;;  %v1495_v14 = vsel %vm1484_vm7, %v1462_v52, %v3871_v36  ;;  %v1526_v42 = vsel %vm1517_vm8, %v1493_v6, %v3946_v25  ;;  %v4061_v45 = vunpack.i.l.bf16 %v5489_v48 }
 0x133   : > { %4354 = vrot.lane.b32.xlu0 %v6501_v17, %s4482_s12  ;;  %v4070_v9 = vpop.permute.xlu1 %4069  ;;  %v3952_v17 = vunpack.i.h.bf16 %v5266_v18  ;;  %v1527_v18 = vsel %vm1517_vm8, %v1494_v61, %v3947_v43  ;;  %v4067_v58 = vunpack.i.h.bf16 %v4065_v55  ;;  %v4066_v15 = vunpack.i.l.bf16 %v4065_v55 }
 0x134   : > { %v1528_v63 = vsel %vm1517_vm8, %v1495_v14, %v3951_v62  ;;  %v4072_v11 = vunpack.i.h.bf16 %v4070_v9  ;;  %v4071_v24 = vunpack.i.l.bf16 %v4070_v9  ;;  %v1559_v39 = vsel %vm1550_vm9, %v1526_v42, %v4056_v44 }
 0x135   : > { %v4075_v21 = vpop.permute.xlu0 %4074  ;;  %4359 = vrot.lane.b32.xlu1 %v5399_v28, %s4482_s12  ;;  %v1529_v49 = vsel %vm1517_vm8, %v1496_v53, %v3952_v17  ;;  %v1561_v32 = vsel %vm1550_vm9, %v1528_v63, %v4061_v45  ;;  %v1592_v36 = vsel %vm1583_vm10, %v1559_v39, %v4066_v15  ;;  %v3797_v46 = vunpack.i.h.bf16 %v5141_v30 }
 0x136   : > { %v4077_v60 = vunpack.i.h.bf16 %v4075_v21  ;;  %v4076_v50 = vunpack.i.l.bf16 %v4075_v21  ;;  %v1562_v35 = vsel %vm1550_vm9, %v1529_v49, %v4062_v41  ;;  %v1594_v25 = vsel %vm1583_vm10, %v1561_v32, %v4071_v24 }
 0x137   : > { %4364 = vrot.lane.b32.xlu0 %v5046_v10, %s4483_s22  ;;  %v4080_v37 = vpop.permute.xlu1 %4079  ;;  %v1560_v10 = vsel %vm1550_vm9, %v1527_v18, %v4057_v29  ;;  %v1595_v9 = vsel %vm1583_vm10, %v1562_v35, %v4072_v11  ;;  %v3876_v63 = vunpack.i.l.bf16 %v5204_v59  ;;  %v3882_v49 = vunpack.i.h.bf16 %v5211_v13 }
 0x138   : > { %v4082_v54 = vunpack.i.h.bf16 %v4080_v37  ;;  %v4081_v48 = vunpack.i.l.bf16 %v4080_v37  ;;  %v1593_v43 = vsel %vm1583_vm10, %v1560_v10, %v4067_v58  ;;  %v3881_v11 = vunpack.i.l.bf16 %v5211_v13  ;;  %v4416_v10 = vld [vmem:[#allocation2 + $0x98] sm:$0xff] }
 0x139   : > { %v4085_v0 = vpop.permute.xlu0 %4084  ;;  %4369 = vrot.lane.b32.xlu1 %v5484_v4, %s4483_s22  ;;  %v1626_v5 = vsel %vm1616_vm11, %v1593_v43, %v4077_v60  ;;  %v1465_v60 = vsel %vm361_vm4, %v4416_v10, %v3797_v46 }
 0x13a   : > { %v4087_v31 = vunpack.i.h.bf16 %v4085_v0  ;;  %v4086_v55 = vunpack.i.l.bf16 %v4085_v0  ;;  %v1627_v8 = vsel %vm1616_vm11, %v1594_v25, %v4081_v48  ;;  %v1628_v52 = vsel %vm1616_vm11, %v1595_v9, %v4082_v54  ;;  %v4418_v54 = vld [vmem:[#allocation2 + $0xb0] sm:$0xff]  ;;  %v4419_v48 = vld [vmem:[#allocation2 + $0xa8] sm:$0xff] }
 0x13b   : > { %4374 = vrot.lane.b32.xlu0 %v5388_v26, %s4484_s25  ;;  %v4090_v3 = vpop.permute.xlu1 %4089  ;;  %v1625_v26 = vsel %vm1616_vm11, %v1592_v36, %v4076_v50 }
 0x13c   : > { %v4092_v23 = vunpack.i.h.bf16 %v4090_v3  ;;  %v4091_v16 = vunpack.i.l.bf16 %v4090_v3  ;;  %v1658_v17 = vsel %vm1649_vm12, %v1625_v26, %v4086_v55  ;;  %v1659_v62 = vsel %vm1649_vm12, %v1626_v5, %v4087_v31 }
 0x13d   : > { %v4095_v12 = vpop.permute.xlu0 %4094  ;;  %4379 = vrot.lane.b32.xlu1 %v4378_v56, %s4484_s25 }
 0x13e   : > { %v4097_v51 = vunpack.i.h.bf16 %v4095_v12  ;;  %v4096_v22 = vunpack.i.l.bf16 %v4095_v12  ;;  %v1660_v44 = vsel %vm1649_vm12, %v1627_v8, %v4091_v16  ;;  %v1661_v53 = vsel %vm1649_vm12, %v1628_v52, %v4092_v23 }
 0x13f   : > { %4384 = vrot.lane.b32.xlu0 %v5399_v28, %s4485_s26  ;;  %v4100_v21 = vpop.permute.xlu1 %4099  ;;  %v4398_v28 = vpack.i.bf16 %v5533_v47, %v5530_v40  ;;  %v3802_v40 = vunpack.i.h.bf16 %v5146_v7  ;;  %v3801_v47 = vunpack.i.l.bf16 %v5146_v7 }
 0x140   : > { %v1691_v56 = vsel %vm1682_vm13, %v1658_v17, %v4096_v22  ;;  %v1692_v6 = vsel %vm1682_vm13, %v1659_v62, %v4097_v51  ;;  %v4102_v61 = vunpack.i.h.bf16 %v4100_v21  ;;  %v4101_v29 = vunpack.i.l.bf16 %v4100_v21 }
 0x141   : > { %v1719_v14 = vpack.c.bf16 %v1692_v6, %v1691_v56  ;;  %v4105_v42 = vpop.permute.xlu0 %4104  ;;  %4389 = vrot.lane.b32.xlu1 %v4388_v57, %s4485_s26  ;;  %v3796_v57 = vunpack.i.l.bf16 %v5141_v30  ;;  %v4417_v30 = vld [vmem:[#allocation2 + $0x90] sm:$0xff]  ;;  %v1467_v7 = vsel %vm361_vm4, %v4418_v54, %v3802_v40  ;;  %v1466_v31 = vsel %vm361_vm4, %v4419_v48, %v3801_v47 }
 0x142   : > { %v1693_v18 = vsel %vm1682_vm13, %v1660_v44, %v4101_v29  ;;  %v1694_v37 = vsel %vm1682_vm13, %v1661_v53, %v4102_v61  ;;  %v4107_v24 = vunpack.i.h.bf16 %v4105_v42  ;;  %v4106_v0 = vunpack.i.l.bf16 %v4105_v42 }
 0x143   : > { %v1720_v41 = vpack.c.bf16 %v1694_v37, %v1693_v18  ;;  %4394 = vrot.lane.b32.xlu0 %v5484_v4, %s4486_s27  ;;  %3674 = vmatprep.mubr.msk.bf16.mxu0 %vm1751_vm14, %v1719_v14  ;;  %v4110_v45 = vpop.permute.xlu1 %4109  ;;  %v3877_v4 = vunpack.i.h.bf16 %v5204_v59  ;;  %v1464_v50 = vsel %vm361_vm4, %v4417_v30, %v3796_v57  ;;  %v1500_v43 = vsel %vm1484_vm7, %v1467_v7, %v3882_v49 }
 0x144   : > { %v4112_v59 = vunpack.i.h.bf16 %v4110_v45  ;;  %v4111_v55 = vunpack.i.l.bf16 %v4110_v45  ;;  %v1497_v13 = vsel %vm1484_vm7, %v1464_v50, %v3876_v63  ;;  %v1499_v25 = vsel %vm1484_vm7, %v1466_v31, %v3881_v11 }
 0x145   : > { %v4115_v58 = vpop.permute.xlu0 %4114  ;;  %4399 = vrot.lane.b32.xlu1 %v4398_v28, %s4486_s27  ;;  %3675 = vmatmul.mubr.msk.bf16.gmra.mrb[8].mxu0 %vm1751_vm14, %v1720_v41  ;;  %v1498_v32 = vsel %vm1484_vm7, %v1465_v60, %v3877_v4  ;;  %v1530_v9 = vsel %vm1517_vm8, %v1497_v13, %v4106_v0 }
 0x146   : > { %v4117_v35 = vunpack.i.h.bf16 %v4115_v58  ;;  %v4116_v36 = vunpack.i.l.bf16 %v4115_v58  ;;  %v1531_v23 = vsel %vm1517_vm8, %v1498_v32, %v4107_v24  ;;  %v1532_v22 = vsel %vm1517_vm8, %v1499_v25, %v4111_v55 }
 0x147   : > { %v4120_v1 = vpop.permute.xlu1 %4119  ;;  %v1533_v8 = vsel %vm1517_vm8, %v1500_v43, %v4112_v59  ;;  %v3812_v43 = vunpack.i.h.bf16 %v5154_v33  ;;  %v3811_v25 = vunpack.i.l.bf16 %v5154_v33 }
 0x148   : > { %v4122_v12 = vunpack.i.h.bf16 %v4120_v1  ;;  %v4121_v26 = vunpack.i.l.bf16 %v4120_v1  ;;  %v1563_v21 = vsel %vm1550_vm9, %v1530_v9, %v4116_v36  ;;  %v1564_v56 = vsel %vm1550_vm9, %v1531_v23, %v4117_v35 }
 0x149   : > { %v4125_v15 = vpop.permute.xlu0 %4124  ;;  %v3807_v35 = vunpack.i.h.bf16 %v5148_v2  ;;  %v3806_v36 = vunpack.i.l.bf16 %v5148_v2  ;;  %v3887_v23 = vunpack.i.h.bf16 %v5213_v19  ;;  %v4421_v2 = vld [vmem:[#allocation2 + $0xc0] sm:$0xff] }
 0x14a   : > { %v4127_v5 = vunpack.i.h.bf16 %v4125_v15  ;;  %v4126_v51 = vunpack.i.l.bf16 %v4125_v15  ;;  %v1565_v28 = vsel %vm1550_vm9, %v1532_v22, %v4121_v26  ;;  %v1566_v18 = vsel %vm1550_vm9, %v1533_v8, %v4122_v12  ;;  %v4420_v8 = vld [vmem:[#allocation2 + $0xc8] sm:$0xff] }
 0x14b   : > { %v4130_v39 = vpop.permute.xlu1 %4129  ;;  %v3892_v12 = vunpack.i.h.bf16 %v5218_v34  ;;  %v3891_v26 = vunpack.i.l.bf16 %v5218_v34 }
 0x14c   : > { %v4132_v52 = vunpack.i.h.bf16 %v4130_v39  ;;  %v4131_v17 = vunpack.i.l.bf16 %v4130_v39  ;;  %v1596_v37 = vsel %vm1583_vm10, %v1563_v21, %v4126_v51  ;;  %v1597_v41 = vsel %vm1583_vm10, %v1564_v56, %v4127_v5  ;;  %v4423_v21 = vld [vmem:[#allocation2 + $0xd8] sm:$0xff] }
 0x14d   : > { %v4135_v3 = vpop.permute.xlu0 %4134  ;;  %v1470_v56 = vsel %vm361_vm4, %v4423_v21, %v3811_v25 }
 0x14e   : > { %v4137_v6 = vunpack.i.h.bf16 %v4135_v3  ;;  %v4136_v61 = vunpack.i.l.bf16 %v4135_v3  ;;  %v1598_v45 = vsel %vm1583_vm10, %v1565_v28, %v4131_v17  ;;  %v1599_v58 = vsel %vm1583_vm10, %v1566_v18, %v4132_v52 }
 0x14f   : > { %v4140_v16 = vpop.permute.xlu1 %4139  ;;  %v1469_v52 = vsel %vm361_vm4, %v4420_v8, %v3807_v35  ;;  %v1468_v17 = vsel %vm361_vm4, %v4421_v2, %v3806_v36 }
 0x150   : > { %v4142_v29 = vunpack.i.h.bf16 %v4140_v16  ;;  %v4141_v44 = vunpack.i.l.bf16 %v4140_v16  ;;  %v1629_v40 = vsel %vm1616_vm11, %v1596_v37, %v4136_v61  ;;  %v1630_v47 = vsel %vm1616_vm11, %v1597_v41, %v4137_v6 }
 0x151   : > { %v4145_v62 = vpop.permute.xlu0 %4144  ;;  %v3886_v16 = vunpack.i.l.bf16 %v5213_v19 }
 0x152   : > { %v4147_v53 = vunpack.i.h.bf16 %v4145_v62  ;;  %v4146_v14 = vunpack.i.l.bf16 %v4145_v62  ;;  %v1631_v63 = vsel %vm1616_vm11, %v1598_v45, %v4141_v44  ;;  %v1632_v49 = vsel %vm1616_vm11, %v1599_v58, %v4142_v29  ;;  %v4422_v62 = vld [vmem:[#allocation2 + $0xe0] sm:$0xff] }
 0x153   : > { %v4150_v42 = vpop.permute.xlu1 %4149  ;;  %v1471_v33 = vsel %vm361_vm4, %v4422_v62, %v3812_v43  ;;  %v1501_v34 = vsel %vm1484_vm7, %v1468_v17, %v3886_v16  ;;  %v1502_v29 = vsel %vm1484_vm7, %v1469_v52, %v3887_v23 }
 0x154   : > { %v4152_v1 = vunpack.i.h.bf16 %v4150_v42  ;;  %v4151_v46 = vunpack.i.l.bf16 %v4150_v42  ;;  %v1662_v11 = vsel %vm1649_vm12, %v1629_v40, %v4146_v14  ;;  %v1663_v24 = vsel %vm1649_vm12, %v1630_v47, %v4147_v53 }
 0x155   : > { %v4155_v57 = vpop.permute.xlu0 %4154  ;;  %v1504_v14 = vsel %vm1484_vm7, %v1471_v33, %v3892_v12  ;;  %v1503_v42 = vsel %vm1484_vm7, %v1470_v56, %v3891_v26 }
 0x156   : > { %v4157_v15 = vunpack.i.h.bf16 %v4155_v57  ;;  %v4156_v4 = vunpack.i.l.bf16 %v4155_v57  ;;  %v1664_v50 = vsel %vm1649_vm12, %v1631_v63, %v4151_v46  ;;  %v1665_v54 = vsel %vm1649_vm12, %v1632_v49, %v4152_v1 }
 0x157   : > { %v4160_v0 = vpop.permute.xlu1 %4159 }
 0x158   : > { %v1695_v39 = vsel %vm1682_vm13, %v1662_v11, %v4156_v4  ;;  %v1696_v10 = vsel %vm1682_vm13, %v1663_v24, %v4157_v15  ;;  %v4162_v60 = vunpack.i.h.bf16 %v4160_v0  ;;  %v4161_v30 = vunpack.i.l.bf16 %v4160_v0 }
 0x159   : > { %v1721_v7 = vpack.c.bf16 %v1696_v10, %v1695_v39  ;;  %v4165_v48 = vpop.permute.xlu0 %4164 }
 0x15a   : > { %v1697_v31 = vsel %vm1682_vm13, %v1664_v50, %v4161_v30  ;;  %v1698_v59 = vsel %vm1682_vm13, %v1665_v54, %v4162_v60  ;;  %v4167_v5 = vunpack.i.h.bf16 %v4165_v48  ;;  %v4166_v51 = vunpack.i.l.bf16 %v4165_v48 }
 0x15b   : > { %v1722_v55 = vpack.c.bf16 %v1698_v59, %v1697_v31  ;;  %3678 = vmatprep.mubr.msk.bf16.mxu0 %vm1751_vm14, %v1721_v7  ;;  %v4170_v3 = vpop.permute.xlu1 %4169 }
 0x15c   : > { %v4172_v19 = vunpack.i.h.bf16 %v4170_v3  ;;  %v4171_v6 = vunpack.i.l.bf16 %v4170_v3  ;;  %v1534_v28 = vsel %vm1517_vm8, %v1501_v34, %v4166_v51  ;;  %v1535_v18 = vsel %vm1517_vm8, %v1502_v29, %v4167_v5 }
 0x15d   : > { %v4175_v13 = vpop.permute.xlu0 %4174  ;;  %3679 = vmatmul.mubr.msk.bf16.gmra.mrb[12].mxu0 %vm1751_vm14, %v1722_v55  ;;  %v3822_v34 = vunpack.i.h.bf16 %v5163_v27  ;;  %v3821_v29 = vunpack.i.l.bf16 %v5163_v27 }
 0x15e   : > { %v4177_v44 = vunpack.i.h.bf16 %v4175_v13  ;;  %v4176_v53 = vunpack.i.l.bf16 %v4175_v13  ;;  %v1536_v46 = vsel %vm1517_vm8, %v1503_v42, %v4171_v6  ;;  %v1537_v57 = vsel %vm1517_vm8, %v1504_v14, %v4172_v19  ;;  %v6502_v42 = vld [vmem:[#allocation21_spill] sm:$0xff] }
 0x15f   : > { %v4180_v32 = vpop.permute.xlu1 %4179  ;;  %v3817_v6 = vunpack.i.h.bf16 %v5156_v38  ;;  %v3896_v14 = vunpack.i.l.bf16 %v5220_v20 }
 0x160   : > { %v4182_v41 = vunpack.i.h.bf16 %v4180_v32  ;;  %v4181_v45 = vunpack.i.l.bf16 %v4180_v32  ;;  %v1567_v4 = vsel %vm1550_vm9, %v1534_v28, %v4176_v53  ;;  %v1568_v63 = vsel %vm1550_vm9, %v1535_v18, %v4177_v44 }
 0x161   : > { %v4185_v9 = vpop.permute.xlu0 %4184  ;;  %v3897_v53 = vunpack.i.h.bf16 %v5220_v20  ;;  %v3902_v28 = vunpack.i.h.bf16 %v6502_v42  ;;  %v3901_v18 = vunpack.i.l.bf16 %v6502_v42 }
 0x162   : > { %v4187_v58 = vunpack.i.h.bf16 %v4185_v9  ;;  %v4186_v1 = vunpack.i.l.bf16 %v4185_v9  ;;  %v1569_v30 = vsel %vm1550_vm9, %v1536_v46, %v4181_v45  ;;  %v1570_v50 = vsel %vm1550_vm9, %v1537_v57, %v4182_v41  ;;  %v4426_v57 = vld [vmem:[#allocation2 + $0x110] sm:$0xff] }
 0x163   : > { %v4190_v22 = vpop.permute.xlu1 %4189  ;;  %v1475_v27 = vsel %vm361_vm4, %v4426_v57, %v3822_v34 }
 0x164   : > { %v4192_v40 = vunpack.i.h.bf16 %v4190_v22  ;;  %v4191_v47 = vunpack.i.l.bf16 %v4190_v22  ;;  %v1600_v54 = vsel %vm1583_vm10, %v1567_v4, %v4186_v1  ;;  %v1601_v7 = vsel %vm1583_vm10, %v1568_v63, %v4187_v58  ;;  %v4424_v58 = vld [vmem:[#allocation2 + $0xf8] sm:$0xff] }
 0x165   : > { %v4195_v61 = vpop.permute.xlu0 %4194  ;;  %v1473_v1 = vsel %vm361_vm4, %v4424_v58, %v3817_v6 }
 0x166   : > { %v4197_v49 = vunpack.i.h.bf16 %v4195_v61  ;;  %v4196_v11 = vunpack.i.l.bf16 %v4195_v61  ;;  %v1602_v48 = vsel %vm1583_vm10, %v1569_v30, %v4191_v47  ;;  %v1603_v31 = vsel %vm1583_vm10, %v1570_v50, %v4192_v40  ;;  %v4427_v40 = vld [vmem:[#allocation2 + $0x108] sm:$0xff] }
 0x167   : > { %v4200_v37 = vpop.permute.xlu1 %4199  ;;  %v3816_v61 = vunpack.i.l.bf16 %v5156_v38  ;;  %v4425_v38 = vld [vmem:[#allocation2 + $0xf0] sm:$0xff]  ;;  %v1474_v47 = vsel %vm361_vm4, %v4427_v40, %v3821_v29 }
 0x168   : > { %v4202_v24 = vunpack.i.h.bf16 %v4200_v37  ;;  %v4201_v0 = vunpack.i.l.bf16 %v4200_v37  ;;  %v1633_v13 = vsel %vm1616_vm11, %v1600_v54, %v4196_v11  ;;  %v1634_v32 = vsel %vm1616_vm11, %v1601_v7, %v4197_v49  ;;  %v6503_v40 = vld [vmem:[#allocation15_spill] sm:$0xff] }
 0x169   : > { %v4205_v15 = vpop.permute.xlu0 %4204  ;;  %v1472_v46 = vsel %vm361_vm4, %v4425_v38, %v3816_v61  ;;  %v1506_v49 = vsel %vm1484_vm7, %v1473_v1, %v3897_v53 }
 0x16a   : > { %v4207_v39 = vunpack.i.h.bf16 %v4205_v15  ;;  %v4206_v10 = vunpack.i.l.bf16 %v4205_v15  ;;  %v1635_v43 = vsel %vm1616_vm11, %v1602_v48, %v4201_v0  ;;  %v1636_v25 = vsel %vm1616_vm11, %v1603_v31, %v4202_v24 }
 0x16b   : > { %v4210_v60 = vpop.permute.xlu1 %4209  ;;  %v1505_v63 = vsel %vm1484_vm7, %v1472_v46, %v3896_v14  ;;  %v1508_v0 = vsel %vm1484_vm7, %v1475_v27, %v3902_v28 }
 0x16c   : > { %v4212_v59 = vunpack.i.h.bf16 %v4210_v60  ;;  %v4211_v55 = vunpack.i.l.bf16 %v4210_v60  ;;  %v1666_v23 = vsel %vm1649_vm12, %v1633_v13, %v4206_v10  ;;  %v1667_v16 = vsel %vm1649_vm12, %v1634_v32, %v4207_v39 }
 0x16d   : > { %v4215_v3 = vpop.permute.xlu0 %4214  ;;  %v1507_v39 = vsel %vm1484_vm7, %v1474_v47, %v3901_v18  ;;  %v3827_v47 = vunpack.i.h.bf16 %v6503_v40 }
 0x16e   : > { %v4217_v35 = vunpack.i.h.bf16 %v4215_v3  ;;  %v4216_v36 = vunpack.i.l.bf16 %v4215_v3  ;;  %v1668_v22 = vsel %vm1649_vm12, %v1635_v43, %v4211_v55  ;;  %v1669_v8 = vsel %vm1649_vm12, %v1636_v25, %v4212_v59 }
 0x16f   : > { %v4220_v9 = vpop.permute.xlu1 %4219 }
 0x170   : > { %v4222_v12 = vunpack.i.h.bf16 %v4220_v9  ;;  %v4221_v26 = vunpack.i.l.bf16 %v4220_v9  ;;  %v1699_v5 = vsel %vm1682_vm13, %v1666_v23, %v4216_v36  ;;  %v1700_v51 = vsel %vm1682_vm13, %v1667_v16, %v4217_v35 }
 0x171   : > { %v4225_v52 = vpop.permute.xlu0 %4224  ;;  %v1723_v2 = vpack.c.bf16 %v1700_v51, %v1699_v5 }
 0x172   : > { %v1701_v17 = vsel %vm1682_vm13, %v1668_v22, %v4221_v26  ;;  %v1702_v62 = vsel %vm1682_vm13, %v1669_v8, %v4222_v12  ;;  %v4227_v37 = vunpack.i.h.bf16 %v4225_v52  ;;  %v4226_v41 = vunpack.i.l.bf16 %v4225_v52 }
 0x173   : > { %v1724_v33 = vpack.c.bf16 %v1702_v62, %v1701_v17  ;;  %3682 = vmatprep.mubr.msk.bf16.mxu1 %vm1751_vm14, %v1723_v2  ;;  %v4230_v21 = vpop.permute.xlu1 %4229 }
 0x174   : > { %v4232_v20 = vunpack.i.h.bf16 %v4230_v21  ;;  %v4231_v15 = vunpack.i.l.bf16 %v4230_v21  ;;  %v1538_v10 = vsel %vm1517_vm8, %v1505_v63, %v4226_v41  ;;  %v1539_v60 = vsel %vm1517_vm8, %v1506_v49, %v4227_v37 }
 0x175   : > { %v4235_v56 = vpop.permute.xlu0 %4234  ;;  %3683 = vmatmul.mubr.msk.bf16.vlgmr.msra.gmra.mrb[0].mxu1 %vm1751_vm14, %v1724_v33 }
 0x176   : > { %v4237_v11 = vunpack.i.h.bf16 %v4235_v56  ;;  %v4236_v24 = vunpack.i.l.bf16 %v4235_v56  ;;  %v1540_v31 = vsel %vm1517_vm8, %v1507_v39, %v4231_v15  ;;  %v1541_v59 = vsel %vm1517_vm8, %v1508_v0, %v4232_v20  ;;  %v6504_v15 = vld [vmem:[#allocation17_spill] sm:$0xff]  ;;  %v6506_v39 = vld [vmem:[#allocation8_spill] sm:$0xff] }
 0x177   : > { %v4240_v19 = vpop.permute.xlu1 %4239  ;;  %v3826_v20 = vunpack.i.l.bf16 %v6503_v40  ;;  %v3831_v63 = vunpack.i.l.bf16 %v6504_v15 }
 0x178   : > { %v4242_v50 = vunpack.i.h.bf16 %v4240_v19  ;;  %v4241_v54 = vunpack.i.l.bf16 %v4240_v19  ;;  %v1571_v32 = vsel %vm1550_vm9, %v1538_v10, %v4236_v24  ;;  %v1572_v35 = vsel %vm1550_vm9, %v1539_v60, %v4237_v11  ;;  %v6505_v11 = vld [vmem:[#allocation9_spill] sm:$0xff] }
 0x179   : > { %v4245_v44 = vpop.permute.xlu0 %4244  ;;  %v3907_v24 = vunpack.i.h.bf16 %v6505_v11  ;;  %v3906_v0 = vunpack.i.l.bf16 %v6505_v11  ;;  %v3912_v10 = vunpack.i.h.bf16 %v6506_v39  ;;  %v3911_v60 = vunpack.i.l.bf16 %v6506_v39 }
 0x17a   : > { %v4247_v7 = vunpack.i.h.bf16 %v4245_v44  ;;  %v4246_v48 = vunpack.i.l.bf16 %v4245_v44  ;;  %v1573_v26 = vsel %vm1550_vm9, %v1540_v31, %v4241_v54  ;;  %v1574_v5 = vsel %vm1550_vm9, %v1541_v59, %v4242_v50  ;;  %v4429_v31 = vld [vmem:[#allocation2 + $0x120] sm:$0xff] }
 0x17b   : > { %v4250_v45 = vpop.permute.xlu1 %4249  ;;  %v1476_v59 = vsel %vm361_vm4, %v4429_v31, %v3826_v20 }
 0x17c   : > { %v4252_v55 = vunpack.i.h.bf16 %v4250_v45  ;;  %v4251_v3 = vunpack.i.l.bf16 %v4250_v45  ;;  %v1604_v51 = vsel %vm1583_vm10, %v1571_v32, %v4246_v48  ;;  %v1605_v22 = vsel %vm1583_vm10, %v1572_v35, %v4247_v7  ;;  %v4428_v7 = vld [vmem:[#allocation2 + $0x128] sm:$0xff] }
 0x17d   : > { %v4255_v4 = vpop.permute.xlu0 %4254  ;;  %v1477_v48 = vsel %vm361_vm4, %v4428_v7, %v3827_v47 }
 0x17e   : > { %v4257_v36 = vunpack.i.h.bf16 %v4255_v4  ;;  %v4256_v43 = vunpack.i.l.bf16 %v4255_v4  ;;  %v1606_v8 = vsel %vm1583_vm10, %v1573_v26, %v4251_v3  ;;  %v1607_v52 = vsel %vm1583_vm10, %v1574_v5, %v4252_v55  ;;  %v4430_v55 = vld [vmem:[#allocation2 + $0x140] sm:$0xff] }
 0x17f   : > { %v4260_v30 = vpop.permute.xlu1 %4259  ;;  %v3832_v4 = vunpack.i.h.bf16 %v6504_v15 }
 0x180   : > { %v4262_v25 = vunpack.i.h.bf16 %v4260_v30  ;;  %v4261_v9 = vunpack.i.l.bf16 %v4260_v30  ;;  %v1637_v33 = vsel %vm1616_vm11, %v1604_v51, %v4256_v43  ;;  %v1638_v21 = vsel %vm1616_vm11, %v1605_v22, %v4257_v36 }
 0x181   : > { %v4265_v13 = vpop.permute.xlu0 %4264  ;;  %v1479_v3 = vsel %vm361_vm4, %v4430_v55, %v3832_v4 }
 0x182   : > { %v4267_v23 = vunpack.i.h.bf16 %v4265_v13  ;;  %v4266_v16 = vunpack.i.l.bf16 %v4265_v13  ;;  %v1639_v6 = vsel %vm1616_vm11, %v1606_v8, %v4261_v9  ;;  %v1640_v61 = vsel %vm1616_vm11, %v1607_v52, %v4262_v25  ;;  %v4431_v13 = vld [vmem:[#allocation2 + $0x138] sm:$0xff] }
 0x183   : > { %v4270_v12 = vpop.permute.xlu1 %4269  ;;  %v1478_v32 = vsel %vm361_vm4, %v4431_v13, %v3831_v63  ;;  %v1509_v25 = vsel %vm1484_vm7, %v1476_v59, %v3906_v0  ;;  %v1510_v9 = vsel %vm1484_vm7, %v1477_v48, %v3907_v24  ;;  %v6507_v13 = vld [vmem:[#allocation18_spill] sm:$0xff] }
 0x184   : > { %v4272_v2 = vunpack.i.h.bf16 %v4270_v12  ;;  %v4271_v17 = vunpack.i.l.bf16 %v4270_v12  ;;  %v1670_v34 = vsel %vm1649_vm12, %v1637_v33, %v4266_v16  ;;  %v1671_v29 = vsel %vm1649_vm12, %v1638_v21, %v4267_v23 }
 0x185   : > { %v4275_v62 = vpop.permute.xlu0 %4274  ;;  %v1512_v12 = vsel %vm1484_vm7, %v1479_v3, %v3912_v10  ;;  %v1511_v26 = vsel %vm1484_vm7, %v1478_v32, %v3911_v60  ;;  %v3837_v32 = vunpack.i.h.bf16 %v6507_v13 }
 0x186   : > { %v4277_v56 = vunpack.i.h.bf16 %v4275_v62  ;;  %v4276_v19 = vunpack.i.l.bf16 %v4275_v62  ;;  %v1672_v18 = vsel %vm1649_vm12, %v1639_v6, %v4271_v17  ;;  %v1673_v37 = vsel %vm1649_vm12, %v1640_v61, %v4272_v2 }
 0x187   : > { %v4280_v44 = vpop.permute.xlu1 %4279 }
 0x188   : > { %v1703_v53 = vsel %vm1682_vm13, %v1670_v34, %v4276_v19  ;;  %v1704_v14 = vsel %vm1682_vm13, %v1671_v29, %v4277_v56  ;;  %v4282_v42 = vunpack.i.h.bf16 %v4280_v44  ;;  %v4281_v28 = vunpack.i.l.bf16 %v4280_v44 }
 0x189   : > { %v1725_v41 = vpack.c.bf16 %v1704_v14, %v1703_v53  ;;  %v4285_v45 = vpop.permute.xlu0 %4284 }
 0x18a   : > { %v1705_v58 = vsel %vm1682_vm13, %v1672_v18, %v4281_v28  ;;  %v1706_v1 = vsel %vm1682_vm13, %v1673_v37, %v4282_v42  ;;  %v4287_v30 = vunpack.i.h.bf16 %v4285_v45  ;;  %v4286_v50 = vunpack.i.l.bf16 %v4285_v45 }
 0x18b   : > { %v1726_v38 = vpack.c.bf16 %v1706_v1, %v1705_v58  ;;  %3686 = vmatprep.mubr.msk.bf16.mxu1 %vm1751_vm14, %v1725_v41  ;;  %v4290_v46 = vpop.permute.xlu1 %4289 }
 0x18c   : > { %v4292_v35 = vunpack.i.h.bf16 %v4290_v46  ;;  %v4291_v36 = vunpack.i.l.bf16 %v4290_v46  ;;  %v1542_v5 = vsel %vm1517_vm8, %v1509_v25, %v4286_v50  ;;  %v1543_v51 = vsel %vm1517_vm8, %v1510_v9, %v4287_v30 }
 0x18d   : > { %v4295_v57 = vpop.permute.xlu0 %4294  ;;  %3687 = vmatmul.mubr.msk.bf16.gmra.mrb[4].mxu1 %vm1751_vm14, %v1726_v38 }
 0x18e   : > { %v4297_v23 = vunpack.i.h.bf16 %v4295_v57  ;;  %v4296_v16 = vunpack.i.l.bf16 %v4295_v57  ;;  %v1544_v62 = vsel %vm1517_vm8, %v1511_v26, %v4291_v36  ;;  %v1545_v33 = vsel %vm1517_vm8, %v1512_v12, %v4292_v35  ;;  %v6508_v36 = vld [vmem:[#allocation19_spill] sm:$0xff] }
 0x18f   : > { %v4300_v27 = vpop.permute.xlu1 %4299  ;;  %v3836_v35 = vunpack.i.l.bf16 %v6507_v13  ;;  %v3841_v25 = vunpack.i.l.bf16 %v6508_v36  ;;  %v6510_v26 = vld [vmem:[#allocation11_spill] sm:$0xff] }
 0x190   : > { %v4302_v8 = vunpack.i.h.bf16 %v4300_v27  ;;  %v4301_v52 = vunpack.i.l.bf16 %v4300_v27  ;;  %v1575_v6 = vsel %vm1550_vm9, %v1542_v5, %v4296_v16  ;;  %v1576_v61 = vsel %vm1550_vm9, %v1543_v51, %v4297_v23  ;;  %v6509_v23 = vld [vmem:[#allocation10_spill] sm:$0xff] }
 0x191   : > { %v4305_v49 = vpop.permute.xlu0 %4304  ;;  %v3917_v16 = vunpack.i.h.bf16 %v6509_v23  ;;  %v3916_v12 = vunpack.i.l.bf16 %v6509_v23  ;;  %v3922_v5 = vunpack.i.h.bf16 %v6510_v26  ;;  %v3921_v51 = vunpack.i.l.bf16 %v6510_v26 }
 0x192   : > { %v4307_v2 = vunpack.i.h.bf16 %v4305_v49  ;;  %v4306_v17 = vunpack.i.l.bf16 %v4305_v49  ;;  %v1577_v18 = vsel %vm1550_vm9, %v1544_v62, %v4301_v52  ;;  %v1578_v37 = vsel %vm1550_vm9, %v1545_v33, %v4302_v8  ;;  %v4433_v62 = vld [vmem:[#allocation2 + $0x150] sm:$0xff] }
 0x193   : > { %v4310_v54 = vpop.permute.xlu1 %4309  ;;  %v1480_v33 = vsel %vm361_vm4, %v4433_v62, %v3836_v35 }
 0x194   : > { %v4312_v21 = vunpack.i.h.bf16 %v4310_v54  ;;  %v4311_v56 = vunpack.i.l.bf16 %v4310_v54  ;;  %v1608_v41 = vsel %vm1583_vm10, %v1575_v6, %v4306_v17  ;;  %v1609_v45 = vsel %vm1583_vm10, %v1576_v61, %v4307_v2  ;;  %v4432_v2 = vld [vmem:[#allocation2 + $0x158] sm:$0xff] }
 0x195   : > { %v4315_v43 = vpop.permute.xlu0 %4314  ;;  %v1481_v17 = vsel %vm361_vm4, %v4432_v2, %v3837_v32 }
 0x196   : > { %v4317_v34 = vunpack.i.h.bf16 %v4315_v43  ;;  %v4316_v29 = vunpack.i.l.bf16 %v4315_v43  ;;  %v1610_v58 = vsel %vm1583_vm10, %v1577_v18, %v4311_v56  ;;  %v1611_v1 = vsel %vm1583_vm10, %v1578_v37, %v4312_v21  ;;  %v4434_v21 = vld [vmem:[#allocation2 + $0x170] sm:$0xff] }
 0x197   : > { %v4320_v22 = vpop.permute.xlu1 %4319  ;;  %v3842_v43 = vunpack.i.h.bf16 %v6508_v36 }
 0x198   : > { %v4322_v44 = vunpack.i.h.bf16 %v4320_v22  ;;  %v4321_v53 = vunpack.i.l.bf16 %v4320_v22  ;;  %v1641_v27 = vsel %vm1616_vm11, %v1608_v41, %v4316_v29  ;;  %v1642_v40 = vsel %vm1616_vm11, %v1609_v45, %v4317_v34 }
 0x199   : > { %v4325_v19 = vpop.permute.xlu0 %4324  ;;  %v1483_v56 = vsel %vm361_vm4, %v4434_v21, %v3842_v43 }
 0x19a   : > { %v4327_v14 = vunpack.i.h.bf16 %v4325_v19  ;;  %v4326_v42 = vunpack.i.l.bf16 %v4325_v19  ;;  %v1643_v15 = vsel %vm1616_vm11, %v1610_v58, %v4321_v53  ;;  %v1644_v4 = vsel %vm1616_vm11, %v1611_v1, %v4322_v44  ;;  %v4435_v19 = vld [vmem:[#allocation2 + $0x168] sm:$0xff] }
 0x19b   : > { %v4330_v28 = vpop.permute.xlu1 %4329  ;;  %v1482_v6 = vsel %vm361_vm4, %v4435_v19, %v3841_v25  ;;  %v1513_v44 = vsel %vm1484_vm7, %v1480_v33, %v3916_v12  ;;  %v1514_v53 = vsel %vm1484_vm7, %v1481_v17, %v3917_v16 }
 0x19c   : > { %v4332_v38 = vunpack.i.h.bf16 %v4330_v28  ;;  %v4331_v46 = vunpack.i.l.bf16 %v4330_v28  ;;  %v1674_v63 = vsel %vm1649_vm12, %v1641_v27, %v4326_v42  ;;  %v1675_v49 = vsel %vm1649_vm12, %v1642_v40, %v4327_v14 }
 0x19d   : > { %v4335_v57 = vpop.permute.xlu0 %4334  ;;  %v1516_v28 = vsel %vm1484_vm7, %v1483_v56, %v3922_v5  ;;  %v1515_v18 = vsel %vm1484_vm7, %v1482_v6, %v3921_v51 }
 0x19e   : > { %v4337_v47 = vunpack.i.h.bf16 %v4335_v57  ;;  %v4336_v20 = vunpack.i.l.bf16 %v4335_v57  ;;  %v1676_v60 = vsel %vm1649_vm12, %v1643_v15, %v4331_v46  ;;  %v1677_v30 = vsel %vm1649_vm12, %v1644_v4, %v4332_v38 }
 0x19f   : > { %v4340_v11 = vpop.permute.xlu1 %4339 }
 0x1a0   : > { %v1707_v24 = vsel %vm1682_vm13, %v1674_v63, %v4336_v20  ;;  %v1708_v0 = vsel %vm1682_vm13, %v1675_v49, %v4337_v47  ;;  %v4342_v39 = vunpack.i.h.bf16 %v4340_v11  ;;  %v4341_v10 = vunpack.i.l.bf16 %v4340_v11 }
 0x1a1   : > { %v1727_v50 = vpack.c.bf16 %v1708_v0, %v1707_v24  ;;  %v4345_v54 = vpop.permute.xlu0 %4344 }
 0x1a2   : > { %v1709_v7 = vsel %vm1682_vm13, %v1676_v60, %v4341_v10  ;;  %v1710_v48 = vsel %vm1682_vm13, %v1677_v30, %v4342_v39  ;;  %v4347_v22 = vunpack.i.h.bf16 %v4345_v54  ;;  %v4346_v8 = vunpack.i.l.bf16 %v4345_v54 }
 0x1a3   : > { %v1728_v31 = vpack.c.bf16 %v1710_v48, %v1709_v7  ;;  %3690 = vmatprep.mubr.msk.bf16.mxu1 %vm1751_vm14, %v1727_v50  ;;  %v4350_v59 = vpop.permute.xlu1 %4349 }
 0x1a4   : > { %v4352_v61 = vunpack.i.h.bf16 %v4350_v59  ;;  %v4351_v34 = vunpack.i.l.bf16 %v4350_v59  ;;  %v1546_v37 = vsel %vm1517_vm8, %v1513_v44, %v4346_v8  ;;  %v1547_v41 = vsel %vm1517_vm8, %v1514_v53, %v4347_v22 }
 0x1a5   : > { %v4355_v55 = vpop.permute.xlu0 %4354  ;;  %3691 = vmatmul.mubr.msk.bf16.gmra.mrb[8].mxu1 %vm1751_vm14, %v1728_v31 }
 0x1a6   : > { %v4357_v14 = vunpack.i.h.bf16 %v4355_v55  ;;  %v4356_v42 = vunpack.i.l.bf16 %v4355_v55  ;;  %v1548_v57 = vsel %vm1517_vm8, %v1515_v18, %v4351_v34  ;;  %v1549_v27 = vsel %vm1517_vm8, %v1516_v28, %v4352_v61 }
 0x1a7   : > { %v4360_v3 = vpop.permute.xlu1 %4359 }
 0x1a8   : > { %v4362_v58 = vunpack.i.h.bf16 %v4360_v3  ;;  %v4361_v1 = vunpack.i.l.bf16 %v4360_v3  ;;  %v1579_v15 = vsel %vm1550_vm9, %v1546_v37, %v4356_v42  ;;  %v1580_v4 = vsel %vm1550_vm9, %v1547_v41, %v4357_v14 }
 0x1a9   : > { %v4365_v9 = vpop.permute.xlu0 %4364 }
 0x1aa   : > { %v4367_v38 = vunpack.i.h.bf16 %v4365_v9  ;;  %v4366_v46 = vunpack.i.l.bf16 %v4365_v9  ;;  %v1581_v60 = vsel %vm1550_vm9, %v1548_v57, %v4361_v1  ;;  %v1582_v30 = vsel %vm1550_vm9, %v1549_v27, %v4362_v58 }
 0x1ab   : > { %v4370_v52 = vpop.permute.xlu1 %4369 }
 0x1ac   : > { %v4372_v40 = vunpack.i.h.bf16 %v4370_v52  ;;  %v4371_v47 = vunpack.i.l.bf16 %v4370_v52  ;;  %v1612_v50 = vsel %vm1583_vm10, %v1579_v15, %v4366_v46  ;;  %v1613_v54 = vsel %vm1583_vm10, %v1580_v4, %v4367_v38 }
 0x1ad   : > { %v4375_v29 = vpop.permute.xlu0 %4374 }
 0x1ae   : > { %v4377_v63 = vunpack.i.h.bf16 %v4375_v29  ;;  %v4376_v49 = vunpack.i.l.bf16 %v4375_v29  ;;  %v1614_v7 = vsel %vm1583_vm10, %v1581_v60, %v4371_v47  ;;  %v1615_v48 = vsel %vm1583_vm10, %v1582_v30, %v4372_v40 }
 0x1af   : > { %v4380_v45 = vpop.permute.xlu1 %4379 }
 0x1b0   : > { %v4382_v11 = vunpack.i.h.bf16 %v4380_v45  ;;  %v4381_v24 = vunpack.i.l.bf16 %v4380_v45  ;;  %v1645_v3 = vsel %vm1616_vm11, %v1612_v50, %v4376_v49  ;;  %v1646_v13 = vsel %vm1616_vm11, %v1613_v54, %v4377_v63 }
 0x1b1   : > { %v4385_v20 = vpop.permute.xlu0 %4384 }
 0x1b2   : > { %v4387_v0 = vunpack.i.h.bf16 %v4385_v20  ;;  %v4386_v39 = vunpack.i.l.bf16 %v4385_v20  ;;  %v1647_v36 = vsel %vm1616_vm11, %v1614_v7, %v4381_v24  ;;  %v1648_v43 = vsel %vm1616_vm11, %v1615_v48, %v4382_v11 }
 0x1b3   : > { %v4390_v10 = vpop.permute.xlu1 %4389 }
 0x1b4   : > { %v4392_v31 = vunpack.i.h.bf16 %v4390_v10  ;;  %v4391_v59 = vunpack.i.l.bf16 %v4390_v10  ;;  %v1678_v25 = vsel %vm1649_vm12, %v1645_v3, %v4386_v39  ;;  %v1679_v9 = vsel %vm1649_vm12, %v1646_v13, %v4387_v0 }
 0x1b5   : > { %v4395_v55 = vpop.permute.xlu0 %4394 }
 0x1b6   : > { %v4397_v32 = vunpack.i.h.bf16 %v4395_v55  ;;  %v4396_v35 = vunpack.i.l.bf16 %v4395_v55  ;;  %v1680_v51 = vsel %vm1649_vm12, %v1647_v36, %v4391_v59  ;;  %v1681_v22 = vsel %vm1649_vm12, %v1648_v43, %v4392_v31 }
 0x1b7   : > { %v4400_v23 = vpop.permute.xlu1 %4399 }
 0x1b8   : > { %v1711_v16 = vsel %vm1682_vm13, %v1678_v25, %v4396_v35  ;;  %v1712_v12 = vsel %vm1682_vm13, %v1679_v9, %v4397_v32  ;;  %v4402_v26 = vunpack.i.h.bf16 %v4400_v23  ;;  %v4401_v5 = vunpack.i.l.bf16 %v4400_v23 }
 0x1b9   : > { %v1729_v8 = vpack.c.bf16 %v1712_v12, %v1711_v16 }
 0x1ba   : > { %v1713_v52 = vsel %vm1682_vm13, %v1680_v51, %v4401_v5  ;;  %v1714_v2 = vsel %vm1682_vm13, %v1681_v22, %v4402_v26 }
 0x1bb   : > { %v1730_v17 = vpack.c.bf16 %v1714_v2, %v1713_v52  ;;  %3694 = vmatprep.mubr.msk.bf16.mxu1 %vm1751_vm14, %v1729_v8 }
 0x1bd   : > { %3695 = vmatmul.mubr.msk.bf16.gmra.mrb[12].mxu1 %vm1751_vm14, %v1730_v17 }
 0x1f0   : > { %v3668_v62 = vpop.f32.mrb[0].mxu0 }
 0x1f1   : > { %2146 = vst.msk [vmem:[%s5804_s30 + $0x10] sm:$0xff] %vm1484_vm7, %v3668_v62  ;;  %v1838_v33 = vpop.f32.mrb[1].mxu0  ;;  %v2041_v6 = vmul.f32 %v3668_v62, %v3668_v62  ;;  %v1969_v53 = vsel %vm1484_vm7, %v3668_v62, 0.0 }
 0x1f2   : > { %v2039_v21 = vmul.f32 %v1838_v33, %v1838_v33  ;;  %2144 = vst.msk [vmem:[%s5804_s30] sm:$0xff] %vm1484_vm7, %v1838_v33  ;;  %v3669_v56 = vpop.f32.mrb[2].mxu0  ;;  %v1966_v61 = vsel %vm1484_vm7, %v1838_v33, 0.0 }
 0x1f3   : > { %2147 = vst.msk [vmem:[%s5804_s30 + $0x18] sm:$0xff] %vm1484_vm7, %v3669_v56  ;;  %v1841_v19 = vpop.f32.mrb[3].mxu0  ;;  %v2042_v42 = vmul.f32 %v3669_v56, %v3669_v56  ;;  %v2074_v41 = vsel %vm1484_vm7, %v2041_v6, 0.0  ;;  %v1971_v45 = vsel %vm1484_vm7, %v3669_v56, 0.0 }
 0x1f4   : > { %v1967_v34 = vsel %vm1484_vm7, %v1841_v19, 0.0  ;;  %v2040_v29 = vmul.f32 %v1841_v19, %v1841_v19  ;;  %2145 = vst.msk [vmem:[%s5804_s30 + $0x8] sm:$0xff] %vm1484_vm7, %v1841_v19  ;;  %v2071_v14 = vsel %vm1484_vm7, %v2039_v21, 0.0 }
 0x1f5   : > { %v1968_v44 = vadd.f32 %v1967_v34, %v1966_v61  ;;  %v2076_v38 = vsel %vm1484_vm7, %v2042_v42, 0.0 }
 0x1f6   : > { %v2072_v28 = vsel %vm1484_vm7, %v2040_v29, 0.0 }
 0x1f7   : > { %v1970_v18 = vadd.f32 %v1969_v53, %v1968_v44  ;;  %v2073_v37 = vadd.f32 %v2072_v28, %v2071_v14 }
 0x1f9   : > { %v2075_v58 = vadd.f32 %v2074_v41, %v2073_v37  ;;  %v1972_v1 = vadd.f32 %v1971_v45, %v1970_v18 }
 0x1fb   : > { %v2077_v46 = vadd.f32 %v2076_v38, %v2075_v58 }
 0x204   : > { %v3672_v57 = vpop.f32.mrb[4].mxu0 }
 0x205   : > { %2150 = vst.msk [vmem:[%s5804_s30 + $0x30] sm:$0xff] %vm1484_vm7, %v3672_v57  ;;  %v1854_v27 = vpop.f32.mrb[5].mxu0  ;;  %v2045_v63 = vmul.f32 %v3672_v57, %v3672_v57  ;;  %v1977_v10 = vsel %vm1484_vm7, %v3672_v57, 0.0 }
 0x206   : > { %v1973_v40 = vsel %vm1484_vm7, %v1854_v27, 0.0  ;;  %v2043_v47 = vmul.f32 %v1854_v27, %v1854_v27  ;;  %2148 = vst.msk [vmem:[%s5804_s30 + $0x20] sm:$0xff] %vm1484_vm7, %v1854_v27  ;;  %v3673_v20 = vpop.f32.mrb[6].mxu0 }
 0x207   : > { %v1974_v15 = vadd.f32 %v1973_v40, %v1972_v1  ;;  %2151 = vst.msk [vmem:[%s5804_s30 + $0x38] sm:$0xff] %vm1484_vm7, %v3673_v20  ;;  %v1857_v4 = vpop.f32.mrb[7].mxu0  ;;  %v2046_v60 = vmul.f32 %v3673_v20, %v3673_v20  ;;  %v2082_v7 = vsel %vm1484_vm7, %v2045_v63, 0.0  ;;  %v1979_v48 = vsel %vm1484_vm7, %v3673_v20, 0.0 }
 0x208   : > { %v2078_v49 = vsel %vm1484_vm7, %v2043_v47, 0.0  ;;  %v1975_v11 = vsel %vm1484_vm7, %v1857_v4, 0.0  ;;  %v2044_v24 = vmul.f32 %v1857_v4, %v1857_v4  ;;  %2149 = vst.msk [vmem:[%s5804_s30 + $0x28] sm:$0xff] %vm1484_vm7, %v1857_v4 }
 0x209   : > { %v2079_v0 = vadd.f32 %v2078_v49, %v2077_v46  ;;  %v1976_v39 = vadd.f32 %v1975_v11, %v1974_v15  ;;  %v2084_v55 = vsel %vm1484_vm7, %v2046_v60, 0.0 }
 0x20a   : > { %v2080_v30 = vsel %vm1484_vm7, %v2044_v24, 0.0 }
 0x20b   : > { %v1978_v50 = vadd.f32 %v1977_v10, %v1976_v39  ;;  %v2081_v54 = vadd.f32 %v2080_v30, %v2079_v0 }
 0x20d   : > { %v2083_v31 = vadd.f32 %v2082_v7, %v2081_v54  ;;  %v1980_v59 = vadd.f32 %v1979_v48, %v1978_v50 }
 0x20f   : > { %v2085_v3 = vadd.f32 %v2084_v55, %v2083_v31 }
 0x218   : > { %v3676_v13 = vpop.f32.mrb[8].mxu0 }
 0x219   : > { %2154 = vst.msk [vmem:[%s5804_s30 + $0x50] sm:$0xff] %vm1484_vm7, %v3676_v13  ;;  %v1870_v32 = vpop.f32.mrb[9].mxu0  ;;  %v2049_v23 = vmul.f32 %v3676_v13, %v3676_v13  ;;  %v1985_v22 = vsel %vm1484_vm7, %v3676_v13, 0.0 }
 0x21a   : > { %v1981_v35 = vsel %vm1484_vm7, %v1870_v32, 0.0  ;;  %v2047_v36 = vmul.f32 %v1870_v32, %v1870_v32  ;;  %2152 = vst.msk [vmem:[%s5804_s30 + $0x40] sm:$0xff] %vm1484_vm7, %v1870_v32  ;;  %v3677_v43 = vpop.f32.mrb[10].mxu0 }
 0x21b   : > { %v1982_v25 = vadd.f32 %v1981_v35, %v1980_v59  ;;  %2155 = vst.msk [vmem:[%s5804_s30 + $0x58] sm:$0xff] %vm1484_vm7, %v3677_v43  ;;  %v1873_v9 = vpop.f32.mrb[11].mxu0  ;;  %v2050_v8 = vmul.f32 %v3677_v43, %v3677_v43  ;;  %v2090_v62 = vsel %vm1484_vm7, %v2049_v23, 0.0  ;;  %v1987_v33 = vsel %vm1484_vm7, %v3677_v43, 0.0 }
 0x21c   : > { %v2086_v16 = vsel %vm1484_vm7, %v2047_v36, 0.0  ;;  %v1983_v12 = vsel %vm1484_vm7, %v1873_v9, 0.0  ;;  %v2048_v26 = vmul.f32 %v1873_v9, %v1873_v9  ;;  %2153 = vst.msk [vmem:[%s5804_s30 + $0x48] sm:$0xff] %vm1484_vm7, %v1873_v9 }
 0x21d   : > { %v2087_v5 = vadd.f32 %v2086_v16, %v2085_v3  ;;  %v1984_v51 = vadd.f32 %v1983_v12, %v1982_v25  ;;  %v2092_v19 = vsel %vm1484_vm7, %v2050_v8, 0.0 }
 0x21e   : > { %v2088_v52 = vsel %vm1484_vm7, %v2048_v26, 0.0 }
 0x21f   : > { %v1986_v2 = vadd.f32 %v1985_v22, %v1984_v51  ;;  %v2089_v17 = vadd.f32 %v2088_v52, %v2087_v5 }
 0x221   : > { %v2091_v21 = vadd.f32 %v2090_v62, %v2089_v17  ;;  %v1988_v56 = vadd.f32 %v1987_v33, %v1986_v2 }
 0x223   : > { %v2093_v6 = vadd.f32 %v2092_v19, %v2091_v21 }
 0x230   : > { %v3680_v61 = vpop.f32.mrb[12].mxu0 }
 0x231   : > { %2158 = vst.msk [vmem:[%s5804_s30 + $0x70] sm:$0xff] %vm1484_vm7, %v3680_v61  ;;  %v1886_v34 = vpop.f32.mrb[13].mxu0  ;;  %v2053_v28 = vmul.f32 %v3680_v61, %v3680_v61  ;;  %v1993_v1 = vsel %vm1484_vm7, %v3680_v61, 0.0 }
 0x232   : > { %v1989_v29 = vsel %vm1484_vm7, %v1886_v34, 0.0  ;;  %v2051_v44 = vmul.f32 %v1886_v34, %v1886_v34  ;;  %2156 = vst.msk [vmem:[%s5804_s30 + $0x60] sm:$0xff] %vm1484_vm7, %v1886_v34  ;;  %v3681_v53 = vpop.f32.mrb[14].mxu0 }
 0x233   : > { %v1990_v14 = vadd.f32 %v1989_v29, %v1988_v56  ;;  %2159 = vst.msk [vmem:[%s5804_s30 + $0x78] sm:$0xff] %vm1484_vm7, %v3681_v53  ;;  %v1889_v42 = vpop.f32.mrb[15].mxu0  ;;  %v2054_v38 = vmul.f32 %v3681_v53, %v3681_v53  ;;  %v2098_v40 = vsel %vm1484_vm7, %v2053_v28, 0.0  ;;  %v1995_v47 = vsel %vm1484_vm7, %v3681_v53, 0.0 }
 0x234   : > { %v2094_v18 = vsel %vm1484_vm7, %v2051_v44, 0.0  ;;  %v1991_v37 = vsel %vm1484_vm7, %v1889_v42, 0.0  ;;  %v2052_v41 = vmul.f32 %v1889_v42, %v1889_v42  ;;  %2157 = vst.msk [vmem:[%s5804_s30 + $0x68] sm:$0xff] %vm1484_vm7, %v1889_v42 }
 0x235   : > { %v2095_v45 = vadd.f32 %v2094_v18, %v2093_v6  ;;  %v1992_v58 = vadd.f32 %v1991_v37, %v1990_v14  ;;  %v2100_v4 = vsel %vm1484_vm7, %v2054_v38, 0.0 }
 0x236   : > { %v2096_v46 = vsel %vm1484_vm7, %v2052_v41, 0.0 }
 0x237   : > { %v1994_v57 = vadd.f32 %v1993_v1, %v1992_v58  ;;  %v2097_v27 = vadd.f32 %v2096_v46, %v2095_v45 }
 0x239   : > { %v2099_v20 = vadd.f32 %v2098_v40, %v2097_v27  ;;  %v1996_v15 = vadd.f32 %v1995_v47, %v1994_v57 }
 0x23b   : > { %v2101_v63 = vadd.f32 %v2100_v4, %v2099_v20 }
 0x248   : > { %v3684_v49 = vpop.f32.mrb[0].mxu1 }
 0x249   : > { %2162 = vst.msk [vmem:[%s5804_s30 + $0x90] sm:$0xff] %vm1484_vm7, %v3684_v49  ;;  %v1902_v11 = vpop.f32.mrb[1].mxu1  ;;  %v2057_v30 = vmul.f32 %v3684_v49, %v3684_v49  ;;  %v2001_v59 = vsel %vm1484_vm7, %v3684_v49, 0.0 }
 0x24a   : > { %v1997_v24 = vsel %vm1484_vm7, %v1902_v11, 0.0  ;;  %v2055_v0 = vmul.f32 %v1902_v11, %v1902_v11  ;;  %2160 = vst.msk [vmem:[%s5804_s30 + $0x80] sm:$0xff] %vm1484_vm7, %v1902_v11  ;;  %v3685_v39 = vpop.f32.mrb[2].mxu1 }
 0x24b   : > { %v1998_v10 = vadd.f32 %v1997_v24, %v1996_v15  ;;  %2163 = vst.msk [vmem:[%s5804_s30 + $0x98] sm:$0xff] %vm1484_vm7, %v3685_v39  ;;  %v1905_v60 = vpop.f32.mrb[3].mxu1  ;;  %v2058_v55 = vmul.f32 %v3685_v39, %v3685_v39  ;;  %v2106_v35 = vsel %vm1484_vm7, %v2057_v30, 0.0  ;;  %v2003_v36 = vsel %vm1484_vm7, %v3685_v39, 0.0 }
 0x24c   : > { %v2102_v50 = vsel %vm1484_vm7, %v2055_v0, 0.0  ;;  %v1999_v54 = vsel %vm1484_vm7, %v1905_v60, 0.0  ;;  %v2056_v7 = vmul.f32 %v1905_v60, %v1905_v60  ;;  %2161 = vst.msk [vmem:[%s5804_s30 + $0x88] sm:$0xff] %vm1484_vm7, %v1905_v60 }
 0x24d   : > { %v2103_v48 = vadd.f32 %v2102_v50, %v2101_v63  ;;  %v2000_v31 = vadd.f32 %v1999_v54, %v1998_v10  ;;  %v2108_v9 = vsel %vm1484_vm7, %v2058_v55, 0.0 }
 0x24e   : > { %v2104_v3 = vsel %vm1484_vm7, %v2056_v7, 0.0 }
 0x24f   : > { %v2002_v13 = vadd.f32 %v2001_v59, %v2000_v31  ;;  %v2105_v32 = vadd.f32 %v2104_v3, %v2103_v48 }
 0x251   : > { %v2107_v43 = vadd.f32 %v2106_v35, %v2105_v32  ;;  %v2004_v25 = vadd.f32 %v2003_v36, %v2002_v13 }
 0x253   : > { %v2109_v23 = vadd.f32 %v2108_v9, %v2107_v43 }
 0x260   : > { %v3688_v16 = vpop.f32.mrb[4].mxu1 }
 0x261   : > { %2166 = vst.msk [vmem:[%s5804_s30 + $0xb0] sm:$0xff] %vm1484_vm7, %v3688_v16  ;;  %v1918_v12 = vpop.f32.mrb[5].mxu1  ;;  %v2061_v52 = vmul.f32 %v3688_v16, %v3688_v16  ;;  %v2009_v56 = vsel %vm1484_vm7, %v3688_v16, 0.0 }
 0x262   : > { %v2005_v26 = vsel %vm1484_vm7, %v1918_v12, 0.0  ;;  %v2059_v5 = vmul.f32 %v1918_v12, %v1918_v12  ;;  %2164 = vst.msk [vmem:[%s5804_s30 + $0xa0] sm:$0xff] %vm1484_vm7, %v1918_v12  ;;  %v3689_v51 = vpop.f32.mrb[6].mxu1 }
 0x263   : > { %v2006_v22 = vadd.f32 %v2005_v26, %v2004_v25  ;;  %2167 = vst.msk [vmem:[%s5804_s30 + $0xb8] sm:$0xff] %vm1484_vm7, %v3689_v51  ;;  %v1921_v8 = vpop.f32.mrb[7].mxu1  ;;  %v2062_v19 = vmul.f32 %v3689_v51, %v3689_v51  ;;  %v2114_v29 = vsel %vm1484_vm7, %v2061_v52, 0.0  ;;  %v2011_v44 = vsel %vm1484_vm7, %v3689_v51, 0.0 }
 0x264   : > { %v2110_v2 = vsel %vm1484_vm7, %v2059_v5, 0.0  ;;  %v2007_v17 = vsel %vm1484_vm7, %v1921_v8, 0.0  ;;  %v2060_v62 = vmul.f32 %v1921_v8, %v1921_v8  ;;  %2165 = vst.msk [vmem:[%s5804_s30 + $0xa8] sm:$0xff] %vm1484_vm7, %v1921_v8 }
 0x265   : > { %v2111_v33 = vadd.f32 %v2110_v2, %v2109_v23  ;;  %v2008_v21 = vadd.f32 %v2007_v17, %v2006_v22  ;;  %v2116_v42 = vsel %vm1484_vm7, %v2062_v19, 0.0 }
 0x266   : > { %v2112_v6 = vsel %vm1484_vm7, %v2060_v62, 0.0 }
 0x267   : > { %v2010_v61 = vadd.f32 %v2009_v56, %v2008_v21  ;;  %v2113_v34 = vadd.f32 %v2112_v6, %v2111_v33 }
 0x269   : > { %v2115_v53 = vadd.f32 %v2114_v29, %v2113_v34  ;;  %v2012_v14 = vadd.f32 %v2011_v44, %v2010_v61  ;;  %v1965_v34 = vld [vmem:[#allocation3] sm:$0x1] }
 0x26b   : > { %v2117_v28 = vadd.f32 %v2116_v42, %v2115_v53  ;;  %v2038_v53 = vld [vmem:[#allocation4] sm:$0x1] }
 0x278   : > { %v3692_v18 = vpop.f32.mrb[8].mxu1 }
 0x279   : > { %2170 = vst.msk [vmem:[%s5804_s30 + $0xd0] sm:$0xff] %vm1484_vm7, %v3692_v18  ;;  %v1934_v37 = vpop.f32.mrb[9].mxu1  ;;  %v2065_v46 = vmul.f32 %v3692_v18, %v3692_v18  ;;  %v2017_v15 = vsel %vm1484_vm7, %v3692_v18, 0.0 }
 0x27a   : > { %v2013_v41 = vsel %vm1484_vm7, %v1934_v37, 0.0  ;;  %v2063_v45 = vmul.f32 %v1934_v37, %v1934_v37  ;;  %2168 = vst.msk [vmem:[%s5804_s30 + $0xc0] sm:$0xff] %vm1484_vm7, %v1934_v37  ;;  %v3693_v58 = vpop.f32.mrb[10].mxu1 }
 0x27b   : > { %v2014_v1 = vadd.f32 %v2013_v41, %v2012_v14  ;;  %2171 = vst.msk [vmem:[%s5804_s30 + $0xd8] sm:$0xff] %vm1484_vm7, %v3693_v58  ;;  %v1937_v38 = vpop.f32.mrb[11].mxu1  ;;  %v2066_v4 = vmul.f32 %v3693_v58, %v3693_v58  ;;  %v2122_v24 = vsel %vm1484_vm7, %v2065_v46, 0.0  ;;  %v2019_v0 = vsel %vm1484_vm7, %v3693_v58, 0.0 }
 0x27c   : > { %v2118_v57 = vsel %vm1484_vm7, %v2063_v45, 0.0  ;;  %v2015_v27 = vsel %vm1484_vm7, %v1937_v38, 0.0  ;;  %v2064_v40 = vmul.f32 %v1937_v38, %v1937_v38  ;;  %2169 = vst.msk [vmem:[%s5804_s30 + $0xc8] sm:$0xff] %vm1484_vm7, %v1937_v38 }
 0x27d   : > { %v2119_v47 = vadd.f32 %v2118_v57, %v2117_v28  ;;  %v2016_v20 = vadd.f32 %v2015_v27, %v2014_v1  ;;  %v2124_v60 = vsel %vm1484_vm7, %v2066_v4, 0.0 }
 0x27e   : > { %v2120_v63 = vsel %vm1484_vm7, %v2064_v40, 0.0 }
 0x27f   : > { %v2018_v49 = vadd.f32 %v2017_v15, %v2016_v20  ;;  %v2121_v11 = vadd.f32 %v2120_v63, %v2119_v47 }
 0x281   : > { %v2123_v39 = vadd.f32 %v2122_v24, %v2121_v11  ;;  %v2020_v10 = vadd.f32 %v2019_v0, %v2018_v49 }
 0x283   : > { %v2125_v30 = vadd.f32 %v2124_v60, %v2123_v39 }
 0x290   : > { %v3696_v50 = vpop.f32.mrb[12].mxu1 }
 0x291   : > { %2174 = vst.msk [vmem:[%s5804_s30 + $0xf0] sm:$0xff] %vm1484_vm7, %v3696_v50  ;;  %v1950_v54 = vpop.f32.mrb[13].mxu1  ;;  %v2069_v3 = vmul.f32 %v3696_v50, %v3696_v50  ;;  %v2025_v25 = vsel %vm1484_vm7, %v3696_v50, 0.0 }
 0x292   : > { %v2021_v7 = vsel %vm1484_vm7, %v1950_v54, 0.0  ;;  %v2067_v48 = vmul.f32 %v1950_v54, %v1950_v54  ;;  %2172 = vst.msk [vmem:[%s5804_s30 + $0xe0] sm:$0xff] %vm1484_vm7, %v1950_v54  ;;  %v3697_v31 = vpop.f32.mrb[14].mxu1 }
 0x293   : > { %v2022_v59 = vadd.f32 %v2021_v7, %v2020_v10  ;;  %2175 = vst.msk [vmem:[%s5804_s30 + $0xf8] sm:$0xff] %vm1484_vm7, %v3697_v31  ;;  %v1953_v55 = vpop.f32.mrb[15].mxu1  ;;  %v2070_v9 = vmul.f32 %v3697_v31, %v3697_v31  ;;  %v2130_v26 = vsel %vm1484_vm7, %v2069_v3, 0.0  ;;  %v2027_v5 = vsel %vm1484_vm7, %v3697_v31, 0.0 }
 0x294   : > { %v2126_v13 = vsel %vm1484_vm7, %v2067_v48, 0.0  ;;  %v2023_v32 = vsel %vm1484_vm7, %v1953_v55, 0.0  ;;  %v2068_v35 = vmul.f32 %v1953_v55, %v1953_v55  ;;  %2173 = vst.msk [vmem:[%s5804_s30 + $0xe8] sm:$0xff] %vm1484_vm7, %v1953_v55 }
 0x295   : > { %v2127_v36 = vadd.f32 %v2126_v13, %v2125_v30  ;;  %v2024_v43 = vadd.f32 %v2023_v32, %v2022_v59  ;;  %v2132_v8 = vsel %vm1484_vm7, %v2070_v9, 0.0 }
 0x296   : > { %v2128_v23 = vsel %vm1484_vm7, %v2068_v35, 0.0 }
 0x297   : > { %v2026_v16 = vadd.f32 %v2025_v25, %v2024_v43  ;;  %v2129_v12 = vadd.f32 %v2128_v23, %v2127_v36 }
 0x299   : > { %v2028_v51 = vadd.f32 %v2027_v5, %v2026_v16  ;;  %v2131_v22 = vadd.f32 %v2130_v26, %v2129_v12 }
 0x29b   : > { %v2029_v52 = vrot.slane %v2028_v51, 4  ;;  %v2133_v2 = vadd.f32 %v2132_v8, %v2131_v22 }
 0x29d   : > { %v2030_v17 = vadd.f32 %v2029_v52, %v2028_v51  ;;  %v2134_v62 = vrot.slane %v2133_v2, 4 }
 0x29f   : > { %v2031_v33 = vrot.slane %v2030_v17, 2  ;;  %v2135_v21 = vadd.f32 %v2134_v62, %v2133_v2 }
 0x2a1   : > { %v2032_v56 = vadd.f32 %v2031_v33, %v2030_v17  ;;  %v2136_v19 = vrot.slane %v2135_v21, 2 }
 0x2a3   : > { %v2033_v6 = vrot.slane %v2032_v56, 1  ;;  %v2137_v61 = vadd.f32 %v2136_v19, %v2135_v21 }
 0x2a5   : > { %v2034_v29 = vadd.f32 %v2033_v6, %v2032_v56  ;;  %v2138_v44 = vrot.slane %v2137_v61, 1 }
 0x2a7   : > { %v2035_v14 = vadd.f32 %v2034_v29, %v1965_v34  ;;  %v2139_v42 = vadd.f32 %v2138_v44, %v2137_v61 }
 0x2a9   : > { %2037 = vst.msk [vmem:[#allocation3] sm:$0x1] %vm2036_vm15, %v2035_v14  ;;  %v2140_v28 = vadd.f32 %v2139_v42, %v2038_v53 }
 0x2ab   : > { %2141 = vst.msk [vmem:[#allocation4] sm:$0x1] %vm2036_vm15, %v2140_v28 }
 0x2ac PF: > { %p2176_p11 = scmp.eq.s32.totalorder %s4464_s16, 1 }
 0x2ae   : > { %p2177_p12 = pnand %p2176_p11, %p229_p7 }
 0x2af   : > { %v2188_v57 = vld [vmem:[%s6416_s2] sm:$0x1] (!%p2177_p12)  ;;  %vm2192_vm0 = vcmask (!%p2177_p12), 57344  }
 0x2b0   : > { %2180 = sbr.rel (%p2177_p12) target bundleno = 717 (0x2cd), region = 48  ;;  %v2181_v18 = vld [vmem:[#allocation3] sm:$0x1] (!%p2177_p12)  ;;  %v2194_v47 = vld [vmem:[%s6417_s3] sm:$0x1] (!%p2177_p12) }
 0x2b1   : > { %v2182_v41 = vmul.f32 (!%p2177_p12), 0.001953125, %v2181_v18 }
 0x2b2   : > { %v2183_v37 = vld [vmem:[#allocation4] sm:$0x1] (!%p2177_p12) }
 0x2b3   : > { %v2184_v45 = vmul.f32 (!%p2177_p12), 0.001953125, %v2183_v37  ;;  %v2185_v58 = vmul.f32 (!%p2177_p12), %v2182_v41, %v2182_v41 }
 0x2b5   : > { %v2186_v1 = vsub.f32 (!%p2177_p12), %v2184_v45, %v2185_v58 }
 0x2b7   : > { %v2187_v38 = vmax.f32 %v2186_v1, 0.0 }
 0x2b9   : > { %v2189_v46 = vadd.f32 1e-05, %v2187_v38 }
 0x2bb   : > { %4436 = vrsqrt.f32 %v2189_v46 }
 0x2c5   : > { %v4437_v27 = vpop.eup %4436 }
 0x2c6   : > { %v2191_v40 = vmul.f32 %v4437_v27, %v2188_v57 }
 0x2c8   : > { %2193 = vst.msk [vmem:[#allocation5] sm:$0x1] %vm2192_vm0, %v2191_v40  ;;  %v2195_v20 = vmul.f32 %v2191_v40, %v2182_v41 }
 0x2ca   : > { %v2196_v15 = vsub.f32 %v2194_v47, %v2195_v20 }
 0x2cc   : > { %2197 = vst.msk [vmem:[#allocation6] sm:$0x1] %vm2192_vm0, %v2196_v15 }
 0x2cd PF: > { %p3491_p13 = scmp.ne.s32.totalorder %s4464_s16, 1 }
 0x2ce   : > { %s3492_s9 = sshll.u32 (!%p3491_p13), %s4460_s15, 8  ;;  %v2381_v63 = vlaneseq (!%p3491_p13)  ;;  %v4487_v39 = vmov (!%p3491_p13), 1983009808   ;;  %vm3009_vm1 = vcmask (!%p3491_p13), 1041409   ;;  %vm3011_vm2 = vcmask (!%p3491_p13), 1042434   ;;  %s4488_s15 = smov (!%p3491_p13), 8  }
 0x2cf   : > { %2200 = sbr.rel (%p3491_p13) target bundleno = 947 (0x3b3), region = 52  ;;  %v5945_v4 = vld [vmem:[#allocation5] ss:$0 sm:$0xff] (!%p3491_p13)  ;;  %s5949_s10 = scalar_lea.vmem (!%p3491_p13), [#allocation7], %s3492_s9  ;;  %v5954_v10 = vunpack.c.l.s4 (!%p3491_p13), %v4487_v39  ;;  %vm3013_vm3 = vcmask (!%p3491_p13), 1043459   ;;  %vm3015_vm4 = vcmask (!%p3491_p13), 1044484  }
 0x2d0   : > { %v2203_v11 = vld [vmem:[%s5949_s10] sm:$0xff] (!%p3491_p13)  ;;  %v2205_v24 = vld [vmem:[%s5949_s10 + $0x10] sm:$0xff] (!%p3491_p13)  ;;  %v5962_v31 = vshrl.u32 (!%p3491_p13), %v2381_v63, 7  ;;  %vm3017_vm5 = vcmask (!%p3491_p13), 1045509   ;;  %vm3019_vm6 = vcmask (!%p3491_p13), 1046534   ;;  %vm3021_vm7 = vcmask (!%p3491_p13), 1047559  }
 0x2d1   : > { %v2207_v0 = vld [vmem:[%s5949_s10 + $0x20] sm:$0xff] (!%p3491_p13)  ;;  %v2209_v60 = vld [vmem:[%s5949_s10 + $0x30] sm:$0xff] (!%p3491_p13)  ;;  %v2242_v54 = vmul.f32 (!%p3491_p13), %v5945_v4, %v2203_v11  ;;  %v2244_v7 = vmul.f32 (!%p3491_p13), %v5945_v4, %v2205_v24  ;;  %v2380_v36 = vunpack.c.0.s8 (!%p3491_p13), %v5954_v10  ;;  %v2204_v10 = vld [vmem:[%s5949_s10 + $0x8] sm:$0xff] (!%p3491_p13)  ;;  %s4489_s16 = smov (!%p3491_p13), 32   ;;  %s4490_s11 = smov (!%p3491_p13), 16   ;;  %vm3374_vm8 = vcmask (!%p3491_p13), 64512  }
 0x2d2   : > { %v2211_v30 = vld [vmem:[%s5949_s10 + $0x40] sm:$0xff] (!%p3491_p13)  ;;  %v2213_v50 = vld [vmem:[%s5949_s10 + $0x50] sm:$0xff] (!%p3491_p13)  ;;  %v2246_v48 = vmul.f32 (!%p3491_p13), %v5945_v4, %v2207_v0  ;;  %v2248_v13 = vmul.f32 (!%p3491_p13), %v5945_v4, %v2209_v60  ;;  %s4491_s12 = smov (!%p3491_p13), 24   ;;  %s4492_s13 = smov (!%p3491_p13), 40   ;;  %vm3376_vm9 = vcmask (!%p3491_p13), 130048   ;;  %vm3378_vm10 = vcmask (!%p3491_p13), 195584  }
 0x2d3   : > { %v5947_v49 = vld [vmem:[#allocation6] ss:$0 sm:$0xff] (!%p3491_p13)  ;;  %v2215_v59 = vld [vmem:[%s5949_s10 + $0x60] sm:$0xff] (!%p3491_p13)  ;;  %v2250_v32 = vmul.f32 (!%p3491_p13), %v5945_v4, %v2211_v30  ;;  %v2252_v35 = vmul.f32 (!%p3491_p13), %v5945_v4, %v2213_v50  ;;  %s4493_s14 = smov (!%p3491_p13), 48   ;;  %s4494_s22 = smov (!%p3491_p13), 56   ;;  %vm3380_vm11 = vcmask (!%p3491_p13), 261120  }
 0x2d4   : > { %v2217_v55 = vld [vmem:[%s5949_s10 + $0x70] sm:$0xff] (!%p3491_p13)  ;;  %v2219_v3 = vld [vmem:[%s5949_s10 + $0x80] sm:$0xff] (!%p3491_p13)  ;;  %v2254_v23 = vmul.f32 (!%p3491_p13), %v5945_v4, %v2215_v59  ;;  %v2281_v26 = vadd.f32 (!%p3491_p13), %v5947_v49, %v2242_v54  ;;  %v2283_v17 = vadd.f32 (!%p3491_p13), %v5947_v49, %v2244_v7  ;;  %v2285_v19 = vadd.f32 (!%p3491_p13), %v5947_v49, %v2246_v48  ;;  %v2206_v7 = vld [vmem:[%s5949_s10 + $0x18] sm:$0xff] (!%p3491_p13) }
 0x2d5   : > { %v2221_v43 = vld [vmem:[%s5949_s10 + $0x90] sm:$0xff] (!%p3491_p13)  ;;  %v2223_v25 = vld [vmem:[%s5949_s10 + $0xa0] sm:$0xff] (!%p3491_p13)  ;;  %v2256_v16 = vmul.f32 (!%p3491_p13), %v5945_v4, %v2217_v55  ;;  %v2258_v12 = vmul.f32 (!%p3491_p13), %v5945_v4, %v2219_v3  ;;  %v2287_v61 = vadd.f32 (!%p3491_p13), %v5947_v49, %v2248_v13  ;;  %v2289_v34 = vadd.f32 (!%p3491_p13), %v5947_v49, %v2250_v32  ;;  %v2208_v48 = vld [vmem:[%s5949_s10 + $0x28] sm:$0xff] (!%p3491_p13) }
 0x2d6   : > { %v2225_v9 = vld [vmem:[%s5949_s10 + $0xb0] sm:$0xff]  ;;  %v2227_v5 = vld [vmem:[%s5949_s10 + $0xc0] sm:$0xff]  ;;  %v2260_v8 = vmul.f32 %v5945_v4, %v2221_v43  ;;  %v2262_v52 = vmul.f32 %v5945_v4, %v2223_v25  ;;  %v2291_v29 = vadd.f32 %v5947_v49, %v2252_v35  ;;  %v2293_v44 = vadd.f32 %v5947_v49, %v2254_v23  ;;  %v2210_v59 = vld [vmem:[%s5949_s10 + $0x38] sm:$0xff] }
 0x2d7   : > { %v2229_v51 = vld [vmem:[%s5949_s10 + $0xd0] sm:$0xff]  ;;  %v2231_v22 = vld [vmem:[%s5949_s10 + $0xe0] sm:$0xff]  ;;  %v2264_v2 = vmul.f32 %v5945_v4, %v2225_v9  ;;  %v2266_v33 = vmul.f32 %v5945_v4, %v2227_v5  ;;  %v2295_v53 = vadd.f32 %v5947_v49, %v2256_v16  ;;  %v2297_v14 = vadd.f32 %v5947_v49, %v2258_v12 }
 0x2d8   : > { %v2233_v62 = vld [vmem:[%s5949_s10 + $0xf0] sm:$0xff]  ;;  %v2268_v21 = vmul.f32 %v5945_v4, %v2229_v51  ;;  %v2270_v56 = vmul.f32 %v5945_v4, %v2231_v22  ;;  %v2299_v42 = vadd.f32 %v5947_v49, %v2260_v8  ;;  %v2301_v28 = vadd.f32 %v5947_v49, %v2262_v52 }
 0x2d9   : > { %v2272_v6 = vmul.f32 %v5945_v4, %v2233_v62  ;;  %v2303_v18 = vadd.f32 %v5947_v49, %v2264_v2  ;;  %v2305_v37 = vadd.f32 %v5947_v49, %v2266_v33  ;;  %v2313_v1 = vmax.f32 %v2281_v26, 0.0 }
 0x2da   : > { %v2307_v41 = vadd.f32 %v5947_v49, %v2268_v21  ;;  %v2309_v45 = vadd.f32 %v5947_v49, %v2270_v56  ;;  %v2315_v38 = vmax.f32 %v2283_v17, 0.0  ;;  %v2317_v46 = vmax.f32 %v2285_v19, 0.0 }
 0x2db   : > { %v2311_v58 = vadd.f32 %v5947_v49, %v2272_v6  ;;  %v2319_v57 = vmax.f32 %v2287_v61, 0.0  ;;  %v2321_v27 = vmax.f32 %v2289_v34, 0.0  ;;  %v2323_v40 = vmax.f32 %v2291_v29, 0.0 }
 0x2dc   : > { %v2325_v47 = vmax.f32 %v2293_v44, 0.0  ;;  %v2327_v20 = vmax.f32 %v2295_v53, 0.0  ;;  %v2329_v15 = vmax.f32 %v2297_v14, 0.0  ;;  %v2331_v63 = vmax.f32 %v2299_v42, 0.0 }
 0x2dd   : > { %v2333_v11 = vmax.f32 %v2301_v28, 0.0  ;;  %v2335_v24 = vmax.f32 %v2303_v18, 0.0  ;;  %v2337_v0 = vmax.f32 %v2305_v37, 0.0  ;;  %v2339_v39 = vmax.f32 %v2307_v41, 0.0 }
 0x2de   : > { %v2341_v60 = vmax.f32 %v2309_v45, 0.0  ;;  %v2343_v30 = vmax.f32 %v2311_v58, 0.0  ;;  %v6005_v50 = vmax.f32 %v2313_v1, %v2315_v38  ;;  %v6007_v54 = vmax.f32 %v2317_v46, %v2319_v57 }
 0x2df   : > { %v6012_v55 = vmax.f32 %v2321_v27, %v2323_v40  ;;  %v6014_v3 = vmax.f32 %v2325_v47, %v2327_v20  ;;  %v6016_v13 = vmax.f32 %v2329_v15, %v2331_v63  ;;  %v6018_v32 = vmax.f32 %v2333_v11, %v2335_v24  ;;  %v2212_v27 = vld [vmem:[%s5949_s10 + $0x48] sm:$0xff]  ;;  %v2214_v40 = vld [vmem:[%s5949_s10 + $0x58] sm:$0xff] }
 0x2e0   : > { %v6020_v35 = vmax.f32 %v2337_v0, %v2339_v39  ;;  %v6022_v43 = vmax.f32 %v2341_v60, %v2343_v30  ;;  %v6025_v25 = vsub.s32 %v2380_v36, %v5962_v31  ;;  %v6028_v9 = vsub.s32 0, %v5962_v31  ;;  %v2216_v47 = vld [vmem:[%s5949_s10 + $0x68] sm:$0xff]  ;;  %v2218_v24 = vld [vmem:[%s5949_s10 + $0x78] sm:$0xff] }
 0x2e1   : > { %v6031_v23 = vmul.f32 %v5945_v4, %v2204_v10  ;;  %v6034_v16 = vmul.f32 %v5945_v4, %v2206_v7  ;;  %v6037_v12 = vmul.f32 %v5945_v4, %v2208_v48  ;;  %v6040_v26 = vmul.f32 %v5945_v4, %v2210_v59  ;;  %v2220_v0 = vld [vmem:[%s5949_s10 + $0x88] sm:$0xff]  ;;  %v2222_v39 = vld [vmem:[%s5949_s10 + $0x98] sm:$0xff] }
 0x2e2   : > { %v6044_v36 = vrot.slane %v6005_v50, %v6025_v25  ;;  %v6048_v31 = vrot.slane %v6007_v54, %v6025_v25  ;;  %v6052_v5 = vrot.slane %v6012_v55, %v6025_v25  ;;  %v6056_v51 = vrot.slane %v6014_v3, %v6025_v25  ;;  %v2224_v48 = vld [vmem:[%s5949_s10 + $0xa8] sm:$0xff]  ;;  %v2226_v59 = vld [vmem:[%s5949_s10 + $0xb8] sm:$0xff] }
 0x2e3   : > { %v6060_v22 = vrot.slane %v6016_v13, %v6025_v25  ;;  %v6064_v8 = vrot.slane %v6018_v32, %v6025_v25  ;;  %v6068_v52 = vrot.slane %v6020_v35, %v6025_v25  ;;  %v6072_v2 = vrot.slane %v6022_v43, %v6025_v25 }
 0x2e4   : > { %v2392_v17 = vcombine.high %v6044_v36, %v6044_v36  ;;  %v2426_v62 = vcombine.high %v6048_v31, %v6048_v31  ;;  %v2460_v33 = vcombine.high %v6052_v5, %v6052_v5  ;;  %v2494_v21 = vcombine.high %v6056_v51, %v6056_v51 }
 0x2e5   : > { %v2528_v56 = vcombine.high %v6060_v22, %v6060_v22  ;;  %v2562_v19 = vcombine.high %v6064_v8, %v6064_v8  ;;  %v2596_v6 = vcombine.high %v6068_v52, %v6068_v52  ;;  %v2630_v61 = vcombine.high %v6072_v2, %v6072_v2 }
 0x2e6   : > { %v3496_v34 = vrot.slane %v2392_v17, 9  ;;  %v3504_v29 = vrot.slane %v2426_v62, 9  ;;  %v3512_v44 = vrot.slane %v2460_v33, 9  ;;  %v3520_v53 = vrot.slane %v2494_v21, 9 }
 0x2e7   : > { %v3528_v14 = vrot.slane %v2528_v56, 9  ;;  %v3536_v42 = vrot.slane %v2562_v19, 9  ;;  %v3544_v28 = vrot.slane %v2596_v6, 9  ;;  %v3552_v18 = vrot.slane %v2630_v61, 9 }
 0x2e8   : > { %v2906_v37 = vmax.f32 %v2392_v17, %v3496_v34  ;;  %v2914_v41 = vmax.f32 %v2426_v62, %v3504_v29  ;;  %v2922_v45 = vmax.f32 %v2460_v33, %v3512_v44  ;;  %v2930_v58 = vmax.f32 %v2494_v21, %v3520_v53  ;;  %v2228_v17 = vld [vmem:[%s5949_s10 + $0xc8] sm:$0xff]  ;;  %v2230_v33 = vld [vmem:[%s5949_s10 + $0xd8] sm:$0xff] }
 0x2e9   : > { %v2938_v1 = vmax.f32 %v2528_v56, %v3528_v14  ;;  %v2946_v38 = vmax.f32 %v2562_v19, %v3536_v42  ;;  %v2954_v46 = vmax.f32 %v2596_v6, %v3544_v28  ;;  %v2962_v57 = vmax.f32 %v2630_v61, %v3552_v18  ;;  %v2232_v21 = vld [vmem:[%s5949_s10 + $0xe8] sm:$0xff]  ;;  %v2234_v56 = vld [vmem:[%s5949_s10 + $0xf8] sm:$0xff] }
 0x2ea   : > { %v3035_v20 = vrot.slane %v2906_v37, %v6028_v9  ;;  %v3039_v15 = vrot.slane %v2914_v41, %v6028_v9  ;;  %v3043_v63 = vrot.slane %v2922_v45, %v6028_v9  ;;  %v3047_v11 = vrot.slane %v2930_v58, %v6028_v9 }
 0x2eb   : > { %v3051_v10 = vrot.slane %v2938_v1, %v6028_v9  ;;  %v3055_v60 = vrot.slane %v2946_v38, %v6028_v9  ;;  %v3059_v30 = vrot.slane %v2954_v46, %v6028_v9  ;;  %v3063_v7 = vrot.slane %v2962_v57, %v6028_v9 }
 0x2ec   : > { %v3064_v62 = vsel %vm3009_vm1, %v3039_v15, %v3035_v20  ;;  %v2251_v19 = vmul.f32 %v5945_v4, %v2212_v27  ;;  %v2253_v6 = vmul.f32 %v5945_v4, %v2214_v40  ;;  %v2255_v61 = vmul.f32 %v5945_v4, %v2216_v47 }
 0x2ed   : > { %v3065_v34 = vsel %vm3011_vm2, %v3043_v63, %v3064_v62  ;;  %v2257_v29 = vmul.f32 %v5945_v4, %v2218_v24  ;;  %v2259_v44 = vmul.f32 %v5945_v4, %v2220_v0  ;;  %v2261_v53 = vmul.f32 %v5945_v4, %v2222_v39 }
 0x2ee   : > { %v3066_v14 = vsel %vm3013_vm3, %v3047_v11, %v3065_v34  ;;  %v2263_v42 = vmul.f32 %v5945_v4, %v2224_v48  ;;  %v2265_v28 = vmul.f32 %v5945_v4, %v2226_v59  ;;  %v2267_v18 = vmul.f32 %v5945_v4, %v2228_v17 }
 0x2ef   : > { %v3067_v37 = vsel %vm3015_vm4, %v3051_v10, %v3066_v14  ;;  %v2269_v41 = vmul.f32 %v5945_v4, %v2230_v33  ;;  %v2271_v45 = vmul.f32 %v5945_v4, %v2232_v21  ;;  %v2273_v58 = vmul.f32 %v5945_v4, %v2234_v56 }
 0x2f0   : > { %v3068_v1 = vsel %vm3017_vm5, %v3055_v60, %v3067_v37  ;;  %v2282_v38 = vadd.f32 %v5947_v49, %v6031_v23  ;;  %v2284_v46 = vadd.f32 %v5947_v49, %v6034_v16  ;;  %v2286_v57 = vadd.f32 %v5947_v49, %v6037_v12 }
 0x2f1   : > { %v3069_v27 = vsel %vm3019_vm6, %v3059_v30, %v3068_v1  ;;  %v2288_v40 = vadd.f32 %v5947_v49, %v6040_v26  ;;  %v2290_v47 = vadd.f32 %v5947_v49, %v2251_v19  ;;  %v2292_v4 = vadd.f32 %v5947_v49, %v2253_v6 }
 0x2f2   : > { %v3070_v20 = vsel %vm3021_vm7, %v3063_v7, %v3069_v27  ;;  %v2294_v15 = vadd.f32 %v5947_v49, %v2255_v61  ;;  %v2296_v23 = vadd.f32 %v5947_v49, %v2257_v29  ;;  %v2298_v16 = vadd.f32 %v5947_v49, %v2259_v44 }
 0x2f3   : > { %3071 = vrot.lane.b32.xlu0 %v3070_v20, %s4488_s15  ;;  %v2300_v12 = vadd.f32 %v5947_v49, %v2261_v53  ;;  %v2302_v63 = vadd.f32 %v5947_v49, %v2263_v42  ;;  %v2304_v26 = vadd.f32 %v5947_v49, %v2265_v28  ;;  %v2306_v11 = vadd.f32 %v5947_v49, %v2267_v18 }
 0x2f4   : > { %v2308_v24 = vadd.f32 %v5947_v49, %v2269_v41  ;;  %v2310_v0 = vadd.f32 %v5947_v49, %v2271_v45  ;;  %v2312_v39 = vadd.f32 %v5947_v49, %v2273_v58  ;;  %v2314_v10 = vmax.f32 %v2282_v38, 0.0 }
 0x2f5   : > { %v2316_v60 = vmax.f32 %v2284_v46, 0.0  ;;  %v2318_v30 = vmax.f32 %v2286_v57, 0.0  ;;  %v2320_v7 = vmax.f32 %v2288_v40, 0.0  ;;  %v2322_v48 = vmax.f32 %v2290_v47, 0.0 }
 0x2f6   : > { %v2324_v59 = vmax.f32 %v2292_v4, 0.0  ;;  %v2326_v17 = vmax.f32 %v2294_v15, 0.0  ;;  %v2328_v62 = vmax.f32 %v2296_v23, 0.0  ;;  %v2330_v33 = vmax.f32 %v2298_v16, 0.0 }
 0x2f7   : > { %v2332_v21 = vmax.f32 %v2300_v12, 0.0  ;;  %v2334_v56 = vmax.f32 %v2302_v63, 0.0  ;;  %v2336_v19 = vmax.f32 %v2304_v26, 0.0  ;;  %v2338_v6 = vmax.f32 %v2306_v11, 0.0 }
 0x2f8   : > { %v2340_v61 = vmax.f32 %v2308_v24, 0.0  ;;  %v2342_v34 = vmax.f32 %v2310_v0, 0.0  ;;  %v2344_v29 = vmax.f32 %v2312_v39, 0.0  ;;  %v6149_v44 = vmax.f32 %v2314_v10, %v2316_v60 }
 0x2f9   : > { %v6151_v53 = vmax.f32 %v2318_v30, %v2320_v7  ;;  %v6153_v49 = vmax.f32 %v2322_v48, %v2324_v59  ;;  %v6155_v14 = vmax.f32 %v2326_v17, %v2328_v62  ;;  %v6157_v42 = vmax.f32 %v2330_v33, %v2332_v21 }
 0x2fa   : > { %v6159_v28 = vmax.f32 %v2334_v56, %v2336_v19  ;;  %v6161_v18 = vmax.f32 %v2338_v6, %v2340_v61  ;;  %v6163_v37 = vmax.f32 %v2342_v34, %v2344_v29  ;;  %v6167_v41 = vrot.slane %v6149_v44, %v6025_v25 }
 0x2fb   : > { %v6171_v45 = vrot.slane %v6151_v53, %v6025_v25  ;;  %v6175_v58 = vrot.slane %v6153_v49, %v6025_v25  ;;  %v6179_v1 = vrot.slane %v6155_v14, %v6025_v25  ;;  %v6183_v38 = vrot.slane %v6157_v42, %v6025_v25 }
 0x2fc   : > { %v6187_v46 = vrot.slane %v6159_v28, %v6025_v25  ;;  %v6191_v57 = vrot.slane %v6161_v18, %v6025_v25  ;;  %v6195_v27 = vrot.slane %v6163_v37, %v6025_v25  ;;  %v3499_v40 = vrot.slane %v6167_v41, 9 }
 0x2fd   : > { %v3507_v47 = vrot.slane %v6171_v45, 9  ;;  %v3515_v4 = vrot.slane %v6175_v58, 9  ;;  %v3523_v20 = vrot.slane %v6179_v1, 9  ;;  %v3531_v15 = vrot.slane %v6183_v38, 9 }
 0x2fe   : > { %v3539_v23 = vrot.slane %v6187_v46, 9  ;;  %v3547_v16 = vrot.slane %v6191_v57, 9  ;;  %v3555_v12 = vrot.slane %v6195_v27, 9  ;;  %v2909_v63 = vmax.f32 %v6167_v41, %v3499_v40 }
 0x2ff   : > { %v2917_v26 = vmax.f32 %v6171_v45, %v3507_v47  ;;  %v2925_v11 = vmax.f32 %v6175_v58, %v3515_v4  ;;  %v2933_v24 = vmax.f32 %v6179_v1, %v3523_v20  ;;  %v2941_v0 = vmax.f32 %v6183_v38, %v3531_v15 }
 0x300   : > { %v2949_v39 = vmax.f32 %v6187_v46, %v3539_v23  ;;  %v2957_v10 = vmax.f32 %v6191_v57, %v3547_v16  ;;  %v2965_v60 = vmax.f32 %v6195_v27, %v3555_v12  ;;  %v3185_v30 = vrot.slane %v2909_v63, %v6028_v9 }
 0x301   : > { %v3189_v7 = vrot.slane %v2917_v26, %v6028_v9  ;;  %v3193_v48 = vrot.slane %v2925_v11, %v6028_v9  ;;  %v3197_v59 = vrot.slane %v2933_v24, %v6028_v9  ;;  %v3201_v17 = vrot.slane %v2941_v0, %v6028_v9 }
 0x302   : > { %v3205_v62 = vrot.slane %v2949_v39, %v6028_v9  ;;  %v3209_v33 = vrot.slane %v2957_v10, %v6028_v9  ;;  %v3213_v21 = vrot.slane %v2965_v60, %v6028_v9  ;;  %v2377_v56 = vcombine.high %v6005_v50, %v6005_v50 }
 0x303   : > { %v3214_v19 = vsel %vm3009_vm1, %v3189_v7, %v3185_v30  ;;  %v2411_v6 = vcombine.high %v6007_v54, %v6007_v54  ;;  %v2445_v61 = vcombine.high %v6012_v55, %v6012_v55  ;;  %v2479_v34 = vcombine.high %v6014_v3, %v6014_v3 }
 0x304   : > { %v3215_v29 = vsel %vm3011_vm2, %v3193_v48, %v3214_v19  ;;  %v2391_v40 = vrot.slane %v2377_v56, %v6025_v25  ;;  %v2513_v47 = vcombine.high %v6016_v13, %v6016_v13  ;;  %v2547_v50 = vcombine.high %v6018_v32, %v6018_v32 }
 0x305   : > { %v3216_v4 = vsel %vm3013_vm3, %v3197_v59, %v3215_v29  ;;  %v2425_v54 = vrot.slane %v2411_v6, %v6025_v25  ;;  %v2459_v20 = vrot.slane %v2445_v61, %v6025_v25  ;;  %v2493_v55 = vrot.slane %v2479_v34, %v6025_v25 }
 0x306   : > { %v3217_v3 = vsel %vm3015_vm4, %v3201_v17, %v3216_v4  ;;  %v2527_v15 = vrot.slane %v2513_v47, %v6025_v25  ;;  %v2561_v23 = vrot.slane %v2547_v50, %v6025_v25  ;;  %v2581_v13 = vcombine.high %v6020_v35, %v6020_v35 }
 0x307   : > { %v3218_v16 = vsel %vm3017_vm5, %v3205_v62, %v3217_v3  ;;  %v2615_v32 = vcombine.high %v6022_v43, %v6022_v43  ;;  %v3497_v12 = vrot.slane %v2391_v40, 9  ;;  %v3505_v63 = vrot.slane %v2425_v54, 9 }
 0x308   : > { %v3219_v26 = vsel %vm3019_vm6, %v3209_v33, %v3218_v16  ;;  %v2595_v11 = vrot.slane %v2581_v13, %v6025_v25  ;;  %v3513_v24 = vrot.slane %v2459_v20, 9  ;;  %v3521_v0 = vrot.slane %v2493_v55, 9 }
 0x309   : > { %v3220_v39 = vsel %vm3021_vm7, %v3213_v21, %v3219_v26  ;;  %v2629_v10 = vrot.slane %v2615_v32, %v6025_v25  ;;  %v3529_v60 = vrot.slane %v2527_v15, 9  ;;  %v3537_v30 = vrot.slane %v2561_v23, 9 }
 0x30a   : > { %3221 = vrot.lane.b32.xlu1 %v3220_v39, %s4489_s16  ;;  %v3545_v35 = vrot.slane %v2595_v11, 9  ;;  %v2907_v7 = vmax.f32 %v2391_v40, %v3497_v12  ;;  %v2915_v48 = vmax.f32 %v2425_v54, %v3505_v63  ;;  %v2923_v43 = vmax.f32 %v2459_v20, %v3513_v24 }
 0x30b   : > { %v3553_v59 = vrot.slane %v2629_v10, 9  ;;  %v2931_v17 = vmax.f32 %v2493_v55, %v3521_v0  ;;  %v2939_v62 = vmax.f32 %v2527_v15, %v3529_v60  ;;  %v2947_v33 = vmax.f32 %v2561_v23, %v3537_v30 }
 0x30c   : > { %v2955_v56 = vmax.f32 %v2595_v11, %v3545_v35  ;;  %v3085_v19 = vrot.slane %v2907_v7, %v6028_v9  ;;  %v3089_v6 = vrot.slane %v2915_v48, %v6028_v9  ;;  %v3093_v21 = vrot.slane %v2923_v43, %v6028_v9 }
 0x30d   : > { %v2963_v61 = vmax.f32 %v2629_v10, %v3553_v59  ;;  %v3097_v34 = vrot.slane %v2931_v17, %v6028_v9  ;;  %v3101_v29 = vrot.slane %v2939_v62, %v6028_v9  ;;  %v3105_v47 = vrot.slane %v2947_v33, %v6028_v9 }
 0x30e   : > { %v3109_v50 = vrot.slane %v2955_v56, %v6028_v9  ;;  %v3114_v4 = vsel %vm3009_vm1, %v3089_v6, %v3085_v19  ;;  %v2393_v3 = vcombine.high %v2391_v40, %v2391_v40  ;;  %v2427_v13 = vcombine.high %v2425_v54, %v2425_v54 }
 0x30f   : > { %v3113_v16 = vrot.slane %v2963_v61, %v6028_v9  ;;  %v3115_v32 = vsel %vm3011_vm2, %v3093_v21, %v3114_v4  ;;  %v2461_v12 = vcombine.high %v2459_v20, %v2459_v20  ;;  %v2495_v63 = vcombine.high %v2493_v55, %v2493_v55 }
 0x310   : > { %v3116_v26 = vsel %vm3013_vm3, %v3097_v34, %v3115_v32  ;;  %v2529_v24 = vcombine.high %v2527_v15, %v2527_v15  ;;  %v2563_v0 = vcombine.high %v2561_v23, %v2561_v23  ;;  %v2597_v39 = vcombine.high %v2595_v11, %v2595_v11 }
 0x311   : > { %v3117_v60 = vsel %vm3015_vm4, %v3101_v29, %v3116_v26  ;;  %v2631_v30 = vcombine.high %v2629_v10, %v2629_v10  ;;  %v3498_v35 = vrot.slane %v2393_v3, 9  ;;  %v3506_v7 = vrot.slane %v2427_v13, 9 }
 0x312   : > { %v3118_v48 = vsel %vm3017_vm5, %v3105_v47, %v3117_v60  ;;  %v3514_v40 = vrot.slane %v2461_v12, 9  ;;  %v3522_v54 = vrot.slane %v2495_v63, 9  ;;  %v3530_v43 = vrot.slane %v2529_v24, 9 }
 0x313   : > { %v3119_v59 = vsel %vm3019_vm6, %v3109_v50, %v3118_v48  ;;  %v3538_v17 = vrot.slane %v2563_v0, 9  ;;  %v3546_v20 = vrot.slane %v2597_v39, 9  ;;  %v3554_v55 = vrot.slane %v2631_v30, 9 }
 0x314   : > { %v3120_v62 = vsel %vm3021_vm7, %v3113_v16, %v3119_v59  ;;  %v2908_v15 = vmax.f32 %v2393_v3, %v3498_v35  ;;  %v2916_v23 = vmax.f32 %v2427_v13, %v3506_v7  ;;  %v2924_v11 = vmax.f32 %v2461_v12, %v3514_v40 }
 0x315   : > { %3121 = vrot.lane.b32.xlu0 %v3120_v62, %s4490_s11  ;;  %v2932_v10 = vmax.f32 %v2495_v63, %v3522_v54  ;;  %v2940_v33 = vmax.f32 %v2529_v24, %v3530_v43  ;;  %v2948_v56 = vmax.f32 %v2563_v0, %v3538_v17  ;;  %v2956_v19 = vmax.f32 %v2597_v39, %v3546_v20 }
 0x316   : > { %v2964_v6 = vmax.f32 %v2631_v30, %v3554_v55  ;;  %v3135_v21 = vrot.slane %v2908_v15, %v6028_v9  ;;  %v3139_v61 = vrot.slane %v2916_v23, %v6028_v9  ;;  %v3143_v34 = vrot.slane %v2924_v11, %v6028_v9 }
 0x317   : > { %v3147_v29 = vrot.slane %v2932_v10, %v6028_v9  ;;  %v3151_v47 = vrot.slane %v2940_v33, %v6028_v9  ;;  %v3155_v50 = vrot.slane %v2948_v56, %v6028_v9  ;;  %v3159_v4 = vrot.slane %v2956_v19, %v6028_v9 }
 0x318   : > { %v3163_v3 = vrot.slane %v2964_v6, %v6028_v9  ;;  %v3164_v13 = vsel %vm3009_vm1, %v3139_v61, %v3135_v21  ;;  %v2409_v16 = vcombine.high %v6167_v41, %v6167_v41  ;;  %v2443_v32 = vcombine.high %v6171_v45, %v6171_v45 }
 0x319   : > { %v3165_v12 = vsel %vm3011_vm2, %v3143_v34, %v3164_v13  ;;  %v2477_v63 = vcombine.high %v6175_v58, %v6175_v58  ;;  %v2511_v26 = vcombine.high %v6179_v1, %v6179_v1  ;;  %v2545_v24 = vcombine.high %v6183_v38, %v6183_v38 }
 0x31a   : > { %v3166_v0 = vsel %vm3013_vm3, %v3147_v29, %v3165_v12  ;;  %v2579_v39 = vcombine.high %v6187_v46, %v6187_v46  ;;  %v2613_v41 = vcombine.high %v6191_v57, %v6191_v57  ;;  %v2647_v45 = vcombine.high %v6195_v27, %v6195_v27 }
 0x31b   : > { %v3167_v60 = vsel %vm3015_vm4, %v3151_v47, %v3166_v0  ;;  %v3500_v58 = vrot.slane %v2409_v16, 9  ;;  %v3508_v30 = vrot.slane %v2443_v32, 9  ;;  %v3516_v35 = vrot.slane %v2477_v63, 9 }
 0x31c   : > { %v3168_v1 = vsel %vm3017_vm5, %v3155_v50, %v3167_v60  ;;  %v3524_v7 = vrot.slane %v2511_v26, 9  ;;  %v3532_v38 = vrot.slane %v2545_v24, 9  ;;  %v3540_v48 = vrot.slane %v2579_v39, 9 }
 0x31d   : > { %v3169_v40 = vsel %vm3019_vm6, %v3159_v4, %v3168_v1  ;;  %v3548_v54 = vrot.slane %v2613_v41, 9  ;;  %v3556_v46 = vrot.slane %v2647_v45, 9  ;;  %v2910_v43 = vmax.f32 %v2409_v16, %v3500_v58 }
 0x31e   : > { %v3170_v57 = vsel %vm3021_vm7, %v3163_v3, %v3169_v40  ;;  %v2918_v59 = vmax.f32 %v2443_v32, %v3508_v30  ;;  %v2926_v17 = vmax.f32 %v2477_v63, %v3516_v35  ;;  %v2934_v27 = vmax.f32 %v2511_v26, %v3524_v7 }
 0x31f   : > { %3171 = vrot.lane.b32.xlu1 %v3170_v57, %s4491_s12  ;;  %v2942_v20 = vmax.f32 %v2545_v24, %v3532_v38  ;;  %v2950_v55 = vmax.f32 %v2579_v39, %v3540_v48  ;;  %v2958_v62 = vmax.f32 %v2613_v41, %v3548_v54  ;;  %v2966_v15 = vmax.f32 %v2647_v45, %v3556_v46 }
 0x320   : > { %v3235_v23 = vrot.slane %v2910_v43, %v6028_v9  ;;  %v3239_v11 = vrot.slane %v2918_v59, %v6028_v9  ;;  %v3243_v10 = vrot.slane %v2926_v17, %v6028_v9  ;;  %v3247_v33 = vrot.slane %v2934_v27, %v6028_v9 }
 0x321   : > { %v3251_v56 = vrot.slane %v2942_v20, %v6028_v9  ;;  %v3255_v19 = vrot.slane %v2950_v55, %v6028_v9  ;;  %v3259_v6 = vrot.slane %v2958_v62, %v6028_v9  ;;  %v3263_v21 = vrot.slane %v2966_v15, %v6028_v9 }
 0x322   : > { %v3264_v61 = vsel %vm3009_vm1, %v3239_v11, %v3235_v23  ;;  %v2394_v34 = vcombine.high %v6149_v44, %v6149_v44  ;;  %v2428_v29 = vcombine.high %v6151_v53, %v6151_v53  ;;  %v2462_v47 = vcombine.high %v6153_v49, %v6153_v49 }
 0x323   : > { %v3265_v50 = vsel %vm3011_vm2, %v3243_v10, %v3264_v61  ;;  %v2496_v4 = vcombine.high %v6155_v14, %v6155_v14  ;;  %v2530_v3 = vcombine.high %v6157_v42, %v6157_v42  ;;  %v2564_v13 = vcombine.high %v6159_v28, %v6159_v28 }
 0x324   : > { %v3266_v16 = vsel %vm3013_vm3, %v3247_v33, %v3265_v50  ;;  %v2408_v44 = vrot.slane %v2394_v34, %v6025_v25  ;;  %v2442_v53 = vrot.slane %v2428_v29, %v6025_v25  ;;  %v2476_v32 = vrot.slane %v2462_v47, %v6025_v25 }
 0x325   : > { %v3267_v49 = vsel %vm3015_vm4, %v3251_v56, %v3266_v16  ;;  %v2510_v12 = vrot.slane %v2496_v4, %v6025_v25  ;;  %v2544_v14 = vrot.slane %v2530_v3, %v6025_v25  ;;  %v2578_v63 = vrot.slane %v2564_v13, %v6025_v25 }
 0x326   : > { %v3268_v42 = vsel %vm3017_vm5, %v3255_v19, %v3267_v49  ;;  %v2598_v28 = vcombine.high %v6161_v18, %v6161_v18  ;;  %v2632_v26 = vcombine.high %v6163_v37, %v6163_v37  ;;  %v3501_v24 = vrot.slane %v2408_v44, 9 }
 0x327   : > { %v3269_v0 = vsel %vm3019_vm6, %v3259_v6, %v3268_v42  ;;  %v3509_v39 = vrot.slane %v2442_v53, 9  ;;  %v3517_v41 = vrot.slane %v2476_v32, 9  ;;  %v3525_v45 = vrot.slane %v2510_v12, 9 }
 0x328   : > { %v3270_v60 = vsel %vm3021_vm7, %v3263_v21, %v3269_v0  ;;  %v2612_v58 = vrot.slane %v2598_v28, %v6025_v25  ;;  %v2646_v30 = vrot.slane %v2632_v26, %v6025_v25  ;;  %v3533_v35 = vrot.slane %v2544_v14, 9 }
 0x329   : > { %3271 = vrot.lane.b32.xlu0 %v3270_v60, %s4492_s13  ;;  %v3541_v1 = vrot.slane %v2578_v63, 9  ;;  %v2911_v18 = vmax.f32 %v2408_v44, %v3501_v24  ;;  %v2919_v7 = vmax.f32 %v2442_v53, %v3509_v39  ;;  %v2927_v38 = vmax.f32 %v2476_v32, %v3517_v41 }
 0x32a   : > { %v3549_v37 = vrot.slane %v2612_v58, 9  ;;  %v3557_v48 = vrot.slane %v2646_v30, 9  ;;  %v2935_v40 = vmax.f32 %v2510_v12, %v3525_v45  ;;  %v2943_v54 = vmax.f32 %v2544_v14, %v3533_v35 }
 0x32b   : > { %v2951_v46 = vmax.f32 %v2578_v63, %v3541_v1  ;;  %v3285_v43 = vrot.slane %v2911_v18, %v6028_v9  ;;  %v3289_v57 = vrot.slane %v2919_v7, %v6028_v9  ;;  %v3293_v59 = vrot.slane %v2927_v38, %v6028_v9 }
 0x32c   : > { %v2959_v17 = vmax.f32 %v2612_v58, %v3549_v37  ;;  %v2967_v25 = vmax.f32 %v2646_v30, %v3557_v48  ;;  %v3297_v27 = vrot.slane %v2935_v40, %v6028_v9  ;;  %v3301_v20 = vrot.slane %v2943_v54, %v6028_v9 }
 0x32d   : > { %v3305_v55 = vrot.slane %v2951_v46, %v6028_v9  ;;  %v3314_v62 = vsel %vm3009_vm1, %v3289_v57, %v3285_v43  ;;  %v2410_v15 = vcombine.high %v2408_v44, %v2408_v44  ;;  %v2444_v23 = vcombine.high %v2442_v53, %v2442_v53 }
 0x32e   : > { %v3309_v11 = vrot.slane %v2959_v17, %v6028_v9  ;;  %v3313_v10 = vrot.slane %v2967_v25, %v6028_v9  ;;  %v3315_v33 = vsel %vm3011_vm2, %v3293_v59, %v3314_v62  ;;  %v2478_v56 = vcombine.high %v2476_v32, %v2476_v32 }
 0x32f   : > { %v3316_v19 = vsel %vm3013_vm3, %v3297_v27, %v3315_v33  ;;  %v2512_v6 = vcombine.high %v2510_v12, %v2510_v12  ;;  %v2546_v21 = vcombine.high %v2544_v14, %v2544_v14  ;;  %v2580_v61 = vcombine.high %v2578_v63, %v2578_v63 }
 0x330   : > { %v3317_v34 = vsel %vm3015_vm4, %v3301_v20, %v3316_v19  ;;  %v2614_v29 = vcombine.high %v2612_v58, %v2612_v58  ;;  %v2648_v47 = vcombine.high %v2646_v30, %v2646_v30  ;;  %v3502_v50 = vrot.slane %v2410_v15, 9 }
 0x331   : > { %v3318_v4 = vsel %vm3017_vm5, %v3305_v55, %v3317_v34  ;;  %v3510_v3 = vrot.slane %v2444_v23, 9  ;;  %v3518_v13 = vrot.slane %v2478_v56, 9  ;;  %v3526_v16 = vrot.slane %v2512_v6, 9 }
 0x332   : > { %v3319_v44 = vsel %vm3019_vm6, %v3309_v11, %v3318_v4  ;;  %v3534_v53 = vrot.slane %v2546_v21, 9  ;;  %v3542_v49 = vrot.slane %v2580_v61, 9  ;;  %v3550_v32 = vrot.slane %v2614_v29, 9 }
 0x333   : > { %v3320_v42 = vsel %vm3021_vm7, %v3313_v10, %v3319_v44  ;;  %v3558_v12 = vrot.slane %v2648_v47, 9  ;;  %v2912_v14 = vmax.f32 %v2410_v15, %v3502_v50  ;;  %v2920_v63 = vmax.f32 %v2444_v23, %v3510_v3 }
 0x334   : > { %3321 = vrot.lane.b32.xlu1 %v3320_v42, %s4493_s14  ;;  %v2928_v28 = vmax.f32 %v2478_v56, %v3518_v13  ;;  %v2936_v26 = vmax.f32 %v2512_v6, %v3526_v16  ;;  %v2944_v24 = vmax.f32 %v2546_v21, %v3534_v53  ;;  %v2952_v0 = vmax.f32 %v2580_v61, %v3542_v49 }
 0x335   : > { %v2960_v39 = vmax.f32 %v2614_v29, %v3550_v32  ;;  %v2968_v41 = vmax.f32 %v2648_v47, %v3558_v12  ;;  %v3335_v45 = vrot.slane %v2912_v14, %v6028_v9  ;;  %v3339_v60 = vrot.slane %v2920_v63, %v6028_v9 }
 0x336   : > { %v3343_v58 = vrot.slane %v2928_v28, %v6028_v9  ;;  %v3347_v30 = vrot.slane %v2936_v26, %v6028_v9  ;;  %v3351_v35 = vrot.slane %v2944_v24, %v6028_v9  ;;  %v3355_v1 = vrot.slane %v2952_v0, %v6028_v9 }
 0x337   : > { %v3364_v18 = vsel %vm3009_vm1, %v3339_v60, %v3335_v45  ;;  %v3359_v7 = vrot.slane %v2960_v39, %v6028_v9  ;;  %v3363_v37 = vrot.slane %v2968_v41, %v6028_v9  ;;  %v3495_v57 = vrot.slane %v6044_v36, 9 }
 0x338   : > { %v3365_v38 = vsel %vm3011_vm2, %v3343_v58, %v3364_v18  ;;  %v3503_v59 = vrot.slane %v6048_v31, 9  ;;  %v3511_v17 = vrot.slane %v6052_v5, 9  ;;  %v3519_v20 = vrot.slane %v6056_v51, 9 }
 0x339   : > { %v3366_v48 = vsel %vm3013_vm3, %v3347_v30, %v3365_v38  ;;  %v2905_v25 = vmax.f32 %v6044_v36, %v3495_v57  ;;  %v3527_v23 = vrot.slane %v6060_v22, 9  ;;  %v3535_v33 = vrot.slane %v6064_v8, 9 }
 0x33a   : > { %v3367_v40 = vsel %vm3015_vm4, %v3351_v35, %v3366_v48  ;;  %v2913_v27 = vmax.f32 %v6048_v31, %v3503_v59  ;;  %v2921_v55 = vmax.f32 %v6052_v5, %v3511_v17  ;;  %v2929_v11 = vmax.f32 %v6056_v51, %v3519_v20 }
 0x33b   : > { %v3368_v54 = vsel %vm3017_vm5, %v3355_v1, %v3367_v40  ;;  %v2980_v62 = vrot.slane %v2905_v25, %v6028_v9  ;;  %v2937_v31 = vmax.f32 %v6060_v22, %v3527_v23  ;;  %v3543_v5 = vrot.slane %v6068_v52, 9 }
 0x33c   : > { %v3369_v46 = vsel %vm3019_vm6, %v3359_v7, %v3368_v54  ;;  %v2984_v15 = vrot.slane %v2913_v27, %v6028_v9  ;;  %v2988_v10 = vrot.slane %v2921_v55, %v6028_v9  ;;  %v2992_v56 = vrot.slane %v2929_v11, %v6028_v9 }
 0x33d   : > { %v3370_v43 = vsel %vm3021_vm7, %v3363_v37, %v3369_v46  ;;  %v2945_v6 = vmax.f32 %v6064_v8, %v3535_v33  ;;  %v2996_v21 = vrot.slane %v2937_v31, %v6028_v9  ;;  %v3551_v51 = vrot.slane %v6072_v2, 9 }
 0x33e   : > { %3371 = vrot.lane.b32.xlu0 %v3370_v43, %s4494_s22  ;;  %v3010_v36 = vsel %vm3009_vm1, %v2984_v15, %v2980_v62  ;;  %v2953_v34 = vmax.f32 %v6068_v52, %v3543_v5  ;;  %vm3382_vm12 = vcmask 326656   ;;  %vm3384_vm13 = vcmask 392192  }
 0x33f   : > { %v3012_v19 = vsel %vm3011_vm2, %v2988_v10, %v3010_v36  ;;  %v3000_v29 = vrot.slane %v2945_v6, %v6028_v9  ;;  %v2961_v47 = vmax.f32 %v6072_v2, %v3551_v51  ;;  %vm3386_vm14 = vcmask 457728  }
 0x340   : > { %v3014_v61 = vsel %vm3013_vm3, %v2992_v56, %v3012_v19  ;;  %v3004_v50 = vrot.slane %v2953_v34, %v6028_v9  ;;  %vm3388_vm15 = vcmask 523264  }
 0x341   : > { %v3016_v22 = vsel %vm3015_vm4, %v2996_v21, %v3014_v61  ;;  %v3008_v8 = vrot.slane %v2961_v47, %v6028_v9 }
 0x342   : > { %v3018_v4 = vsel %vm3017_vm5, %v3000_v29, %v3016_v22 }
 0x343   : > { %v3020_v13 = vsel %vm3019_vm6, %v3004_v50, %v3018_v4 }
 0x344   : > { %v3022_v44 = vsel %vm3021_vm7, %v3008_v8, %v3020_v13 }
 0x365   : > { %v3072_v3 = vpop.permute.xlu0 %3071 }
 0x366   : > { %v3375_v53 = vsel %vm3374_vm8, %v3022_v44, %v3072_v3 }
 0x37c   : > { %v3222_v16 = vpop.permute.xlu1 %3221 }
 0x387   : > { %v3122_v52 = vpop.permute.xlu0 %3121 }
 0x388   : > { %v3377_v49 = vsel %vm3376_vm9, %v3375_v53, %v3122_v52 }
 0x391   : > { %v3172_v2 = vpop.permute.xlu1 %3171 }
 0x392   : > { %v3379_v32 = vsel %vm3378_vm10, %v3377_v49, %v3172_v2 }
 0x393   : > { %v3381_v12 = vsel %vm3380_vm11, %v3379_v32, %v3222_v16 }
 0x39b   : > { %v3272_v42 = vpop.permute.xlu0 %3271 }
 0x39c   : > { %v3383_v14 = vsel %vm3382_vm12, %v3381_v12, %v3272_v42 }
 0x3a6   : > { %v3322_v9 = vpop.permute.xlu1 %3321 }
 0x3a7   : > { %v3385_v63 = vsel %vm3384_vm13, %v3383_v14, %v3322_v9 }
 0x3b0   : > { %v3372_v28 = vpop.permute.xlu0 %3371 }
 0x3b1   : > { %v3387_v26 = vsel %vm3386_vm14, %v3385_v63, %v3372_v28 }
 0x3b2   : > { %3389 = vst.msk [vmem:[%s4565_s29] sm:$0xff] %vm3388_vm15, %v3387_v26 }
 0x3b3 PF: > { %s14_s19 = sadd.s32 1, %s4476_s19   ;;  %s6511_s15 = smov %s4468_s17 }
 0x3b4   : > { %p11_p0 = scmp.ge.s32.totalorder %s14_s19, 6   ;;  %s6512_s16 = smov %s4472_s18 }
 0x3b5   : > { %s6513_s17 = smov %s6516_s20  ;;  %s6514_s18 = smov %s6520_s21 }
 0x3b6   :  { %13 = sbr.rel (!%p11_p0) target bundleno = 3 (0x3), region = 85 }

</bundles_post_ra>
